<compile_context>
chip_gen: v7x
topology: tpu7x:2x2x1
jax: 0.10.0
libtpu: 0.0.40
codegen_flags: <defaults>
</compile_context>

<pallas_src>
import math
import numpy as np
import jax
import jax.numpy as jnp
from jax.experimental import pallas as pl
from jax.experimental.pallas import tpu as pltpu


def _make_kernel(Bt, C, HW, W, eca_k, eca_pad, w_eca, w_sp):
    w_eca = [float(v) for v in np.asarray(w_eca, np.float32)]
    w_sp = np.asarray(w_sp, np.float32)          # (2, 7, 7) scalar taps (closure consts)
    P = 3                                        # 7x7 conv padding

    def kernel(x_ref, mask_ref, o_ref):
        x = x_ref[...].astype(jnp.float32)       # (Bt, C, HW), lane-dense

        # ---------------- channel attention (ECA) — batched over Bt ----------------
        # conv(avg) + conv(max) == conv(avg + max): the 1-D conv is linear and bias-free.
        pooled = (jnp.mean(x, axis=2, keepdims=True)
                  + jnp.max(x, axis=2, keepdims=True))            # (Bt, C, 1)
        if eca_pad > 0:
            zer = jnp.zeros((Bt, eca_pad, 1), jnp.float32)
            padded = jnp.concatenate([zer, pooled, zer], axis=1)  # (Bt, C+2p, 1)
        else:
            padded = pooled
        acc = w_eca[0] * padded[:, 0:C, :]
        for t in range(1, eca_k):
            acc = acc + w_eca[t] * padded[:, t:t + C, :]
        # Exact sigmoid here: its error would otherwise multiply into the spatial stage.
        attn_c = jax.nn.sigmoid(acc)                              # (Bt, C, 1)
        x1 = x * attn_c                                           # (Bt, C, HW)

        # ---------------- spatial attention (7x7, pad 3) — batch-stacked ----------------
        # Pack all Bt avg rows and Bt max rows into one (2*Bt, HW) array so the 49-tap
        # roll+FMA loop runs once per grid step on densely used vregs.
        rows = [jnp.mean(x1[b], axis=0, keepdims=True) for b in range(Bt)]
        rows += [jnp.max(x1[b], axis=0, keepdims=True) for b in range(Bt)]
        maps = jnp.concatenate(rows, axis=0)                      # (2*Bt, HW)

        # map[y+oy, x+ox] == flat[p + oy*W + ox]; out-of-image taps are zeroed by the
        # host-precomputed f32 padding masks (multiply instead of compare+select).
        conv = jnp.zeros((Bt, HW), jnp.float32)
        for dy in range(7):
            for dx in range(7):
                sft = (dy - P) * W + (dx - P)
                rolled = maps if sft == 0 else pltpu.roll(maps, (-sft) % HW, axis=1)
                tap = (float(w_sp[0, dy, dx]) * rolled[0:Bt, :]
                       + float(w_sp[1, dy, dx]) * rolled[Bt:2 * Bt, :])
                k0 = dy * 7 + dx
                conv = conv + mask_ref[k0:k0 + 1, :] * tap        # (1,HW) sublane-broadcast

        # Spatial sigmoid: divide routed through the EUP (approximate reciprocal).
        attn_s = pl.reciprocal(1.0 + jnp.exp(-conv), approx=True)  # (Bt, HW)

        # Apply spatial attention and store (lane-dense, full-width stores).  The per-b
        # loop here is streaming work proportional to data size — no wasted repetition.
        for b in range(Bt):
            o_ref[b] = (x1[b] * attn_s[b:b + 1, :]).astype(o_ref.dtype)

    return kernel


def _pick_tiling(B, per_batch_bytes):
    """Chip-aware batch tile + VMEM limit.

    v5e/v6e (single TensorCore, 128 MiB VMEM): prefer one big block (fewer grid
    steps, better DMA efficiency) with a 64 MiB scoped limit.
    Otherwise (v7x-style 2 TCs, 64 MiB VMEM): keep >=2 grid steps so both cores
    take work, and cap per-block size ~6 MiB under the 32 MiB scoped limit.
    """
    try:
        kind = jax.devices()[0].device_kind.lower()
    except Exception:
        kind = ""
    single_tc = ("v5" in kind) or ("v6" in kind)
    if single_tc:
        vmem_limit = 64 * 1024 * 1024
        block_budget = 14 * 1024 * 1024
        min_steps = 1
    else:
        vmem_limit = 32 * 1024 * 1024
        block_budget = 6 * 1024 * 1024
        min_steps = 2
    cap = max(1, block_budget // max(1, per_batch_bytes))
    bt = max(1, min(B, cap, 8))                  # 8 bounds the small static unrolls
    if min_steps > 1 and B > 1:
        bt = min(bt, max(1, B // min_steps))
    while B % bt:
        bt -= 1
    return bt, vmem_limit


def cbam_pallas(x, w_eca, w_sp, *, batch_tile=None):
    B, C, H, W = x.shape
    HW = H * W
    eca_k = int(w_eca.shape[0])
    eca_pad = (eca_k - 1) // 2

    # Stream bf16 in/out if the surrounding model is bf16; compute is f32 in-kernel.
    io_dtype = jnp.bfloat16 if x.dtype == jnp.bfloat16 else jnp.float32
    x_flat = x.astype(io_dtype).reshape(B, C, HW)   # lane-dense HW axis

    # Host-precomputed zero-padding masks for the 49 spatial-conv taps (f32, 49*HW*4 B).
    ys = np.repeat(np.arange(H), W)
    xs = np.tile(np.arange(W), H)
    mask = np.empty((49, HW), np.float32)
    for dy in range(7):
        for dx in range(7):
            oy, ox = dy - 3, dx - 3
            mask[dy * 7 + dx] = ((ys + oy >= 0) & (ys + oy < H)
                                 & (xs + ox >= 0) & (xs + ox < W)).astype(np.float32)

    bpe = jnp.dtype(io_dtype).itemsize
    auto_bt, vmem_limit = _pick_tiling(B, C * HW * bpe)
    if batch_tile is None:
        batch_tile = auto_bt
    assert B % batch_tile == 0
    grid = (B // batch_tile,)

    kernel = _make_kernel(batch_tile, C, HW, W, eca_k, eca_pad, w_eca, w_sp)

    out = pl.pallas_call(
        kernel,
        out_shape=jax.ShapeDtypeStruct((B, C, HW), io_dtype),
        grid=grid,
        in_specs=[
            pl.BlockSpec((batch_tile, C, HW), lambda i: (i, 0, 0)),
            # Grid-invariant block (block index fixed at (0,0)): the pipeline does not
            # re-copy it on later grid steps, so the masks are DMA'd effectively once.
            pl.BlockSpec((49, HW), lambda i: (0, 0)),
        ],
        out_specs=pl.BlockSpec((batch_tile, C, HW), lambda i: (i, 0, 0)),
        compiler_params=pltpu.CompilerParams(
            dimension_semantics=("parallel",),
            vmem_limit_bytes=vmem_limit,
        ),
    )(x_flat, jnp.asarray(mask))
    return out.reshape(B, C, H, W)


def cbam_reference(x, w_eca, w_sp):
    """Pure-JAX reference mirroring the PyTorch module semantics."""
    B, C, H, W = x.shape
    k = w_eca.shape[0]
    pad = (k - 1) // 2
    avg = jnp.mean(x, axis=(2, 3))  # (B,C)
    mx = jnp.max(x, axis=(2, 3))

    def eca(v):
        vp = jnp.pad(v, ((0, 0), (pad, pad)))
        return sum(w_eca[t] * vp[:, t:t + C] for t in range(k))

    attn_c = jax.nn.sigmoid(eca(avg) + eca(mx))[:, :, None, None]
    x1 = x * attn_c

    avg_s = jnp.mean(x1, axis=1)
    max_s = jnp.max(x1, axis=1)
    cat = jnp.stack([avg_s, max_s], axis=1)                    # (B,2,H,W)
    catp = jnp.pad(cat, ((0, 0), (0, 0), (3, 3), (3, 3)))
    conv = sum(w_sp[c, dy, dx] * catp[:, c, dy:dy + H, dx:dx + W]
               for c in range(2) for dy in range(7) for dx in range(7))
    attn_s = jax.nn.sigmoid(conv)[:, None, :, :]
    return x1 * attn_s


if __name__ == "__main__":
    B, C, H, W = 2, 16, 16, 16

    # ECA kernel size from the module's __init__ (b=1, gamma=2): C=16 -> k=3
    ks = int(abs((math.log(C, 2) + 1) / 2))
    ks = ks if ks % 2 else ks + 1

    key = jax.random.PRNGKey(0)
    kx, ke, ksp = jax.random.split(key, 3)
    x = jax.random.normal(kx, (B, C, H, W), jnp.float32)
    # Deterministic synthetic parameters (Conv1d(1,1,ks) and Conv2d(2,1,7,7), bias=False)
    w_eca = jax.random.normal(ke, (ks,), jnp.float32) * 0.5
    w_sp = jax.random.normal(ksp, (2, 7, 7), jnp.float32) * 0.1

    out = jax.block_until_ready(cbam_pallas(x, w_eca, w_sp))
    ref = jax.block_until_ready(cbam_reference(x, w_eca, w_sp))

    assert out.shape == (B, C, H, W)
    # Tolerance accommodates the EUP approximate reciprocal in the spatial sigmoid;
    # any structural error (wrong shift/mask/weight) would be orders larger.
    np.testing.assert_allclose(np.asarray(out), np.asarray(ref), rtol=1e-2, atol=1e-2)
    print("KERNEL_OK")
</pallas_src>

<mosaic_0001>
module attributes {stable_mosaic.version = 11 : i64} {
  func.func @kernel(%arg0: i32, %arg1: memref<1x16x256xf32, #tpu.memory_space<vmem>>, %arg2: memref<49x256xf32, #tpu.memory_space<vmem>>, %arg3: memref<1x16x256xf32, #tpu.memory_space<vmem>>) attributes {dimension_semantics = [#tpu.dimension_semantics<parallel>], iteration_bounds = array<i64: 2>, scalar_prefetch = 0 : i64, scratch_operands = 0 : i64, tpu.core_type = #tpu.core_type<tc>, window_params = [{transform_indices = @transform_0, window_bounds = array<i64: 1, 16, 256>}, {pipeline_mode = #tpu.pipeline_mode<synchronous>, transform_indices = @transform_1, window_bounds = array<i64: 49, 256>}, {transform_indices = @transform_2, window_bounds = array<i64: 1, 16, 256>}]} {
    %c0 = arith.constant 0 : index
    %c0_0 = arith.constant 0 : index
    %c0_1 = arith.constant 0 : index
    %0 = vector.load %arg1[%c0, %c0_0, %c0_1] : memref<1x16x256xf32, #tpu.memory_space<vmem>>, vector<1x16x256xf32>
    %cst = arith.constant dense<0.000000e+00> : vector<1x16xf32>
    %1 = vector.multi_reduction <add>, %0, %cst [2] : vector<1x16x256xf32> to vector<1x16xf32>
    %2 = vector.shape_cast %1 : vector<1x16xf32> to vector<1x16x1xf32>
    %cst_2 = arith.constant 2.560000e+02 : f32
    %3 = vector.broadcast %cst_2 : f32 to vector<1x16x1xf32>
    %4 = arith.divf %2, %3 : vector<1x16x1xf32>
    %cst_3 = arith.constant dense<0xFF800000> : vector<1x16xf32>
    %5 = vector.multi_reduction <maximumf>, %0, %cst_3 [2] : vector<1x16x256xf32> to vector<1x16xf32>
    %6 = vector.shape_cast %5 : vector<1x16xf32> to vector<1x16x1xf32>
    %7 = arith.addf %4, %6 : vector<1x16x1xf32>
    %cst_4 = arith.constant 0.000000e+00 : f32
    %8 = vector.broadcast %cst_4 : f32 to vector<1x1x1xf32>
    %9 = tpu.concatenate %8, %7, %8 in 1 : vector<1x1x1xf32>, vector<1x16x1xf32>, vector<1x1x1xf32> -> vector<1x18x1xf32>
    %10 = vector.extract_strided_slice %9 {offsets = [0, 0, 0], sizes = [1, 16, 1], strides = [1, 1, 1]} : vector<1x18x1xf32> to vector<1x16x1xf32>
    %cst_5 = arith.constant -1.22122788 : f32
    %11 = vector.broadcast %cst_5 : f32 to vector<1x16x1xf32>
    %12 = arith.mulf %11, %10 : vector<1x16x1xf32>
    %13 = vector.extract_strided_slice %9 {offsets = [0, 1, 0], sizes = [1, 16, 1], strides = [1, 1, 1]} : vector<1x18x1xf32> to vector<1x16x1xf32>
    %cst_6 = arith.constant -1.01784027 : f32
    %14 = vector.broadcast %cst_6 : f32 to vector<1x16x1xf32>
    %15 = arith.mulf %14, %13 : vector<1x16x1xf32>
    %16 = arith.addf %12, %15 : vector<1x16x1xf32>
    %17 = vector.extract_strided_slice %9 {offsets = [0, 2, 0], sizes = [1, 16, 1], strides = [1, 1, 1]} : vector<1x18x1xf32> to vector<1x16x1xf32>
    %cst_7 = arith.constant 0.102772117 : f32
    %18 = vector.broadcast %cst_7 : f32 to vector<1x16x1xf32>
    %19 = arith.mulf %18, %17 : vector<1x16x1xf32>
    %20 = arith.addf %16, %19 : vector<1x16x1xf32>
    %21 = arith.negf %20 : vector<1x16x1xf32>
    %22 = math.exp %21 : vector<1x16x1xf32>
    %cst_8 = arith.constant 1.000000e+00 : f32
    %23 = vector.broadcast %cst_8 : f32 to vector<1x16x1xf32>
    %24 = arith.addf %23, %22 : vector<1x16x1xf32>
    %25 = arith.divf %23, %24 : vector<1x16x1xf32>
    %26 = vector.broadcast %25 : vector<1x16x1xf32> to vector<1x16x256xf32>
    %27 = arith.mulf %0, %26 : vector<1x16x256xf32>
    %28 = vector.shape_cast %27 : vector<1x16x256xf32> to vector<16x256xf32>
    %cst_9 = arith.constant dense<0.000000e+00> : vector<256xf32>
    %29 = vector.multi_reduction <add>, %28, %cst_9 [0] : vector<16x256xf32> to vector<256xf32>
    %30 = vector.shape_cast %29 : vector<256xf32> to vector<1x256xf32>
    %cst_10 = arith.constant 1.600000e+01 : f32
    %31 = vector.broadcast %cst_10 : f32 to vector<1x256xf32>
    %32 = arith.divf %30, %31 : vector<1x256xf32>
    %33 = vector.shape_cast %27 : vector<1x16x256xf32> to vector<16x256xf32>
    %cst_11 = arith.constant dense<0xFF800000> : vector<256xf32>
    %34 = vector.multi_reduction <maximumf>, %33, %cst_11 [0] : vector<16x256xf32> to vector<256xf32>
    %35 = vector.shape_cast %34 : vector<256xf32> to vector<1x256xf32>
    %36 = tpu.concatenate %32, %35 in 0 : vector<1x256xf32>, vector<1x256xf32> -> vector<2x256xf32>
    %cst_12 = arith.constant 0.000000e+00 : f32
    %37 = vector.broadcast %cst_12 : f32 to vector<1x256xf32>
    %c51_i32 = arith.constant 51 : i32
    %38 = tpu.dynamic_rotate %36 by %c51_i32 dim 1 : vector<2x256xf32>, i32 -> vector<2x256xf32>
    %39 = vector.extract_strided_slice %38 {offsets = [0, 0], sizes = [1, 256], strides = [1, 1]} : vector<2x256xf32> to vector<1x256xf32>
    %cst_13 = arith.constant 0.1295636 : f32
    %40 = vector.broadcast %cst_13 : f32 to vector<1x256xf32>
    %41 = arith.mulf %40, %39 : vector<1x256xf32>
    %42 = vector.extract_strided_slice %38 {offsets = [1, 0], sizes = [1, 256], strides = [1, 1]} : vector<2x256xf32> to vector<1x256xf32>
    %cst_14 = arith.constant 0.0157277789 : f32
    %43 = vector.broadcast %cst_14 : f32 to vector<1x256xf32>
    %44 = arith.mulf %43, %42 : vector<1x256xf32>
    %45 = arith.addf %41, %44 : vector<1x256xf32>
    %c0_15 = arith.constant 0 : index
    %c0_16 = arith.constant 0 : index
    %46 = vector.load %arg2[%c0_15, %c0_16] : memref<49x256xf32, #tpu.memory_space<vmem>>, vector<1x256xf32>
    %47 = arith.mulf %46, %45 : vector<1x256xf32>
    %48 = arith.addf %37, %47 : vector<1x256xf32>
    %c50_i32 = arith.constant 50 : i32
    %49 = tpu.dynamic_rotate %36 by %c50_i32 dim 1 : vector<2x256xf32>, i32 -> vector<2x256xf32>
    %50 = vector.extract_strided_slice %49 {offsets = [0, 0], sizes = [1, 256], strides = [1, 1]} : vector<2x256xf32> to vector<1x256xf32>
    %cst_17 = arith.constant 0.135501057 : f32
    %51 = vector.broadcast %cst_17 : f32 to vector<1x256xf32>
    %52 = arith.mulf %51, %50 : vector<1x256xf32>
    %53 = vector.extract_strided_slice %49 {offsets = [1, 0], sizes = [1, 256], strides = [1, 1]} : vector<2x256xf32> to vector<1x256xf32>
    %cst_18 = arith.constant -0.0399924517 : f32
    %54 = vector.broadcast %cst_18 : f32 to vector<1x256xf32>
    %55 = arith.mulf %54, %53 : vector<1x256xf32>
    %56 = arith.addf %52, %55 : vector<1x256xf32>
    %c1 = arith.constant 1 : index
    %c0_19 = arith.constant 0 : index
    %57 = vector.load %arg2[%c1, %c0_19] : memref<49x256xf32, #tpu.memory_space<vmem>>, vector<1x256xf32>
    %58 = arith.mulf %57, %56 : vector<1x256xf32>
    %59 = arith.addf %48, %58 : vector<1x256xf32>
    %c49_i32 = arith.constant 49 : i32
    %60 = tpu.dynamic_rotate %36 by %c49_i32 dim 1 : vector<2x256xf32>, i32 -> vector<2x256xf32>
    %61 = vector.extract_strided_slice %60 {offsets = [0, 0], sizes = [1, 256], strides = [1, 1]} : vector<2x256xf32> to vector<1x256xf32>
    %cst_20 = arith.constant -0.0409605578 : f32
    %62 = vector.broadcast %cst_20 : f32 to vector<1x256xf32>
    %63 = arith.mulf %62, %61 : vector<1x256xf32>
    %64 = vector.extract_strided_slice %60 {offsets = [1, 0], sizes = [1, 256], strides = [1, 1]} : vector<2x256xf32> to vector<1x256xf32>
    %cst_21 = arith.constant 0.0210332032 : f32
    %65 = vector.broadcast %cst_21 : f32 to vector<1x256xf32>
    %66 = arith.mulf %65, %64 : vector<1x256xf32>
    %67 = arith.addf %63, %66 : vector<1x256xf32>
    %c2 = arith.constant 2 : index
    %c0_22 = arith.constant 0 : index
    %68 = vector.load %arg2[%c2, %c0_22] : memref<49x256xf32, #tpu.memory_space<vmem>>, vector<1x256xf32>
    %69 = arith.mulf %68, %67 : vector<1x256xf32>
    %70 = arith.addf %59, %69 : vector<1x256xf32>
    %c48_i32 = arith.constant 48 : i32
    %71 = tpu.dynamic_rotate %36 by %c48_i32 dim 1 : vector<2x256xf32>, i32 -> vector<2x256xf32>
    %72 = vector.extract_strided_slice %71 {offsets = [0, 0], sizes = [1, 256], strides = [1, 1]} : vector<2x256xf32> to vector<1x256xf32>
    %cst_23 = arith.constant -0.077188544 : f32
    %73 = vector.broadcast %cst_23 : f32 to vector<1x256xf32>
    %74 = arith.mulf %73, %72 : vector<1x256xf32>
    %75 = vector.extract_strided_slice %71 {offsets = [1, 0], sizes = [1, 256], strides = [1, 1]} : vector<2x256xf32> to vector<1x256xf32>
    %cst_24 = arith.constant -0.0636055097 : f32
    %76 = vector.broadcast %cst_24 : f32 to vector<1x256xf32>
    %77 = arith.mulf %76, %75 : vector<1x256xf32>
    %78 = arith.addf %74, %77 : vector<1x256xf32>
    %c3 = arith.constant 3 : index
    %c0_25 = arith.constant 0 : index
    %79 = vector.load %arg2[%c3, %c0_25] : memref<49x256xf32, #tpu.memory_space<vmem>>, vector<1x256xf32>
    %80 = arith.mulf %79, %78 : vector<1x256xf32>
    %81 = arith.addf %70, %80 : vector<1x256xf32>
    %c47_i32 = arith.constant 47 : i32
    %82 = tpu.dynamic_rotate %36 by %c47_i32 dim 1 : vector<2x256xf32>, i32 -> vector<2x256xf32>
    %83 = vector.extract_strided_slice %82 {offsets = [0, 0], sizes = [1, 256], strides = [1, 1]} : vector<2x256xf32> to vector<1x256xf32>
    %cst_26 = arith.constant 0.0380941741 : f32
    %84 = vector.broadcast %cst_26 : f32 to vector<1x256xf32>
    %85 = arith.mulf %84, %83 : vector<1x256xf32>
    %86 = vector.extract_strided_slice %82 {offsets = [1, 0], sizes = [1, 256], strides = [1, 1]} : vector<2x256xf32> to vector<1x256xf32>
    %cst_27 = arith.constant 0.0916143432 : f32
    %87 = vector.broadcast %cst_27 : f32 to vector<1x256xf32>
    %88 = arith.mulf %87, %86 : vector<1x256xf32>
    %89 = arith.addf %85, %88 : vector<1x256xf32>
    %c4 = arith.constant 4 : index
    %c0_28 = arith.constant 0 : index
    %90 = vector.load %arg2[%c4, %c0_28] : memref<49x256xf32, #tpu.memory_space<vmem>>, vector<1x256xf32>
    %91 = arith.mulf %90, %89 : vector<1x256xf32>
    %92 = arith.addf %81, %91 : vector<1x256xf32>
    %c46_i32 = arith.constant 46 : i32
    %93 = tpu.dynamic_rotate %36 by %c46_i32 dim 1 : vector<2x256xf32>, i32 -> vector<2x256xf32>
    %94 = vector.extract_strided_slice %93 {offsets = [0, 0], sizes = [1, 256], strides = [1, 1]} : vector<2x256xf32> to vector<1x256xf32>
    %cst_29 = arith.constant 0.00188891904 : f32
    %95 = vector.broadcast %cst_29 : f32 to vector<1x256xf32>
    %96 = arith.mulf %95, %94 : vector<1x256xf32>
    %97 = vector.extract_strided_slice %93 {offsets = [1, 0], sizes = [1, 256], strides = [1, 1]} : vector<2x256xf32> to vector<1x256xf32>
    %cst_30 = arith.constant -0.0612032302 : f32
    %98 = vector.broadcast %cst_30 : f32 to vector<1x256xf32>
    %99 = arith.mulf %98, %97 : vector<1x256xf32>
    %100 = arith.addf %96, %99 : vector<1x256xf32>
    %c5 = arith.constant 5 : index
    %c0_31 = arith.constant 0 : index
    %101 = vector.load %arg2[%c5, %c0_31] : memref<49x256xf32, #tpu.memory_space<vmem>>, vector<1x256xf32>
    %102 = arith.mulf %101, %100 : vector<1x256xf32>
    %103 = arith.addf %92, %102 : vector<1x256xf32>
    %c45_i32 = arith.constant 45 : i32
    %104 = tpu.dynamic_rotate %36 by %c45_i32 dim 1 : vector<2x256xf32>, i32 -> vector<2x256xf32>
    %105 = vector.extract_strided_slice %104 {offsets = [0, 0], sizes = [1, 256], strides = [1, 1]} : vector<2x256xf32> to vector<1x256xf32>
    %cst_32 = arith.constant 0.0574556552 : f32
    %106 = vector.broadcast %cst_32 : f32 to vector<1x256xf32>
    %107 = arith.mulf %106, %105 : vector<1x256xf32>
    %108 = vector.extract_strided_slice %104 {offsets = [1, 0], sizes = [1, 256], strides = [1, 1]} : vector<2x256xf32> to vector<1x256xf32>
    %cst_33 = arith.constant 0.0684821233 : f32
    %109 = vector.broadcast %cst_33 : f32 to vector<1x256xf32>
    %110 = arith.mulf %109, %108 : vector<1x256xf32>
    %111 = arith.addf %107, %110 : vector<1x256xf32>
    %c6 = arith.constant 6 : index
    %c0_34 = arith.constant 0 : index
    %112 = vector.load %arg2[%c6, %c0_34] : memref<49x256xf32, #tpu.memory_space<vmem>>, vector<1x256xf32>
    %113 = arith.mulf %112, %111 : vector<1x256xf32>
    %114 = arith.addf %103, %113 : vector<1x256xf32>
    %c35_i32 = arith.constant 35 : i32
    %115 = tpu.dynamic_rotate %36 by %c35_i32 dim 1 : vector<2x256xf32>, i32 -> vector<2x256xf32>
    %116 = vector.extract_strided_slice %115 {offsets = [0, 0], sizes = [1, 256], strides = [1, 1]} : vector<2x256xf32> to vector<1x256xf32>
    %cst_35 = arith.constant -0.0753278956 : f32
    %117 = vector.broadcast %cst_35 : f32 to vector<1x256xf32>
    %118 = arith.mulf %117, %116 : vector<1x256xf32>
    %119 = vector.extract_strided_slice %115 {offsets = [1, 0], sizes = [1, 256], strides = [1, 1]} : vector<2x256xf32> to vector<1x256xf32>
    %cst_36 = arith.constant -0.0755385831 : f32
    %120 = vector.broadcast %cst_36 : f32 to vector<1x256xf32>
    %121 = arith.mulf %120, %119 : vector<1x256xf32>
    %122 = arith.addf %118, %121 : vector<1x256xf32>
    %c7 = arith.constant 7 : index
    %c0_37 = arith.constant 0 : index
    %123 = vector.load %arg2[%c7, %c0_37] : memref<49x256xf32, #tpu.memory_space<vmem>>, vector<1x256xf32>
    %124 = arith.mulf %123, %122 : vector<1x256xf32>
    %125 = arith.addf %114, %124 : vector<1x256xf32>
    %c34_i32 = arith.constant 34 : i32
    %126 = tpu.dynamic_rotate %36 by %c34_i32 dim 1 : vector<2x256xf32>, i32 -> vector<2x256xf32>
    %127 = vector.extract_strided_slice %126 {offsets = [0, 0], sizes = [1, 256], strides = [1, 1]} : vector<2x256xf32> to vector<1x256xf32>
    %cst_38 = arith.constant 0.0230166223 : f32
    %128 = vector.broadcast %cst_38 : f32 to vector<1x256xf32>
    %129 = arith.mulf %128, %127 : vector<1x256xf32>
    %130 = vector.extract_strided_slice %126 {offsets = [1, 0], sizes = [1, 256], strides = [1, 1]} : vector<2x256xf32> to vector<1x256xf32>
    %cst_39 = arith.constant -0.0265254378 : f32
    %131 = vector.broadcast %cst_39 : f32 to vector<1x256xf32>
    %132 = arith.mulf %131, %130 : vector<1x256xf32>
    %133 = arith.addf %129, %132 : vector<1x256xf32>
    %c8 = arith.constant 8 : index
    %c0_40 = arith.constant 0 : index
    %134 = vector.load %arg2[%c8, %c0_40] : memref<49x256xf32, #tpu.memory_space<vmem>>, vector<1x256xf32>
    %135 = arith.mulf %134, %133 : vector<1x256xf32>
    %136 = arith.addf %125, %135 : vector<1x256xf32>
    %c33_i32 = arith.constant 33 : i32
    %137 = tpu.dynamic_rotate %36 by %c33_i32 dim 1 : vector<2x256xf32>, i32 -> vector<2x256xf32>
    %138 = vector.extract_strided_slice %137 {offsets = [0, 0], sizes = [1, 256], strides = [1, 1]} : vector<2x256xf32> to vector<1x256xf32>
    %cst_41 = arith.constant -0.148934364 : f32
    %139 = vector.broadcast %cst_41 : f32 to vector<1x256xf32>
    %140 = arith.mulf %139, %138 : vector<1x256xf32>
    %141 = vector.extract_strided_slice %137 {offsets = [1, 0], sizes = [1, 256], strides = [1, 1]} : vector<2x256xf32> to vector<1x256xf32>
    %cst_42 = arith.constant 0.168516219 : f32
    %142 = vector.broadcast %cst_42 : f32 to vector<1x256xf32>
    %143 = arith.mulf %142, %141 : vector<1x256xf32>
    %144 = arith.addf %140, %143 : vector<1x256xf32>
    %c9 = arith.constant 9 : index
    %c0_43 = arith.constant 0 : index
    %145 = vector.load %arg2[%c9, %c0_43] : memref<49x256xf32, #tpu.memory_space<vmem>>, vector<1x256xf32>
    %146 = arith.mulf %145, %144 : vector<1x256xf32>
    %147 = arith.addf %136, %146 : vector<1x256xf32>
    %c32_i32 = arith.constant 32 : i32
    %148 = tpu.dynamic_rotate %36 by %c32_i32 dim 1 : vector<2x256xf32>, i32 -> vector<2x256xf32>
    %149 = vector.extract_strided_slice %148 {offsets = [0, 0], sizes = [1, 256], strides = [1, 1]} : vector<2x256xf32> to vector<1x256xf32>
    %cst_44 = arith.constant -0.0914319679 : f32
    %150 = vector.broadcast %cst_44 : f32 to vector<1x256xf32>
    %151 = arith.mulf %150, %149 : vector<1x256xf32>
    %152 = vector.extract_strided_slice %148 {offsets = [1, 0], sizes = [1, 256], strides = [1, 1]} : vector<2x256xf32> to vector<1x256xf32>
    %cst_45 = arith.constant 0.0119945677 : f32
    %153 = vector.broadcast %cst_45 : f32 to vector<1x256xf32>
    %154 = arith.mulf %153, %152 : vector<1x256xf32>
    %155 = arith.addf %151, %154 : vector<1x256xf32>
    %c10 = arith.constant 10 : index
    %c0_46 = arith.constant 0 : index
    %156 = vector.load %arg2[%c10, %c0_46] : memref<49x256xf32, #tpu.memory_space<vmem>>, vector<1x256xf32>
    %157 = arith.mulf %156, %155 : vector<1x256xf32>
    %158 = arith.addf %147, %157 : vector<1x256xf32>
    %c31_i32 = arith.constant 31 : i32
    %159 = tpu.dynamic_rotate %36 by %c31_i32 dim 1 : vector<2x256xf32>, i32 -> vector<2x256xf32>
    %160 = vector.extract_strided_slice %159 {offsets = [0, 0], sizes = [1, 256], strides = [1, 1]} : vector<2x256xf32> to vector<1x256xf32>
    %cst_47 = arith.constant 0.176612064 : f32
    %161 = vector.broadcast %cst_47 : f32 to vector<1x256xf32>
    %162 = arith.mulf %161, %160 : vector<1x256xf32>
    %163 = vector.extract_strided_slice %159 {offsets = [1, 0], sizes = [1, 256], strides = [1, 1]} : vector<2x256xf32> to vector<1x256xf32>
    %cst_48 = arith.constant -0.12539719 : f32
    %164 = vector.broadcast %cst_48 : f32 to vector<1x256xf32>
    %165 = arith.mulf %164, %163 : vector<1x256xf32>
    %166 = arith.addf %162, %165 : vector<1x256xf32>
    %c11 = arith.constant 11 : index
    %c0_49 = arith.constant 0 : index
    %167 = vector.load %arg2[%c11, %c0_49] : memref<49x256xf32, #tpu.memory_space<vmem>>, vector<1x256xf32>
    %168 = arith.mulf %167, %166 : vector<1x256xf32>
    %169 = arith.addf %158, %168 : vector<1x256xf32>
    %c30_i32 = arith.constant 30 : i32
    %170 = tpu.dynamic_rotate %36 by %c30_i32 dim 1 : vector<2x256xf32>, i32 -> vector<2x256xf32>
    %171 = vector.extract_strided_slice %170 {offsets = [0, 0], sizes = [1, 256], strides = [1, 1]} : vector<2x256xf32> to vector<1x256xf32>
    %cst_50 = arith.constant -0.095966354 : f32
    %172 = vector.broadcast %cst_50 : f32 to vector<1x256xf32>
    %173 = arith.mulf %172, %171 : vector<1x256xf32>
    %174 = vector.extract_strided_slice %170 {offsets = [1, 0], sizes = [1, 256], strides = [1, 1]} : vector<2x256xf32> to vector<1x256xf32>
    %cst_51 = arith.constant 0.00180753821 : f32
    %175 = vector.broadcast %cst_51 : f32 to vector<1x256xf32>
    %176 = arith.mulf %175, %174 : vector<1x256xf32>
    %177 = arith.addf %173, %176 : vector<1x256xf32>
    %c12 = arith.constant 12 : index
    %c0_52 = arith.constant 0 : index
    %178 = vector.load %arg2[%c12, %c0_52] : memref<49x256xf32, #tpu.memory_space<vmem>>, vector<1x256xf32>
    %179 = arith.mulf %178, %177 : vector<1x256xf32>
    %180 = arith.addf %169, %179 : vector<1x256xf32>
    %c29_i32 = arith.constant 29 : i32
    %181 = tpu.dynamic_rotate %36 by %c29_i32 dim 1 : vector<2x256xf32>, i32 -> vector<2x256xf32>
    %182 = vector.extract_strided_slice %181 {offsets = [0, 0], sizes = [1, 256], strides = [1, 1]} : vector<2x256xf32> to vector<1x256xf32>
    %cst_53 = arith.constant -0.0431319959 : f32
    %183 = vector.broadcast %cst_53 : f32 to vector<1x256xf32>
    %184 = arith.mulf %183, %182 : vector<1x256xf32>
    %185 = vector.extract_strided_slice %181 {offsets = [1, 0], sizes = [1, 256], strides = [1, 1]} : vector<2x256xf32> to vector<1x256xf32>
    %cst_54 = arith.constant 0.0325316414 : f32
    %186 = vector.broadcast %cst_54 : f32 to vector<1x256xf32>
    %187 = arith.mulf %186, %185 : vector<1x256xf32>
    %188 = arith.addf %184, %187 : vector<1x256xf32>
    %c13 = arith.constant 13 : index
    %c0_55 = arith.constant 0 : index
    %189 = vector.load %arg2[%c13, %c0_55] : memref<49x256xf32, #tpu.memory_space<vmem>>, vector<1x256xf32>
    %190 = arith.mulf %189, %188 : vector<1x256xf32>
    %191 = arith.addf %180, %190 : vector<1x256xf32>
    %c19_i32 = arith.constant 19 : i32
    %192 = tpu.dynamic_rotate %36 by %c19_i32 dim 1 : vector<2x256xf32>, i32 -> vector<2x256xf32>
    %193 = vector.extract_strided_slice %192 {offsets = [0, 0], sizes = [1, 256], strides = [1, 1]} : vector<2x256xf32> to vector<1x256xf32>
    %cst_56 = arith.constant 0.0815238952 : f32
    %194 = vector.broadcast %cst_56 : f32 to vector<1x256xf32>
    %195 = arith.mulf %194, %193 : vector<1x256xf32>
    %196 = vector.extract_strided_slice %192 {offsets = [1, 0], sizes = [1, 256], strides = [1, 1]} : vector<2x256xf32> to vector<1x256xf32>
    %cst_57 = arith.constant 0.00210509403 : f32
    %197 = vector.broadcast %cst_57 : f32 to vector<1x256xf32>
    %198 = arith.mulf %197, %196 : vector<1x256xf32>
    %199 = arith.addf %195, %198 : vector<1x256xf32>
    %c14 = arith.constant 14 : index
    %c0_58 = arith.constant 0 : index
    %200 = vector.load %arg2[%c14, %c0_58] : memref<49x256xf32, #tpu.memory_space<vmem>>, vector<1x256xf32>
    %201 = arith.mulf %200, %199 : vector<1x256xf32>
    %202 = arith.addf %191, %201 : vector<1x256xf32>
    %c18_i32 = arith.constant 18 : i32
    %203 = tpu.dynamic_rotate %36 by %c18_i32 dim 1 : vector<2x256xf32>, i32 -> vector<2x256xf32>
    %204 = vector.extract_strided_slice %203 {offsets = [0, 0], sizes = [1, 256], strides = [1, 1]} : vector<2x256xf32> to vector<1x256xf32>
    %cst_59 = arith.constant 0.119967394 : f32
    %205 = vector.broadcast %cst_59 : f32 to vector<1x256xf32>
    %206 = arith.mulf %205, %204 : vector<1x256xf32>
    %207 = vector.extract_strided_slice %203 {offsets = [1, 0], sizes = [1, 256], strides = [1, 1]} : vector<2x256xf32> to vector<1x256xf32>
    %cst_60 = arith.constant -0.0492610596 : f32
    %208 = vector.broadcast %cst_60 : f32 to vector<1x256xf32>
    %209 = arith.mulf %208, %207 : vector<1x256xf32>
    %210 = arith.addf %206, %209 : vector<1x256xf32>
    %c15 = arith.constant 15 : index
    %c0_61 = arith.constant 0 : index
    %211 = vector.load %arg2[%c15, %c0_61] : memref<49x256xf32, #tpu.memory_space<vmem>>, vector<1x256xf32>
    %212 = arith.mulf %211, %210 : vector<1x256xf32>
    %213 = arith.addf %202, %212 : vector<1x256xf32>
    %c17_i32 = arith.constant 17 : i32
    %214 = tpu.dynamic_rotate %36 by %c17_i32 dim 1 : vector<2x256xf32>, i32 -> vector<2x256xf32>
    %215 = vector.extract_strided_slice %214 {offsets = [0, 0], sizes = [1, 256], strides = [1, 1]} : vector<2x256xf32> to vector<1x256xf32>
    %cst_62 = arith.constant -0.010776422 : f32
    %216 = vector.broadcast %cst_62 : f32 to vector<1x256xf32>
    %217 = arith.mulf %216, %215 : vector<1x256xf32>
    %218 = vector.extract_strided_slice %214 {offsets = [1, 0], sizes = [1, 256], strides = [1, 1]} : vector<2x256xf32> to vector<1x256xf32>
    %cst_63 = arith.constant -0.13651447 : f32
    %219 = vector.broadcast %cst_63 : f32 to vector<1x256xf32>
    %220 = arith.mulf %219, %218 : vector<1x256xf32>
    %221 = arith.addf %217, %220 : vector<1x256xf32>
    %c16 = arith.constant 16 : index
    %c0_64 = arith.constant 0 : index
    %222 = vector.load %arg2[%c16, %c0_64] : memref<49x256xf32, #tpu.memory_space<vmem>>, vector<1x256xf32>
    %223 = arith.mulf %222, %221 : vector<1x256xf32>
    %224 = arith.addf %213, %223 : vector<1x256xf32>
    %c16_i32 = arith.constant 16 : i32
    %225 = tpu.dynamic_rotate %36 by %c16_i32 dim 1 : vector<2x256xf32>, i32 -> vector<2x256xf32>
    %226 = vector.extract_strided_slice %225 {offsets = [0, 0], sizes = [1, 256], strides = [1, 1]} : vector<2x256xf32> to vector<1x256xf32>
    %cst_65 = arith.constant -0.0902676433 : f32
    %227 = vector.broadcast %cst_65 : f32 to vector<1x256xf32>
    %228 = arith.mulf %227, %226 : vector<1x256xf32>
    %229 = vector.extract_strided_slice %225 {offsets = [1, 0], sizes = [1, 256], strides = [1, 1]} : vector<2x256xf32> to vector<1x256xf32>
    %cst_66 = arith.constant 0.0790159255 : f32
    %230 = vector.broadcast %cst_66 : f32 to vector<1x256xf32>
    %231 = arith.mulf %230, %229 : vector<1x256xf32>
    %232 = arith.addf %228, %231 : vector<1x256xf32>
    %c17 = arith.constant 17 : index
    %c0_67 = arith.constant 0 : index
    %233 = vector.load %arg2[%c17, %c0_67] : memref<49x256xf32, #tpu.memory_space<vmem>>, vector<1x256xf32>
    %234 = arith.mulf %233, %232 : vector<1x256xf32>
    %235 = arith.addf %224, %234 : vector<1x256xf32>
    %c15_i32 = arith.constant 15 : i32
    %236 = tpu.dynamic_rotate %36 by %c15_i32 dim 1 : vector<2x256xf32>, i32 -> vector<2x256xf32>
    %237 = vector.extract_strided_slice %236 {offsets = [0, 0], sizes = [1, 256], strides = [1, 1]} : vector<2x256xf32> to vector<1x256xf32>
    %cst_68 = arith.constant 0.137596428 : f32
    %238 = vector.broadcast %cst_68 : f32 to vector<1x256xf32>
    %239 = arith.mulf %238, %237 : vector<1x256xf32>
    %240 = vector.extract_strided_slice %236 {offsets = [1, 0], sizes = [1, 256], strides = [1, 1]} : vector<2x256xf32> to vector<1x256xf32>
    %cst_69 = arith.constant 0.0245911144 : f32
    %241 = vector.broadcast %cst_69 : f32 to vector<1x256xf32>
    %242 = arith.mulf %241, %240 : vector<1x256xf32>
    %243 = arith.addf %239, %242 : vector<1x256xf32>
    %c18 = arith.constant 18 : index
    %c0_70 = arith.constant 0 : index
    %244 = vector.load %arg2[%c18, %c0_70] : memref<49x256xf32, #tpu.memory_space<vmem>>, vector<1x256xf32>
    %245 = arith.mulf %244, %243 : vector<1x256xf32>
    %246 = arith.addf %235, %245 : vector<1x256xf32>
    %c14_i32 = arith.constant 14 : i32
    %247 = tpu.dynamic_rotate %36 by %c14_i32 dim 1 : vector<2x256xf32>, i32 -> vector<2x256xf32>
    %248 = vector.extract_strided_slice %247 {offsets = [0, 0], sizes = [1, 256], strides = [1, 1]} : vector<2x256xf32> to vector<1x256xf32>
    %cst_71 = arith.constant 0.01301107 : f32
    %249 = vector.broadcast %cst_71 : f32 to vector<1x256xf32>
    %250 = arith.mulf %249, %248 : vector<1x256xf32>
    %251 = vector.extract_strided_slice %247 {offsets = [1, 0], sizes = [1, 256], strides = [1, 1]} : vector<2x256xf32> to vector<1x256xf32>
    %cst_72 = arith.constant 0.0202682987 : f32
    %252 = vector.broadcast %cst_72 : f32 to vector<1x256xf32>
    %253 = arith.mulf %252, %251 : vector<1x256xf32>
    %254 = arith.addf %250, %253 : vector<1x256xf32>
    %c19 = arith.constant 19 : index
    %c0_73 = arith.constant 0 : index
    %255 = vector.load %arg2[%c19, %c0_73] : memref<49x256xf32, #tpu.memory_space<vmem>>, vector<1x256xf32>
    %256 = arith.mulf %255, %254 : vector<1x256xf32>
    %257 = arith.addf %246, %256 : vector<1x256xf32>
    %c13_i32 = arith.constant 13 : i32
    %258 = tpu.dynamic_rotate %36 by %c13_i32 dim 1 : vector<2x256xf32>, i32 -> vector<2x256xf32>
    %259 = vector.extract_strided_slice %258 {offsets = [0, 0], sizes = [1, 256], strides = [1, 1]} : vector<2x256xf32> to vector<1x256xf32>
    %cst_74 = arith.constant -5.900460e-02 : f32
    %260 = vector.broadcast %cst_74 : f32 to vector<1x256xf32>
    %261 = arith.mulf %260, %259 : vector<1x256xf32>
    %262 = vector.extract_strided_slice %258 {offsets = [1, 0], sizes = [1, 256], strides = [1, 1]} : vector<2x256xf32> to vector<1x256xf32>
    %cst_75 = arith.constant 0.261412472 : f32
    %263 = vector.broadcast %cst_75 : f32 to vector<1x256xf32>
    %264 = arith.mulf %263, %262 : vector<1x256xf32>
    %265 = arith.addf %261, %264 : vector<1x256xf32>
    %c20 = arith.constant 20 : index
    %c0_76 = arith.constant 0 : index
    %266 = vector.load %arg2[%c20, %c0_76] : memref<49x256xf32, #tpu.memory_space<vmem>>, vector<1x256xf32>
    %267 = arith.mulf %266, %265 : vector<1x256xf32>
    %268 = arith.addf %257, %267 : vector<1x256xf32>
    %c3_i32 = arith.constant 3 : i32
    %269 = tpu.dynamic_rotate %36 by %c3_i32 dim 1 : vector<2x256xf32>, i32 -> vector<2x256xf32>
    %270 = vector.extract_strided_slice %269 {offsets = [0, 0], sizes = [1, 256], strides = [1, 1]} : vector<2x256xf32> to vector<1x256xf32>
    %cst_77 = arith.constant -0.0461295508 : f32
    %271 = vector.broadcast %cst_77 : f32 to vector<1x256xf32>
    %272 = arith.mulf %271, %270 : vector<1x256xf32>
    %273 = vector.extract_strided_slice %269 {offsets = [1, 0], sizes = [1, 256], strides = [1, 1]} : vector<2x256xf32> to vector<1x256xf32>
    %cst_78 = arith.constant 0.0184176974 : f32
    %274 = vector.broadcast %cst_78 : f32 to vector<1x256xf32>
    %275 = arith.mulf %274, %273 : vector<1x256xf32>
    %276 = arith.addf %272, %275 : vector<1x256xf32>
    %c21 = arith.constant 21 : index
    %c0_79 = arith.constant 0 : index
    %277 = vector.load %arg2[%c21, %c0_79] : memref<49x256xf32, #tpu.memory_space<vmem>>, vector<1x256xf32>
    %278 = arith.mulf %277, %276 : vector<1x256xf32>
    %279 = arith.addf %268, %278 : vector<1x256xf32>
    %c2_i32 = arith.constant 2 : i32
    %280 = tpu.dynamic_rotate %36 by %c2_i32 dim 1 : vector<2x256xf32>, i32 -> vector<2x256xf32>
    %281 = vector.extract_strided_slice %280 {offsets = [0, 0], sizes = [1, 256], strides = [1, 1]} : vector<2x256xf32> to vector<1x256xf32>
    %cst_80 = arith.constant -0.0567099936 : f32
    %282 = vector.broadcast %cst_80 : f32 to vector<1x256xf32>
    %283 = arith.mulf %282, %281 : vector<1x256xf32>
    %284 = vector.extract_strided_slice %280 {offsets = [1, 0], sizes = [1, 256], strides = [1, 1]} : vector<2x256xf32> to vector<1x256xf32>
    %cst_81 = arith.constant 0.0452309661 : f32
    %285 = vector.broadcast %cst_81 : f32 to vector<1x256xf32>
    %286 = arith.mulf %285, %284 : vector<1x256xf32>
    %287 = arith.addf %283, %286 : vector<1x256xf32>
    %c22 = arith.constant 22 : index
    %c0_82 = arith.constant 0 : index
    %288 = vector.load %arg2[%c22, %c0_82] : memref<49x256xf32, #tpu.memory_space<vmem>>, vector<1x256xf32>
    %289 = arith.mulf %288, %287 : vector<1x256xf32>
    %290 = arith.addf %279, %289 : vector<1x256xf32>
    %c1_i32 = arith.constant 1 : i32
    %291 = tpu.dynamic_rotate %36 by %c1_i32 dim 1 : vector<2x256xf32>, i32 -> vector<2x256xf32>
    %292 = vector.extract_strided_slice %291 {offsets = [0, 0], sizes = [1, 256], strides = [1, 1]} : vector<2x256xf32> to vector<1x256xf32>
    %cst_83 = arith.constant 0.0276171919 : f32
    %293 = vector.broadcast %cst_83 : f32 to vector<1x256xf32>
    %294 = arith.mulf %293, %292 : vector<1x256xf32>
    %295 = vector.extract_strided_slice %291 {offsets = [1, 0], sizes = [1, 256], strides = [1, 1]} : vector<2x256xf32> to vector<1x256xf32>
    %cst_84 = arith.constant -0.054425288 : f32
    %296 = vector.broadcast %cst_84 : f32 to vector<1x256xf32>
    %297 = arith.mulf %296, %295 : vector<1x256xf32>
    %298 = arith.addf %294, %297 : vector<1x256xf32>
    %c23 = arith.constant 23 : index
    %c0_85 = arith.constant 0 : index
    %299 = vector.load %arg2[%c23, %c0_85] : memref<49x256xf32, #tpu.memory_space<vmem>>, vector<1x256xf32>
    %300 = arith.mulf %299, %298 : vector<1x256xf32>
    %301 = arith.addf %290, %300 : vector<1x256xf32>
    %302 = vector.extract_strided_slice %36 {offsets = [0, 0], sizes = [1, 256], strides = [1, 1]} : vector<2x256xf32> to vector<1x256xf32>
    %cst_86 = arith.constant -0.016535623 : f32
    %303 = vector.broadcast %cst_86 : f32 to vector<1x256xf32>
    %304 = arith.mulf %303, %302 : vector<1x256xf32>
    %305 = vector.extract_strided_slice %36 {offsets = [1, 0], sizes = [1, 256], strides = [1, 1]} : vector<2x256xf32> to vector<1x256xf32>
    %cst_87 = arith.constant 0.045316942 : f32
    %306 = vector.broadcast %cst_87 : f32 to vector<1x256xf32>
    %307 = arith.mulf %306, %305 : vector<1x256xf32>
    %308 = arith.addf %304, %307 : vector<1x256xf32>
    %c24 = arith.constant 24 : index
    %c0_88 = arith.constant 0 : index
    %309 = vector.load %arg2[%c24, %c0_88] : memref<49x256xf32, #tpu.memory_space<vmem>>, vector<1x256xf32>
    %310 = arith.mulf %309, %308 : vector<1x256xf32>
    %311 = arith.addf %301, %310 : vector<1x256xf32>
    %c255_i32 = arith.constant 255 : i32
    %312 = tpu.dynamic_rotate %36 by %c255_i32 dim 1 : vector<2x256xf32>, i32 -> vector<2x256xf32>
    %313 = vector.extract_strided_slice %312 {offsets = [0, 0], sizes = [1, 256], strides = [1, 1]} : vector<2x256xf32> to vector<1x256xf32>
    %cst_89 = arith.constant 0.166559845 : f32
    %314 = vector.broadcast %cst_89 : f32 to vector<1x256xf32>
    %315 = arith.mulf %314, %313 : vector<1x256xf32>
    %316 = vector.extract_strided_slice %312 {offsets = [1, 0], sizes = [1, 256], strides = [1, 1]} : vector<2x256xf32> to vector<1x256xf32>
    %cst_90 = arith.constant 0.152444467 : f32
    %317 = vector.broadcast %cst_90 : f32 to vector<1x256xf32>
    %318 = arith.mulf %317, %316 : vector<1x256xf32>
    %319 = arith.addf %315, %318 : vector<1x256xf32>
    %c25 = arith.constant 25 : index
    %c0_91 = arith.constant 0 : index
    %320 = vector.load %arg2[%c25, %c0_91] : memref<49x256xf32, #tpu.memory_space<vmem>>, vector<1x256xf32>
    %321 = arith.mulf %320, %319 : vector<1x256xf32>
    %322 = arith.addf %311, %321 : vector<1x256xf32>
    %c254_i32 = arith.constant 254 : i32
    %323 = tpu.dynamic_rotate %36 by %c254_i32 dim 1 : vector<2x256xf32>, i32 -> vector<2x256xf32>
    %324 = vector.extract_strided_slice %323 {offsets = [0, 0], sizes = [1, 256], strides = [1, 1]} : vector<2x256xf32> to vector<1x256xf32>
    %cst_92 = arith.constant -0.0713313073 : f32
    %325 = vector.broadcast %cst_92 : f32 to vector<1x256xf32>
    %326 = arith.mulf %325, %324 : vector<1x256xf32>
    %327 = vector.extract_strided_slice %323 {offsets = [1, 0], sizes = [1, 256], strides = [1, 1]} : vector<2x256xf32> to vector<1x256xf32>
    %cst_93 = arith.constant -0.159226522 : f32
    %328 = vector.broadcast %cst_93 : f32 to vector<1x256xf32>
    %329 = arith.mulf %328, %327 : vector<1x256xf32>
    %330 = arith.addf %326, %329 : vector<1x256xf32>
    %c26 = arith.constant 26 : index
    %c0_94 = arith.constant 0 : index
    %331 = vector.load %arg2[%c26, %c0_94] : memref<49x256xf32, #tpu.memory_space<vmem>>, vector<1x256xf32>
    %332 = arith.mulf %331, %330 : vector<1x256xf32>
    %333 = arith.addf %322, %332 : vector<1x256xf32>
    %c253_i32 = arith.constant 253 : i32
    %334 = tpu.dynamic_rotate %36 by %c253_i32 dim 1 : vector<2x256xf32>, i32 -> vector<2x256xf32>
    %335 = vector.extract_strided_slice %334 {offsets = [0, 0], sizes = [1, 256], strides = [1, 1]} : vector<2x256xf32> to vector<1x256xf32>
    %cst_95 = arith.constant 0.203500375 : f32
    %336 = vector.broadcast %cst_95 : f32 to vector<1x256xf32>
    %337 = arith.mulf %336, %335 : vector<1x256xf32>
    %338 = vector.extract_strided_slice %334 {offsets = [1, 0], sizes = [1, 256], strides = [1, 1]} : vector<2x256xf32> to vector<1x256xf32>
    %cst_96 = arith.constant 0.119729877 : f32
    %339 = vector.broadcast %cst_96 : f32 to vector<1x256xf32>
    %340 = arith.mulf %339, %338 : vector<1x256xf32>
    %341 = arith.addf %337, %340 : vector<1x256xf32>
    %c27 = arith.constant 27 : index
    %c0_97 = arith.constant 0 : index
    %342 = vector.load %arg2[%c27, %c0_97] : memref<49x256xf32, #tpu.memory_space<vmem>>, vector<1x256xf32>
    %343 = arith.mulf %342, %341 : vector<1x256xf32>
    %344 = arith.addf %333, %343 : vector<1x256xf32>
    %c243_i32 = arith.constant 243 : i32
    %345 = tpu.dynamic_rotate %36 by %c243_i32 dim 1 : vector<2x256xf32>, i32 -> vector<2x256xf32>
    %346 = vector.extract_strided_slice %345 {offsets = [0, 0], sizes = [1, 256], strides = [1, 1]} : vector<2x256xf32> to vector<1x256xf32>
    %cst_98 = arith.constant 0.0966152921 : f32
    %347 = vector.broadcast %cst_98 : f32 to vector<1x256xf32>
    %348 = arith.mulf %347, %346 : vector<1x256xf32>
    %349 = vector.extract_strided_slice %345 {offsets = [1, 0], sizes = [1, 256], strides = [1, 1]} : vector<2x256xf32> to vector<1x256xf32>
    %cst_99 = arith.constant -0.109666876 : f32
    %350 = vector.broadcast %cst_99 : f32 to vector<1x256xf32>
    %351 = arith.mulf %350, %349 : vector<1x256xf32>
    %352 = arith.addf %348, %351 : vector<1x256xf32>
    %c28 = arith.constant 28 : index
    %c0_100 = arith.constant 0 : index
    %353 = vector.load %arg2[%c28, %c0_100] : memref<49x256xf32, #tpu.memory_space<vmem>>, vector<1x256xf32>
    %354 = arith.mulf %353, %352 : vector<1x256xf32>
    %355 = arith.addf %344, %354 : vector<1x256xf32>
    %c242_i32 = arith.constant 242 : i32
    %356 = tpu.dynamic_rotate %36 by %c242_i32 dim 1 : vector<2x256xf32>, i32 -> vector<2x256xf32>
    %357 = vector.extract_strided_slice %356 {offsets = [0, 0], sizes = [1, 256], strides = [1, 1]} : vector<2x256xf32> to vector<1x256xf32>
    %cst_101 = arith.constant -0.172120303 : f32
    %358 = vector.broadcast %cst_101 : f32 to vector<1x256xf32>
    %359 = arith.mulf %358, %357 : vector<1x256xf32>
    %360 = vector.extract_strided_slice %356 {offsets = [1, 0], sizes = [1, 256], strides = [1, 1]} : vector<2x256xf32> to vector<1x256xf32>
    %cst_102 = arith.constant -0.150994658 : f32
    %361 = vector.broadcast %cst_102 : f32 to vector<1x256xf32>
    %362 = arith.mulf %361, %360 : vector<1x256xf32>
    %363 = arith.addf %359, %362 : vector<1x256xf32>
    %c29 = arith.constant 29 : index
    %c0_103 = arith.constant 0 : index
    %364 = vector.load %arg2[%c29, %c0_103] : memref<49x256xf32, #tpu.memory_space<vmem>>, vector<1x256xf32>
    %365 = arith.mulf %364, %363 : vector<1x256xf32>
    %366 = arith.addf %355, %365 : vector<1x256xf32>
    %c241_i32 = arith.constant 241 : i32
    %367 = tpu.dynamic_rotate %36 by %c241_i32 dim 1 : vector<2x256xf32>, i32 -> vector<2x256xf32>
    %368 = vector.extract_strided_slice %367 {offsets = [0, 0], sizes = [1, 256], strides = [1, 1]} : vector<2x256xf32> to vector<1x256xf32>
    %cst_104 = arith.constant -0.101493537 : f32
    %369 = vector.broadcast %cst_104 : f32 to vector<1x256xf32>
    %370 = arith.mulf %369, %368 : vector<1x256xf32>
    %371 = vector.extract_strided_slice %367 {offsets = [1, 0], sizes = [1, 256], strides = [1, 1]} : vector<2x256xf32> to vector<1x256xf32>
    %cst_105 = arith.constant 0.135373786 : f32
    %372 = vector.broadcast %cst_105 : f32 to vector<1x256xf32>
    %373 = arith.mulf %372, %371 : vector<1x256xf32>
    %374 = arith.addf %370, %373 : vector<1x256xf32>
    %c30 = arith.constant 30 : index
    %c0_106 = arith.constant 0 : index
    %375 = vector.load %arg2[%c30, %c0_106] : memref<49x256xf32, #tpu.memory_space<vmem>>, vector<1x256xf32>
    %376 = arith.mulf %375, %374 : vector<1x256xf32>
    %377 = arith.addf %366, %376 : vector<1x256xf32>
    %c240_i32 = arith.constant 240 : i32
    %378 = tpu.dynamic_rotate %36 by %c240_i32 dim 1 : vector<2x256xf32>, i32 -> vector<2x256xf32>
    %379 = vector.extract_strided_slice %378 {offsets = [0, 0], sizes = [1, 256], strides = [1, 1]} : vector<2x256xf32> to vector<1x256xf32>
    %cst_107 = arith.constant -0.032130789 : f32
    %380 = vector.broadcast %cst_107 : f32 to vector<1x256xf32>
    %381 = arith.mulf %380, %379 : vector<1x256xf32>
    %382 = vector.extract_strided_slice %378 {offsets = [1, 0], sizes = [1, 256], strides = [1, 1]} : vector<2x256xf32> to vector<1x256xf32>
    %cst_108 = arith.constant -0.0260398127 : f32
    %383 = vector.broadcast %cst_108 : f32 to vector<1x256xf32>
    %384 = arith.mulf %383, %382 : vector<1x256xf32>
    %385 = arith.addf %381, %384 : vector<1x256xf32>
    %c31 = arith.constant 31 : index
    %c0_109 = arith.constant 0 : index
    %386 = vector.load %arg2[%c31, %c0_109] : memref<49x256xf32, #tpu.memory_space<vmem>>, vector<1x256xf32>
    %387 = arith.mulf %386, %385 : vector<1x256xf32>
    %388 = arith.addf %377, %387 : vector<1x256xf32>
    %c239_i32 = arith.constant 239 : i32
    %389 = tpu.dynamic_rotate %36 by %c239_i32 dim 1 : vector<2x256xf32>, i32 -> vector<2x256xf32>
    %390 = vector.extract_strided_slice %389 {offsets = [0, 0], sizes = [1, 256], strides = [1, 1]} : vector<2x256xf32> to vector<1x256xf32>
    %cst_110 = arith.constant -0.0928627774 : f32
    %391 = vector.broadcast %cst_110 : f32 to vector<1x256xf32>
    %392 = arith.mulf %391, %390 : vector<1x256xf32>
    %393 = vector.extract_strided_slice %389 {offsets = [1, 0], sizes = [1, 256], strides = [1, 1]} : vector<2x256xf32> to vector<1x256xf32>
    %cst_111 = arith.constant 0.0332929641 : f32
    %394 = vector.broadcast %cst_111 : f32 to vector<1x256xf32>
    %395 = arith.mulf %394, %393 : vector<1x256xf32>
    %396 = arith.addf %392, %395 : vector<1x256xf32>
    %c32 = arith.constant 32 : index
    %c0_112 = arith.constant 0 : index
    %397 = vector.load %arg2[%c32, %c0_112] : memref<49x256xf32, #tpu.memory_space<vmem>>, vector<1x256xf32>
    %398 = arith.mulf %397, %396 : vector<1x256xf32>
    %399 = arith.addf %388, %398 : vector<1x256xf32>
    %c238_i32 = arith.constant 238 : i32
    %400 = tpu.dynamic_rotate %36 by %c238_i32 dim 1 : vector<2x256xf32>, i32 -> vector<2x256xf32>
    %401 = vector.extract_strided_slice %400 {offsets = [0, 0], sizes = [1, 256], strides = [1, 1]} : vector<2x256xf32> to vector<1x256xf32>
    %cst_113 = arith.constant -0.0600591712 : f32
    %402 = vector.broadcast %cst_113 : f32 to vector<1x256xf32>
    %403 = arith.mulf %402, %401 : vector<1x256xf32>
    %404 = vector.extract_strided_slice %400 {offsets = [1, 0], sizes = [1, 256], strides = [1, 1]} : vector<2x256xf32> to vector<1x256xf32>
    %cst_114 = arith.constant 0.102957144 : f32
    %405 = vector.broadcast %cst_114 : f32 to vector<1x256xf32>
    %406 = arith.mulf %405, %404 : vector<1x256xf32>
    %407 = arith.addf %403, %406 : vector<1x256xf32>
    %c33 = arith.constant 33 : index
    %c0_115 = arith.constant 0 : index
    %408 = vector.load %arg2[%c33, %c0_115] : memref<49x256xf32, #tpu.memory_space<vmem>>, vector<1x256xf32>
    %409 = arith.mulf %408, %407 : vector<1x256xf32>
    %410 = arith.addf %399, %409 : vector<1x256xf32>
    %c237_i32 = arith.constant 237 : i32
    %411 = tpu.dynamic_rotate %36 by %c237_i32 dim 1 : vector<2x256xf32>, i32 -> vector<2x256xf32>
    %412 = vector.extract_strided_slice %411 {offsets = [0, 0], sizes = [1, 256], strides = [1, 1]} : vector<2x256xf32> to vector<1x256xf32>
    %cst_116 = arith.constant 0.17222549 : f32
    %413 = vector.broadcast %cst_116 : f32 to vector<1x256xf32>
    %414 = arith.mulf %413, %412 : vector<1x256xf32>
    %415 = vector.extract_strided_slice %411 {offsets = [1, 0], sizes = [1, 256], strides = [1, 1]} : vector<2x256xf32> to vector<1x256xf32>
    %cst_117 = arith.constant 0.147277281 : f32
    %416 = vector.broadcast %cst_117 : f32 to vector<1x256xf32>
    %417 = arith.mulf %416, %415 : vector<1x256xf32>
    %418 = arith.addf %414, %417 : vector<1x256xf32>
    %c34 = arith.constant 34 : index
    %c0_118 = arith.constant 0 : index
    %419 = vector.load %arg2[%c34, %c0_118] : memref<49x256xf32, #tpu.memory_space<vmem>>, vector<1x256xf32>
    %420 = arith.mulf %419, %418 : vector<1x256xf32>
    %421 = arith.addf %410, %420 : vector<1x256xf32>
    %c227_i32 = arith.constant 227 : i32
    %422 = tpu.dynamic_rotate %36 by %c227_i32 dim 1 : vector<2x256xf32>, i32 -> vector<2x256xf32>
    %423 = vector.extract_strided_slice %422 {offsets = [0, 0], sizes = [1, 256], strides = [1, 1]} : vector<2x256xf32> to vector<1x256xf32>
    %cst_119 = arith.constant 0.0995152071 : f32
    %424 = vector.broadcast %cst_119 : f32 to vector<1x256xf32>
    %425 = arith.mulf %424, %423 : vector<1x256xf32>
    %426 = vector.extract_strided_slice %422 {offsets = [1, 0], sizes = [1, 256], strides = [1, 1]} : vector<2x256xf32> to vector<1x256xf32>
    %cst_120 = arith.constant -0.185719594 : f32
    %427 = vector.broadcast %cst_120 : f32 to vector<1x256xf32>
    %428 = arith.mulf %427, %426 : vector<1x256xf32>
    %429 = arith.addf %425, %428 : vector<1x256xf32>
    %c35 = arith.constant 35 : index
    %c0_121 = arith.constant 0 : index
    %430 = vector.load %arg2[%c35, %c0_121] : memref<49x256xf32, #tpu.memory_space<vmem>>, vector<1x256xf32>
    %431 = arith.mulf %430, %429 : vector<1x256xf32>
    %432 = arith.addf %421, %431 : vector<1x256xf32>
    %c226_i32 = arith.constant 226 : i32
    %433 = tpu.dynamic_rotate %36 by %c226_i32 dim 1 : vector<2x256xf32>, i32 -> vector<2x256xf32>
    %434 = vector.extract_strided_slice %433 {offsets = [0, 0], sizes = [1, 256], strides = [1, 1]} : vector<2x256xf32> to vector<1x256xf32>
    %cst_122 = arith.constant 0.0140526993 : f32
    %435 = vector.broadcast %cst_122 : f32 to vector<1x256xf32>
    %436 = arith.mulf %435, %434 : vector<1x256xf32>
    %437 = vector.extract_strided_slice %433 {offsets = [1, 0], sizes = [1, 256], strides = [1, 1]} : vector<2x256xf32> to vector<1x256xf32>
    %cst_123 = arith.constant -0.0207674503 : f32
    %438 = vector.broadcast %cst_123 : f32 to vector<1x256xf32>
    %439 = arith.mulf %438, %437 : vector<1x256xf32>
    %440 = arith.addf %436, %439 : vector<1x256xf32>
    %c36 = arith.constant 36 : index
    %c0_124 = arith.constant 0 : index
    %441 = vector.load %arg2[%c36, %c0_124] : memref<49x256xf32, #tpu.memory_space<vmem>>, vector<1x256xf32>
    %442 = arith.mulf %441, %440 : vector<1x256xf32>
    %443 = arith.addf %432, %442 : vector<1x256xf32>
    %c225_i32 = arith.constant 225 : i32
    %444 = tpu.dynamic_rotate %36 by %c225_i32 dim 1 : vector<2x256xf32>, i32 -> vector<2x256xf32>
    %445 = vector.extract_strided_slice %444 {offsets = [0, 0], sizes = [1, 256], strides = [1, 1]} : vector<2x256xf32> to vector<1x256xf32>
    %cst_125 = arith.constant 0.0442382656 : f32
    %446 = vector.broadcast %cst_125 : f32 to vector<1x256xf32>
    %447 = arith.mulf %446, %445 : vector<1x256xf32>
    %448 = vector.extract_strided_slice %444 {offsets = [1, 0], sizes = [1, 256], strides = [1, 1]} : vector<2x256xf32> to vector<1x256xf32>
    %cst_126 = arith.constant 0.0486490801 : f32
    %449 = vector.broadcast %cst_126 : f32 to vector<1x256xf32>
    %450 = arith.mulf %449, %448 : vector<1x256xf32>
    %451 = arith.addf %447, %450 : vector<1x256xf32>
    %c37 = arith.constant 37 : index
    %c0_127 = arith.constant 0 : index
    %452 = vector.load %arg2[%c37, %c0_127] : memref<49x256xf32, #tpu.memory_space<vmem>>, vector<1x256xf32>
    %453 = arith.mulf %452, %451 : vector<1x256xf32>
    %454 = arith.addf %443, %453 : vector<1x256xf32>
    %c224_i32 = arith.constant 224 : i32
    %455 = tpu.dynamic_rotate %36 by %c224_i32 dim 1 : vector<2x256xf32>, i32 -> vector<2x256xf32>
    %456 = vector.extract_strided_slice %455 {offsets = [0, 0], sizes = [1, 256], strides = [1, 1]} : vector<2x256xf32> to vector<1x256xf32>
    %cst_128 = arith.constant 0.0718804895 : f32
    %457 = vector.broadcast %cst_128 : f32 to vector<1x256xf32>
    %458 = arith.mulf %457, %456 : vector<1x256xf32>
    %459 = vector.extract_strided_slice %455 {offsets = [1, 0], sizes = [1, 256], strides = [1, 1]} : vector<2x256xf32> to vector<1x256xf32>
    %cst_129 = arith.constant 2.346890e-01 : f32
    %460 = vector.broadcast %cst_129 : f32 to vector<1x256xf32>
    %461 = arith.mulf %460, %459 : vector<1x256xf32>
    %462 = arith.addf %458, %461 : vector<1x256xf32>
    %c38 = arith.constant 38 : index
    %c0_130 = arith.constant 0 : index
    %463 = vector.load %arg2[%c38, %c0_130] : memref<49x256xf32, #tpu.memory_space<vmem>>, vector<1x256xf32>
    %464 = arith.mulf %463, %462 : vector<1x256xf32>
    %465 = arith.addf %454, %464 : vector<1x256xf32>
    %c223_i32 = arith.constant 223 : i32
    %466 = tpu.dynamic_rotate %36 by %c223_i32 dim 1 : vector<2x256xf32>, i32 -> vector<2x256xf32>
    %467 = vector.extract_strided_slice %466 {offsets = [0, 0], sizes = [1, 256], strides = [1, 1]} : vector<2x256xf32> to vector<1x256xf32>
    %cst_131 = arith.constant -0.0350360684 : f32
    %468 = vector.broadcast %cst_131 : f32 to vector<1x256xf32>
    %469 = arith.mulf %468, %467 : vector<1x256xf32>
    %470 = vector.extract_strided_slice %466 {offsets = [1, 0], sizes = [1, 256], strides = [1, 1]} : vector<2x256xf32> to vector<1x256xf32>
    %cst_132 = arith.constant 0.0936636924 : f32
    %471 = vector.broadcast %cst_132 : f32 to vector<1x256xf32>
    %472 = arith.mulf %471, %470 : vector<1x256xf32>
    %473 = arith.addf %469, %472 : vector<1x256xf32>
    %c39 = arith.constant 39 : index
    %c0_133 = arith.constant 0 : index
    %474 = vector.load %arg2[%c39, %c0_133] : memref<49x256xf32, #tpu.memory_space<vmem>>, vector<1x256xf32>
    %475 = arith.mulf %474, %473 : vector<1x256xf32>
    %476 = arith.addf %465, %475 : vector<1x256xf32>
    %c222_i32 = arith.constant 222 : i32
    %477 = tpu.dynamic_rotate %36 by %c222_i32 dim 1 : vector<2x256xf32>, i32 -> vector<2x256xf32>
    %478 = vector.extract_strided_slice %477 {offsets = [0, 0], sizes = [1, 256], strides = [1, 1]} : vector<2x256xf32> to vector<1x256xf32>
    %cst_134 = arith.constant -0.0224449839 : f32
    %479 = vector.broadcast %cst_134 : f32 to vector<1x256xf32>
    %480 = arith.mulf %479, %478 : vector<1x256xf32>
    %481 = vector.extract_strided_slice %477 {offsets = [1, 0], sizes = [1, 256], strides = [1, 1]} : vector<2x256xf32> to vector<1x256xf32>
    %cst_135 = arith.constant 0.0935987085 : f32
    %482 = vector.broadcast %cst_135 : f32 to vector<1x256xf32>
    %483 = arith.mulf %482, %481 : vector<1x256xf32>
    %484 = arith.addf %480, %483 : vector<1x256xf32>
    %c40 = arith.constant 40 : index
    %c0_136 = arith.constant 0 : index
    %485 = vector.load %arg2[%c40, %c0_136] : memref<49x256xf32, #tpu.memory_space<vmem>>, vector<1x256xf32>
    %486 = arith.mulf %485, %484 : vector<1x256xf32>
    %487 = arith.addf %476, %486 : vector<1x256xf32>
    %c221_i32 = arith.constant 221 : i32
    %488 = tpu.dynamic_rotate %36 by %c221_i32 dim 1 : vector<2x256xf32>, i32 -> vector<2x256xf32>
    %489 = vector.extract_strided_slice %488 {offsets = [0, 0], sizes = [1, 256], strides = [1, 1]} : vector<2x256xf32> to vector<1x256xf32>
    %cst_137 = arith.constant -0.110643283 : f32
    %490 = vector.broadcast %cst_137 : f32 to vector<1x256xf32>
    %491 = arith.mulf %490, %489 : vector<1x256xf32>
    %492 = vector.extract_strided_slice %488 {offsets = [1, 0], sizes = [1, 256], strides = [1, 1]} : vector<2x256xf32> to vector<1x256xf32>
    %cst_138 = arith.constant 0.134379536 : f32
    %493 = vector.broadcast %cst_138 : f32 to vector<1x256xf32>
    %494 = arith.mulf %493, %492 : vector<1x256xf32>
    %495 = arith.addf %491, %494 : vector<1x256xf32>
    %c41 = arith.constant 41 : index
    %c0_139 = arith.constant 0 : index
    %496 = vector.load %arg2[%c41, %c0_139] : memref<49x256xf32, #tpu.memory_space<vmem>>, vector<1x256xf32>
    %497 = arith.mulf %496, %495 : vector<1x256xf32>
    %498 = arith.addf %487, %497 : vector<1x256xf32>
    %c211_i32 = arith.constant 211 : i32
    %499 = tpu.dynamic_rotate %36 by %c211_i32 dim 1 : vector<2x256xf32>, i32 -> vector<2x256xf32>
    %500 = vector.extract_strided_slice %499 {offsets = [0, 0], sizes = [1, 256], strides = [1, 1]} : vector<2x256xf32> to vector<1x256xf32>
    %cst_140 = arith.constant 0.193406373 : f32
    %501 = vector.broadcast %cst_140 : f32 to vector<1x256xf32>
    %502 = arith.mulf %501, %500 : vector<1x256xf32>
    %503 = vector.extract_strided_slice %499 {offsets = [1, 0], sizes = [1, 256], strides = [1, 1]} : vector<2x256xf32> to vector<1x256xf32>
    %cst_141 = arith.constant -0.0709127188 : f32
    %504 = vector.broadcast %cst_141 : f32 to vector<1x256xf32>
    %505 = arith.mulf %504, %503 : vector<1x256xf32>
    %506 = arith.addf %502, %505 : vector<1x256xf32>
    %c42 = arith.constant 42 : index
    %c0_142 = arith.constant 0 : index
    %507 = vector.load %arg2[%c42, %c0_142] : memref<49x256xf32, #tpu.memory_space<vmem>>, vector<1x256xf32>
    %508 = arith.mulf %507, %506 : vector<1x256xf32>
    %509 = arith.addf %498, %508 : vector<1x256xf32>
    %c210_i32 = arith.constant 210 : i32
    %510 = tpu.dynamic_rotate %36 by %c210_i32 dim 1 : vector<2x256xf32>, i32 -> vector<2x256xf32>
    %511 = vector.extract_strided_slice %510 {offsets = [0, 0], sizes = [1, 256], strides = [1, 1]} : vector<2x256xf32> to vector<1x256xf32>
    %cst_143 = arith.constant 0.0791336596 : f32
    %512 = vector.broadcast %cst_143 : f32 to vector<1x256xf32>
    %513 = arith.mulf %512, %511 : vector<1x256xf32>
    %514 = vector.extract_strided_slice %510 {offsets = [1, 0], sizes = [1, 256], strides = [1, 1]} : vector<2x256xf32> to vector<1x256xf32>
    %cst_144 = arith.constant -0.0483112745 : f32
    %515 = vector.broadcast %cst_144 : f32 to vector<1x256xf32>
    %516 = arith.mulf %515, %514 : vector<1x256xf32>
    %517 = arith.addf %513, %516 : vector<1x256xf32>
    %c43 = arith.constant 43 : index
    %c0_145 = arith.constant 0 : index
    %518 = vector.load %arg2[%c43, %c0_145] : memref<49x256xf32, #tpu.memory_space<vmem>>, vector<1x256xf32>
    %519 = arith.mulf %518, %517 : vector<1x256xf32>
    %520 = arith.addf %509, %519 : vector<1x256xf32>
    %c209_i32 = arith.constant 209 : i32
    %521 = tpu.dynamic_rotate %36 by %c209_i32 dim 1 : vector<2x256xf32>, i32 -> vector<2x256xf32>
    %522 = vector.extract_strided_slice %521 {offsets = [0, 0], sizes = [1, 256], strides = [1, 1]} : vector<2x256xf32> to vector<1x256xf32>
    %cst_146 = arith.constant 0.0798462778 : f32
    %523 = vector.broadcast %cst_146 : f32 to vector<1x256xf32>
    %524 = arith.mulf %523, %522 : vector<1x256xf32>
    %525 = vector.extract_strided_slice %521 {offsets = [1, 0], sizes = [1, 256], strides = [1, 1]} : vector<2x256xf32> to vector<1x256xf32>
    %cst_147 = arith.constant -0.150429592 : f32
    %526 = vector.broadcast %cst_147 : f32 to vector<1x256xf32>
    %527 = arith.mulf %526, %525 : vector<1x256xf32>
    %528 = arith.addf %524, %527 : vector<1x256xf32>
    %c44 = arith.constant 44 : index
    %c0_148 = arith.constant 0 : index
    %529 = vector.load %arg2[%c44, %c0_148] : memref<49x256xf32, #tpu.memory_space<vmem>>, vector<1x256xf32>
    %530 = arith.mulf %529, %528 : vector<1x256xf32>
    %531 = arith.addf %520, %530 : vector<1x256xf32>
    %c208_i32 = arith.constant 208 : i32
    %532 = tpu.dynamic_rotate %36 by %c208_i32 dim 1 : vector<2x256xf32>, i32 -> vector<2x256xf32>
    %533 = vector.extract_strided_slice %532 {offsets = [0, 0], sizes = [1, 256], strides = [1, 1]} : vector<2x256xf32> to vector<1x256xf32>
    %cst_149 = arith.constant 9.418530e-02 : f32
    %534 = vector.broadcast %cst_149 : f32 to vector<1x256xf32>
    %535 = arith.mulf %534, %533 : vector<1x256xf32>
    %536 = vector.extract_strided_slice %532 {offsets = [1, 0], sizes = [1, 256], strides = [1, 1]} : vector<2x256xf32> to vector<1x256xf32>
    %cst_150 = arith.constant -0.0655851737 : f32
    %537 = vector.broadcast %cst_150 : f32 to vector<1x256xf32>
    %538 = arith.mulf %537, %536 : vector<1x256xf32>
    %539 = arith.addf %535, %538 : vector<1x256xf32>
    %c45 = arith.constant 45 : index
    %c0_151 = arith.constant 0 : index
    %540 = vector.load %arg2[%c45, %c0_151] : memref<49x256xf32, #tpu.memory_space<vmem>>, vector<1x256xf32>
    %541 = arith.mulf %540, %539 : vector<1x256xf32>
    %542 = arith.addf %531, %541 : vector<1x256xf32>
    %c207_i32 = arith.constant 207 : i32
    %543 = tpu.dynamic_rotate %36 by %c207_i32 dim 1 : vector<2x256xf32>, i32 -> vector<2x256xf32>
    %544 = vector.extract_strided_slice %543 {offsets = [0, 0], sizes = [1, 256], strides = [1, 1]} : vector<2x256xf32> to vector<1x256xf32>
    %cst_152 = arith.constant 0.12583223 : f32
    %545 = vector.broadcast %cst_152 : f32 to vector<1x256xf32>
    %546 = arith.mulf %545, %544 : vector<1x256xf32>
    %547 = vector.extract_strided_slice %543 {offsets = [1, 0], sizes = [1, 256], strides = [1, 1]} : vector<2x256xf32> to vector<1x256xf32>
    %cst_153 = arith.constant 0.027642278 : f32
    %548 = vector.broadcast %cst_153 : f32 to vector<1x256xf32>
    %549 = arith.mulf %548, %547 : vector<1x256xf32>
    %550 = arith.addf %546, %549 : vector<1x256xf32>
    %c46 = arith.constant 46 : index
    %c0_154 = arith.constant 0 : index
    %551 = vector.load %arg2[%c46, %c0_154] : memref<49x256xf32, #tpu.memory_space<vmem>>, vector<1x256xf32>
    %552 = arith.mulf %551, %550 : vector<1x256xf32>
    %553 = arith.addf %542, %552 : vector<1x256xf32>
    %c206_i32 = arith.constant 206 : i32
    %554 = tpu.dynamic_rotate %36 by %c206_i32 dim 1 : vector<2x256xf32>, i32 -> vector<2x256xf32>
    %555 = vector.extract_strided_slice %554 {offsets = [0, 0], sizes = [1, 256], strides = [1, 1]} : vector<2x256xf32> to vector<1x256xf32>
    %cst_155 = arith.constant -0.0323118567 : f32
    %556 = vector.broadcast %cst_155 : f32 to vector<1x256xf32>
    %557 = arith.mulf %556, %555 : vector<1x256xf32>
    %558 = vector.extract_strided_slice %554 {offsets = [1, 0], sizes = [1, 256], strides = [1, 1]} : vector<2x256xf32> to vector<1x256xf32>
    %cst_156 = arith.constant -0.00788748264 : f32
    %559 = vector.broadcast %cst_156 : f32 to vector<1x256xf32>
    %560 = arith.mulf %559, %558 : vector<1x256xf32>
    %561 = arith.addf %557, %560 : vector<1x256xf32>
    %c47 = arith.constant 47 : index
    %c0_157 = arith.constant 0 : index
    %562 = vector.load %arg2[%c47, %c0_157] : memref<49x256xf32, #tpu.memory_space<vmem>>, vector<1x256xf32>
    %563 = arith.mulf %562, %561 : vector<1x256xf32>
    %564 = arith.addf %553, %563 : vector<1x256xf32>
    %c205_i32 = arith.constant 205 : i32
    %565 = tpu.dynamic_rotate %36 by %c205_i32 dim 1 : vector<2x256xf32>, i32 -> vector<2x256xf32>
    %566 = vector.extract_strided_slice %565 {offsets = [0, 0], sizes = [1, 256], strides = [1, 1]} : vector<2x256xf32> to vector<1x256xf32>
    %cst_158 = arith.constant -0.0571977757 : f32
    %567 = vector.broadcast %cst_158 : f32 to vector<1x256xf32>
    %568 = arith.mulf %567, %566 : vector<1x256xf32>
    %569 = vector.extract_strided_slice %565 {offsets = [1, 0], sizes = [1, 256], strides = [1, 1]} : vector<2x256xf32> to vector<1x256xf32>
    %cst_159 = arith.constant -0.146958455 : f32
    %570 = vector.broadcast %cst_159 : f32 to vector<1x256xf32>
    %571 = arith.mulf %570, %569 : vector<1x256xf32>
    %572 = arith.addf %568, %571 : vector<1x256xf32>
    %c48 = arith.constant 48 : index
    %c0_160 = arith.constant 0 : index
    %573 = vector.load %arg2[%c48, %c0_160] : memref<49x256xf32, #tpu.memory_space<vmem>>, vector<1x256xf32>
    %574 = arith.mulf %573, %572 : vector<1x256xf32>
    %575 = arith.addf %564, %574 : vector<1x256xf32>
    %cst_161 = arith.constant 0.000000e+00 : f32
    %576 = vector.broadcast %cst_161 : f32 to vector<1x256xf32>
    %577 = arith.subf %576, %575 : vector<1x256xf32>
    %578 = math.exp %577 : vector<1x256xf32>
    %cst_162 = arith.constant 1.000000e+00 : f32
    %579 = vector.broadcast %cst_162 : f32 to vector<1x256xf32>
    %580 = arith.addf %579, %578 : vector<1x256xf32>
    %581 = tpu.reciprocal %580 {approx = true} : vector<1x256xf32> -> vector<1x256xf32>
    %582 = vector.shape_cast %27 : vector<1x16x256xf32> to vector<16x256xf32>
    %583 = vector.broadcast %581 : vector<1x256xf32> to vector<16x256xf32>
    %584 = arith.mulf %582, %583 : vector<16x256xf32>
    %c0_163 = arith.constant 0 : index
    %c0_164 = arith.constant 0 : index
    %c0_165 = arith.constant 0 : index
    %585 = vector.load %arg3[%c0_163, %c0_164, %c0_165] : memref<1x16x256xf32, #tpu.memory_space<vmem>>, vector<1x16x256xf32>
    %586 = vector.shape_cast %585 : vector<1x16x256xf32> to vector<16x256xf32>
    %587 = vector.shape_cast %584 : vector<16x256xf32> to vector<1x16x256xf32>
    tpu.vector_store %arg3[%c0_163, %c0_164, %c0_165], %587 {strides = array<i32>} : memref<1x16x256xf32, #tpu.memory_space<vmem>>, vector<1x16x256xf32>,
    return
  }
  func.func @transform_0(%arg0: i32) -> (i32, i32, i32) {
    %c0_i32 = arith.constant 0 : i32
    %c0_i32_0 = arith.constant 0 : i32
    %c0_i32_1 = arith.constant 0 : i32
    return %arg0, %c0_i32, %c0_i32_0 : i32, i32, i32
  }
  func.func @transform_1(%arg0: i32) -> (i32, i32) {
    %c0_i32 = arith.constant 0 : i32
    %c0_i32_0 = arith.constant 0 : i32
    %c0_i32_1 = arith.constant 0 : i32
    return %c0_i32, %c0_i32_0 : i32, i32
  }
  func.func @transform_2(%arg0: i32) -> (i32, i32, i32) {
    %c0_i32 = arith.constant 0 : i32
    %c0_i32_0 = arith.constant 0 : i32
    %c0_i32_1 = arith.constant 0 : i32
    return %arg0, %c0_i32, %c0_i32_0 : i32, i32, i32
  }
}

</mosaic_0001>

<bundles_post_ra>
// kernel: tpu_custom_call.1
= control target key start
LH: loop header
LB: loop body
LE: loop exit
PB: predicated region body
PF: predicated region fallthrough
CT: control target
= control target key end

     0   :  { %7 = vsyncpa [#allocation3], 0  ;;  %s3672_s0 = inlined_call_operand.hbm [shape: f32[2,16,256], index: 0, kind: input, shape index: {}]   ;;  %s3673_s1 = inlined_call_operand.hbm [shape: f32[49,256], index: 1, kind: input, shape index: {}]   ;;  %s3674_s2 = inlined_call_operand.hbm [shape: f32[2,16,256], index: 2, kind: output, shape index: {}]  }
   0x1   :  { %9 = vsyncpa [#allocation3 + $0x1], 0 }
   0x2   :  { %10 = vsyncpa [#allocation6], 0 }
   0x3   :  { %11 = vsyncpa [#allocation4], 0 }
   0x4   :  { %13 = vsyncpa [#allocation4 + $0x1], 0  ;;  %s2771_s9 = smov 0   ;;  %s2773_s10 = smov 0  }
   0x5   :  { %s2775_s11 = smov 0   ;;  %s2777_s12 = smov 0  }
   0x6 LB: > { %s2792_s13 = sadd.s32 4294967295, %s2698_s12   ;;  %s2426_s14 = sadd.s32 4294967294, %s2698_s12   ;;  %s2698_s12 = sphi %s2777_s12, %s3694_s12   ;;  %s2694_s11 = sphi %s2775_s11, %s3693_s11   ;;  %s2690_s10 = sphi %s2773_s10, %s3692_s10   ;;  %s2686_s9 = sphi %s2771_s9, %s3691_s9  }
   0x7   : > { %p39_p0 = scmp.ne.s32.totalorder %s2690_s10, %s2686_s9  ;;  %p3675_p1 = scmp.eq.s32.totalorder %s2792_s13, 0 }
   0x8   : > { %p90_p3 = scmp.eq.s32.totalorder %s2426_s14, 1  ;;  %p2427_p5 = scmp.ge.s32.totalorder %s2698_s12, 1 }
   0x9   : > { %p2801_p4 = por %p3675_p1, %p39_p0  ;;  %p97_p7 = scmp.lt.s32.totalorder %s2698_s12, 3 }
   0xa   : > { %p2806_p6 = por %p90_p3, %p39_p0  ;;  %s2700_s18 = smov [#allocation5]  }
   0xb   : > { %s3678_s15 = scalar_select %p2801_p4, 1, 0 }
   0xc   : > { %s3679_s16 = scalar_select %p2806_p6, 1, 0 }
   0xd   : > { %p2811_p8 = pnand %p2427_p5, %p97_p7  ;;  %s109_s19 = sshll.u32 %s2700_s18, 4  ;;  %s2815_s19 = int_to_ptr.vmem [resolvable:$true] %s109_s19 }
   0xe   : > { %s2827_s21 = sadd.s32 1, %s2698_s12   ;;  %s26_s22 = sadd.s32 1, %s2694_s11 }
   0xf   : > { %s3680_s17 = scalar_select %p2811_p8, 1, 0 }
  0x10   : > { %p2454_p9 = pneg %p2811_p8  ;;  %s23_s23 = ssub.s32 %s2698_s12, %s2827_s21 }
  0x11   : > { %s2570_s26 = scalar_lea.hbm %s3673_s1, 1792 }
  0x12   : > { %p2822_p11 = pnand %p2454_p9, %p3675_p1  ;;  %p2571_p12 = scmp.ne.s32.totalorder %s3673_s1, %s2570_s26 }
  0x13   : > { %p2577_p5 = scmp.lt.u32.totalorder %s2570_s26, %s3673_s1 }
  0x14   : > { %p2572_p13 = pneg %p2822_p11 }
  0x16   : > { %p2573_p0 = pnand %p2572_p13, %p2571_p12 }
  0x18   : > { %p2574_p3 = pneg %p2573_p0 }
  0x1a   : > { %p2579_p7 = pnand %p2577_p5, %p2574_p3 }
  0x1c   : > { %2582 = shalt.err (!%p2579_p7)
}
  0x1d   : > { %s2583_s3 = scalar_lea.vmem %s2815_s19, 1792  ;;  %p2591_p2 = scmp.lt.s32.totalorder %s2815_s19, %s2815_s19 }
  0x1e   : > { %p2584_p9 = scmp.ne.s32.totalorder %s2815_s19, %s2583_s3  ;;  %p2592_p6 = scmp.lt.s32.totalorder %s2583_s3, %s2583_s3 }
  0x20   : > { %p2586_p10 = pnand %p2584_p9, %p2572_p13  ;;  %p2593_p4 = por %p2592_p6, %p2591_p2 }
  0x22   : > { %p2587_p1 = pneg %p2586_p10 }
  0x24   : > { %p2594_p8 = pnand %p2593_p4, %p2587_p1 }
  0x26   : > { %2597 = shalt.err (!%p2594_p8)
}
  0x27   : > { %s2701_s4 = smov 256   ;;  %s2702_s5 = smov 16  }
  0x28   : > { %2457 = dma.hbm_to_vmem [thread:$0]  (!%p2822_p11), %s3673_s1, 1792, %s2815_s19, [#allocation6], %s2701_s4, %s2701_s4, %s2702_s5  }
  0x29   : > { %p24_p1 = scmp.eq.s32.totalorder %s23_s23, 0  ;;  %p33_p2 = scmp.ne.s32.totalorder %s2694_s11, %s2690_s10 }
  0x2a   : > { %p34_p4 = scmp.eq.s32.totalorder %s2698_s12, 0  ;;  %p2467_p6 = scmp.lt.s32.totalorder %s2698_s12, 2 }
  0x2b   : > { %s2861_s8 = scalar_select %p24_p1, %s2694_s11, %s26_s22  }
  0x2c   : > { %p35_p8 = por %p34_p4, %p33_p2  ;;  %p3682_p10 = scmp.eq.s32.totalorder %s2792_s13, 1 }
  0x2d   : > { %s123_s18 = sand.u32 1, %s2694_s11   ;;  %s2444_s20 = sshll.u32 %s2698_s12, 9 }
  0x2e   : > { %p2865_p12 = por %p3682_p10, %p33_p2  ;;  %s2430_s24 = sshll.u32 %s123_s18, 5 }
  0x2f   : > { %s2874_s27 = scalar_lea.hbm %s3672_s0, %s2444_s20  ;;  %s127_s19 = scalar_lea.vmem [#allocation2], %s2430_s24 }
  0x30   : > { %s134_s22 = sshll.u32 %s127_s19, 4  ;;  %p2876_p11 = pnand %p2467_p6, %p35_p8  ;;  %s2880_s22 = int_to_ptr.vmem [resolvable:$true] %s134_s22 }
  0x31   : > { %s2882_s28 = scalar_lea.sflag [#allocation3], %s123_s18  ;;  %s2598_s29 = scalar_lea.hbm %s2874_s27, 512 }
  0x32   : > { %p2599_p13 = scmp.ne.s32.totalorder %s2874_s27, %s2598_s29  ;;  %p2600_p0 = pneg %p2876_p11 }
  0x33   : > { %s2603_s6 = scalar_lea.hbm %s3672_s0, 1024  ;;  %p2604_p7 = scmp.lt.u32.totalorder %s2874_s27, %s3672_s0 }
  0x34   : > { %p2601_p3 = pnand %p2600_p0, %p2599_p13  ;;  %p2605_p9 = scmp.lt.u32.totalorder %s2603_s6, %s2598_s29 }
  0x35   : > { %p2607_p2 = scmp.lt.u32.totalorder %s2598_s29, %s2874_s27 }
  0x36   : > { %p2602_p5 = pneg %p2601_p3  ;;  %p2606_p1 = por %p2605_p9, %p2604_p7 }
  0x38   : > { %p2608_p4 = por %p2607_p2, %p2606_p1 }
  0x3a   : > { %p2609_p6 = pnand %p2608_p4, %p2602_p5 }
  0x3c   : > { %2612 = shalt.err (!%p2609_p6)
}
  0x3d   : > { %s2613_s18 = scalar_lea.vmem %s2880_s22, 512  ;;  %s2703_s24 = smov [#allocation2]  }
  0x3e   : > { %p2614_p8 = scmp.ne.s32.totalorder %s2880_s22, %s2613_s18  ;;  %s2618_s25 = sshll.u32 %s2703_s24, 4  ;;  %s2619_s25 = int_to_ptr.vmem [resolvable:$false] %s2618_s25 }
  0x3f   : > { %s2620_s26 = scalar_lea.vmem %s2619_s25, 1024  ;;  %p2621_p3 = scmp.lt.s32.totalorder %s2880_s22, %s2619_s25 }
  0x40   : > { %p2616_p10 = pnand %p2614_p8, %p2600_p0  ;;  %p2622_p7 = scmp.lt.s32.totalorder %s2620_s26, %s2613_s18 }
  0x42   : > { %p2617_p13 = pneg %p2616_p10  ;;  %p2623_p9 = por %p2622_p7, %p2621_p3 }
  0x44   : > { %p2624_p1 = pnand %p2623_p9, %p2617_p13 }
  0x46   : > { %2627 = shalt.err (!%p2624_p1)
}
  0x47   : > { %2461 = dma.hbm_to_vmem [thread:$0]  (!%p2876_p11), %s2874_s27, 512, %s2880_s22, %s2882_s28, %s2701_s4, %s2701_s4, %s2702_s5  }
  0x48   : > { %p3685_p0 = scmp.ne.s32.totalorder %s3680_s17, 0 }
  0x49   : > { %s2916_s19 = sand.u32 (!%p3685_p0), 1, %s2690_s10   ;;  %p3686_p5 = scmp.ne.s32.totalorder (!%p3685_p0), %s3678_s15, 0 }
  0x4a   : > { %146 = sbr.rel (%p3685_p0) target bundleno = 804 (0x324), region = 28  ;;  %s2434_s29 = sshll.u32 (!%p3685_p0), %s2916_s19, 5 }
  0x4b   : > { %s149_s30 = scalar_lea.sflag (!%p3685_p0), [#allocation3], %s2916_s19  ;;  %s152_s23 = scalar_lea.vmem (!%p3685_p0), [#allocation2], %s2434_s29 }
  0x51   : > { %2673 = dma.done.wait (%p3686_p5), %s149_s30, 512  }
  0x52   : > { %2675 = vsyncadd (%p3686_p5), %s149_s30, 4294966784  ;;  %p3687_p11 = scmp.eq.s32.totalorder %s2792_s13, 0 }
  0x54   : > { %2677 = dma.done.wait (%p3687_p11), [#allocation6], 1792   ;;  %p3688_p2 = pmov %p3687_p11 }
  0x55   : > { %v2930_v0 = vld [vmem:[%s152_s23] sm:$0xff]  ;;  %v2932_v1 = vld [vmem:[%s152_s23 + $0x8] sm:$0xff]  ;;  %v2934_v2 = vld [vmem:[%s152_s23 + $0x10] sm:$0xff]  ;;  %v2704_v8 = vmov 0   ;;  %vm200_vm0 = vcmask 1040384   ;;  %vm217_vm1 = vcmask 1046528  }
  0x56   : > { %2679 = vsyncadd (%p3688_p2), [#allocation6], 4294965504  ;;  %v181_v3 = vadd.f32 %v2932_v1, %v2930_v0  ;;  %v190_v4 = vmax.f32 %v2930_v0, %v2932_v1  ;;  %v2940_v5 = vld [vmem:[%s152_s23 + $0x18] sm:$0xff]  ;;  %2557 = vset.pattern.permute.xlu1 %v2704_v8  ;;  %2556 = vset.pattern.permute.xlu0 %v2704_v8  ;;  %vm233_vm2 = vcmask 1045504   ;;  %s2705_s15 = smov 48   ;;  %s2706_s17 = smov 51  }
  0x57   : > { %v184_v6 = vadd.f32 %v2940_v5, %v2934_v2  ;;  %v193_v7 = vmax.f32 %v2934_v2, %v2940_v5  ;;  %s2707_s4 = smov 47   ;;  %s2708_s5 = smov 46  }
  0x58   : > { %182 = vadd.xlane.f32.xlu0 %v181_v3  ;;  %191 = vmax.xlane.f32.xlu1 %v190_v4  ;;  %s2709_s27 = smov 50   ;;  %s2710_s22 = smov 45  }
  0x59   : > { %s2711_s28 = smov 35   ;;  %s2712_s3 = smov 49  }
  0x5a   : > { %s2713_s6 = smov 34   ;;  %s2714_s7 = smov 33  }
  0x5b   : > { %s2715_s20 = smov 32   ;;  %s2716_s18 = smov 31  }
  0x5c   : > { %185 = vadd.xlane.f32.xlu0 %v184_v6  ;;  %194 = vmax.xlane.f32.xlu1 %v193_v7  ;;  %s2717_s24 = smov 30   ;;  %s2718_s25 = smov 29  }
  0x5d   : > { %s2719_s26 = smov 19   ;;  %s2720_s30 = smov 18  }
  0x5e   : > { %s2721_s23 = smov 17  }
  0xe5   : > { %v183_v9 = vpop.xlane.xlu0 %182  ;;  %v192_v10 = vpop.xlane.xlu1 %191 }
  0xe6   : > { %v188_v11 = vmul.f32 0.00390625, %v183_v9 }
  0xe8   : > { %v196_v12 = vadd.f32 %v192_v10, %v188_v11 }
  0xe9   : > { %v186_v13 = vpop.xlane.xlu0 %185  ;;  %v195_v14 = vpop.xlane.xlu1 %194 }
  0xea   : > { %v201_v15 = vrot.slane %v196_v12, 7  ;;  %v189_v16 = vmul.f32 0.00390625, %v186_v13 }
  0xec   : > { %v207_v17 = vsel %vm200_vm0, 0.0, %v201_v15  ;;  %v197_v18 = vadd.f32 %v195_v14, %v189_v16 }
  0xed   : > { %v211_v20 = vmul.f32 -1.0178403, %v207_v17  ;;  %v227_v23 = vmul.f32 0.10277212, %v207_v17  ;;  %v209_v31 = vmul.f32 -1.2212279, %v207_v17 }
  0xee   : > { %v202_v19 = vrot.slane %v197_v18, 7 }
  0xef   : > { %v218_v28 = vrot.slane %v211_v20, 1  ;;  %v234_v35 = vrot.slane %v227_v23, 2 }
  0xf0   : > { %v203_v21 = vsel %vm200_vm0, %v201_v15, %v202_v19  ;;  %v208_v22 = vsel %vm200_vm0, %v202_v19, 0.0 }
  0xf1   : > { %v212_v24 = vmul.f32 -1.0178403, %v203_v21  ;;  %v213_v25 = vmul.f32 -1.0178403, %v208_v22  ;;  %v228_v26 = vmul.f32 0.10277212, %v203_v21 }
  0xf2   : > { %v229_v27 = vmul.f32 0.10277212, %v208_v22  ;;  %v210_v32 = vmul.f32 -1.2212279, %v203_v21 }
  0xf3   : > { %v219_v29 = vrot.slane %v212_v24, 1  ;;  %v221_v30 = vrot.slane %v213_v25, 1  ;;  %v235_v33 = vrot.slane %v228_v26, 2  ;;  %v306_v26 = vlaneseq }
  0xf4   : > { %v237_v34 = vrot.slane %v229_v27, 2 }
  0xf5   : > { %v220_v36 = vsel %vm217_vm1, %v218_v28, %v219_v29  ;;  %v222_v37 = vsel %vm217_vm1, %v219_v29, %v221_v30  ;;  %v236_v40 = vsel %vm233_vm2, %v234_v35, %v235_v33  ;;  %v3039_v27 = vand.u32 127, %v306_v26 }
  0xf6   : > { %v225_v38 = vadd.f32 %v220_v36, %v209_v31  ;;  %v226_v39 = vadd.f32 %v222_v37, %v210_v32  ;;  %v238_v41 = vsel %vm233_vm2, %v235_v33, %v237_v34 }
  0xf7   : > { %vm308_vm3 = vcmp.lt.s32.totalorder %v3039_v27, 51  ;;  %vm348_vm4 = vcmp.lt.s32.totalorder %v3039_v27, 50  ;;  %vm389_vm5 = vcmp.lt.s32.totalorder %v3039_v27, 49  ;;  %vm430_vm6 = vcmp.lt.s32.totalorder %v3039_v27, 48 }
  0xf8   : > { %v241_v42 = vadd.f32 %v236_v40, %v225_v38  ;;  %v242_v43 = vadd.f32 %v238_v41, %v226_v39  ;;  %vm471_vm7 = vcmp.lt.s32.totalorder %v3039_v27, 47  ;;  %vm512_vm8 = vcmp.lt.s32.totalorder %v3039_v27, 46 }
  0xf9   : > { %vm553_vm9 = vcmp.lt.s32.totalorder %v3039_v27, 45  ;;  %vm594_vm10 = vcmp.lt.s32.totalorder %v3039_v27, 35  ;;  %vm635_vm11 = vcmp.lt.s32.totalorder %v3039_v27, 34  ;;  %vm676_vm12 = vcmp.lt.s32.totalorder %v3039_v27, 33 }
  0xfa   : > { %v2437_v44 = vmul.f32 -1.442695, %v241_v42  ;;  %v2438_v45 = vmul.f32 -1.442695, %v242_v43  ;;  %v2740_v42 = vmov 1966171168  }
  0xfb   : > { %v328_v43 = vunpack.c.l.s4 %v2740_v42  ;;  %vm717_vm13 = vcmp.lt.s32.totalorder %v3039_v27, 32  ;;  %vm758_vm14 = vcmp.lt.s32.totalorder %v3039_v27, 31  ;;  %vm799_vm15 = vcmp.lt.s32.totalorder %v3039_v27, 30 }
  0xfc   : > { %2558 = vpow2.f32 %v2437_v44  ;;  %vm881_vm1 = vcmp.lt.s32.totalorder %v3039_v27, 19  ;;  %vm922_vm2 = vcmp.lt.s32.totalorder %v3039_v27, 18 }
  0xfd   : > { %2560 = vpow2.f32 %v2438_v45 }
 0x106   : > { %v2559_v46 = vpop.eup %2558 }
 0x107   : > { %v2561_v47 = vpop.eup %2560  ;;  %v249_v48 = vadd.f32 1.0, %v2559_v46 }
 0x108   : > { %v250_v49 = vadd.f32 1.0, %v2561_v47 }
 0x109   : > { %2562 = vrcp.f32 %v249_v48 }
 0x10a   : > { %2564 = vrcp.f32 %v250_v49 }
 0x113   : > { %v2563_v50 = vpop.eup %2562 }
 0x114   : > { %v2565_v51 = vpop.eup %2564  ;;  %257 = vperm.xlu0 %2556, %v2563_v50  }
 0x115   : > { %262 = vperm.xlu1 %2557, %v2565_v51  }
 0x193   : > { %v258_v52 = vpop.permute.xlu0 %257 }
 0x194   : > { %v2950_v53 = vmul.f32 %v258_v52, %v2930_v0  ;;  %v2953_v54 = vmul.f32 %v258_v52, %v2932_v1  ;;  %v263_v55 = vpop.permute.xlu1 %262 }
 0x195   : > { %v2956_v56 = vmul.f32 %v263_v55, %v2934_v2  ;;  %v2959_v57 = vmul.f32 %v263_v55, %v2940_v5 }
 0x197   : > { %v269_v58 = vadd.f32 %v2956_v56, %v2950_v53  ;;  %v276_v59 = vadd.f32 %v2959_v57, %v2953_v54  ;;  %v286_v60 = vmax.f32 %v2950_v53, %v2956_v56  ;;  %v293_v61 = vmax.f32 %v2953_v54, %v2959_v57 }
 0x199   : > { %v270_v62 = vrot.slane %v269_v58, 4  ;;  %v277_v63 = vrot.slane %v276_v59, 4  ;;  %v287_v0 = vrot.slane %v286_v60, 4  ;;  %v294_v1 = vrot.slane %v293_v61, 4 }
 0x19b   : > { %v271_v2 = vadd.f32 %v270_v62, %v269_v58  ;;  %v278_v3 = vadd.f32 %v277_v63, %v276_v59  ;;  %v288_v4 = vmax.f32 %v286_v60, %v287_v0  ;;  %v295_v5 = vmax.f32 %v293_v61, %v294_v1 }
 0x19c   : > { %v329_v60 = vunpack.c.0.s8 %v328_v43  ;;  %v3067_v61 = vshrl.u32 %v306_v26, 7  ;;  %v323_v43 = vld [vmem:[#allocation5] ss:$8 sm:$0x3] }
 0x19d   : > { %v272_v6 = vrot.slane %v271_v2, 2  ;;  %v279_v7 = vrot.slane %v278_v3, 2  ;;  %v289_v8 = vrot.slane %v288_v4, 2  ;;  %v296_v9 = vrot.slane %v295_v5, 2 }
 0x19f   : > { %v273_v10 = vadd.f32 %v272_v6, %v271_v2  ;;  %v280_v11 = vadd.f32 %v279_v7, %v278_v3  ;;  %v290_v12 = vmax.f32 %v288_v4, %v289_v8  ;;  %v297_v13 = vmax.f32 %v295_v5, %v296_v9 }
 0x1a0   : > { %v3077_v5 = vsub.s32 %v329_v60, %v3067_v61 }
 0x1a1   : > { %v274_v14 = vrot.slane %v273_v10, 1  ;;  %v281_v15 = vrot.slane %v280_v11, 1  ;;  %v291_v16 = vrot.slane %v290_v12, 1  ;;  %v298_v17 = vrot.slane %v297_v13, 1 }
 0x1a3   : > { %v275_v18 = vadd.f32 %v274_v14, %v273_v10  ;;  %v282_v19 = vadd.f32 %v281_v15, %v280_v11  ;;  %v292_v22 = vmax.f32 %v290_v12, %v291_v16  ;;  %v299_v23 = vmax.f32 %v297_v13, %v298_v17 }
 0x1a5   : > { %v284_v20 = vmul.f32 0.0625, %v275_v18  ;;  %v285_v21 = vmul.f32 0.0625, %v282_v19 }
 0x1a7   : > { %v2970_v24 = vsel %vm200_vm0, %v284_v20, %v292_v22  ;;  %v2973_v25 = vsel %vm200_vm0, %v285_v21, %v299_v23  ;;  %vm840_vm0 = vcmp.lt.s32.totalorder %v3039_v27, 29 }
 0x1a8   : > { %428 = vrot.lane.b32.xlu0 %v2973_v25, %s2705_s15  ;;  %302 = vrot.lane.b32.xlu1 %v2970_v24, %s2706_s17  ;;  %v3085_v10 = vmul.f32 -0.016535623, %v2973_v25  ;;  %v3089_v13 = vmul.f32 0.045316942, %v2973_v25  ;;  %v3095_v19 = vmul.f32 -0.016535623, %v2970_v24 }
 0x1ac   : > { %469 = vrot.lane.b32.xlu0 %v2973_v25, %s2707_s4  ;;  %304 = vrot.lane.b32.xlu1 %v2973_v25, %s2706_s17  ;;  %s2723_s17 = smov 15  }
 0x1b0   : > { %510 = vrot.lane.b32.xlu0 %v2973_v25, %s2708_s5  ;;  %344 = vrot.lane.b32.xlu1 %v2970_v24, %s2709_s27 }
 0x1b4   : > { %551 = vrot.lane.b32.xlu0 %v2973_v25, %s2710_s22  ;;  %346 = vrot.lane.b32.xlu1 %v2973_v25, %s2709_s27  ;;  %s2726_s27 = smov 3  }
 0x1b8   : > { %592 = vrot.lane.b32.xlu0 %v2973_v25, %s2711_s28  ;;  %385 = vrot.lane.b32.xlu1 %v2970_v24, %s2712_s3 }
 0x1bc   : > { %633 = vrot.lane.b32.xlu0 %v2973_v25, %s2713_s6  ;;  %387 = vrot.lane.b32.xlu1 %v2973_v25, %s2712_s3  ;;  %s2729_s3 = smov 127  }
 0x1c0   : > { %674 = vrot.lane.b32.xlu0 %v2973_v25, %s2714_s7  ;;  %426 = vrot.lane.b32.xlu1 %v2970_v24, %s2705_s15  ;;  %s2722_s15 = smov 16  }
 0x1c4   : > { %715 = vrot.lane.b32.xlu0 %v2973_v25, %s2715_s20  ;;  %467 = vrot.lane.b32.xlu1 %v2970_v24, %s2707_s4  ;;  %s2724_s4 = smov 14  }
 0x1c8   : > { %756 = vrot.lane.b32.xlu0 %v2973_v25, %s2716_s18  ;;  %508 = vrot.lane.b32.xlu1 %v2970_v24, %s2708_s5  ;;  %s2725_s5 = smov 13  }
 0x1cc   : > { %797 = vrot.lane.b32.xlu0 %v2973_v25, %s2717_s24  ;;  %549 = vrot.lane.b32.xlu1 %v2970_v24, %s2710_s22  ;;  %s2727_s22 = smov 2  }
 0x1d0   : > { %838 = vrot.lane.b32.xlu0 %v2973_v25, %s2718_s25  ;;  %590 = vrot.lane.b32.xlu1 %v2970_v24, %s2711_s28  ;;  %s2728_s28 = smov 1  }
 0x1d4   : > { %879 = vrot.lane.b32.xlu0 %v2973_v25, %s2719_s26  ;;  %631 = vrot.lane.b32.xlu1 %v2970_v24, %s2713_s6  ;;  %s2730_s6 = smov 126  }
 0x1d8   : > { %920 = vrot.lane.b32.xlu0 %v2973_v25, %s2720_s30  ;;  %672 = vrot.lane.b32.xlu1 %v2970_v24, %s2714_s7  ;;  %s2731_s7 = smov 125  }
 0x1dc   : > { %961 = vrot.lane.b32.xlu0 %v2973_v25, %s2721_s23  ;;  %713 = vrot.lane.b32.xlu1 %v2970_v24, %s2715_s20  ;;  %s2732_s20 = smov 115  }
 0x1e0   : > { %1002 = vrot.lane.b32.xlu0 %v2973_v25, %s2722_s15  ;;  %754 = vrot.lane.b32.xlu1 %v2970_v24, %s2716_s18  ;;  %s2733_s18 = smov 114  }
 0x1e4   : > { %1043 = vrot.lane.b32.xlu0 %v2973_v25, %s2723_s17  ;;  %795 = vrot.lane.b32.xlu1 %v2970_v24, %s2717_s24  ;;  %s2734_s24 = smov 113  }
 0x1e8   : > { %1084 = vrot.lane.b32.xlu0 %v2973_v25, %s2724_s4  ;;  %836 = vrot.lane.b32.xlu1 %v2970_v24, %s2718_s25  ;;  %s2735_s25 = smov 112  }
 0x1ec   : > { %1125 = vrot.lane.b32.xlu0 %v2973_v25, %s2725_s5  ;;  %877 = vrot.lane.b32.xlu1 %v2970_v24, %s2719_s26  ;;  %s2736_s26 = smov 111  }
 0x1f0   : > { %1166 = vrot.lane.b32.xlu0 %v2973_v25, %s2726_s27  ;;  %918 = vrot.lane.b32.xlu1 %v2970_v24, %s2720_s30  ;;  %s2737_s30 = smov 110  }
 0x1f4   : > { %1207 = vrot.lane.b32.xlu0 %v2973_v25, %s2727_s22  ;;  %959 = vrot.lane.b32.xlu1 %v2970_v24, %s2721_s23  ;;  %s2738_s23 = smov 109  }
 0x1f8   : > { %1248 = vrot.lane.b32.xlu0 %v2973_v25, %s2728_s28  ;;  %1000 = vrot.lane.b32.xlu1 %v2970_v24, %s2722_s15 }
 0x1fc   : > { %1323 = vrot.lane.b32.xlu0 %v2973_v25, %s2729_s3  ;;  %1041 = vrot.lane.b32.xlu1 %v2970_v24, %s2723_s17  ;;  %s2739_s17 = smov 99  }
 0x200   : > { %1364 = vrot.lane.b32.xlu0 %v2973_v25, %s2730_s6  ;;  %1082 = vrot.lane.b32.xlu1 %v2970_v24, %s2724_s4  ;;  %s2741_s4 = smov 98  }
 0x204   : > { %1405 = vrot.lane.b32.xlu0 %v2973_v25, %s2731_s7  ;;  %1123 = vrot.lane.b32.xlu1 %v2970_v24, %s2725_s5  ;;  %s2742_s5 = smov 97  }
 0x208   : > { %1446 = vrot.lane.b32.xlu0 %v2973_v25, %s2732_s20  ;;  %1164 = vrot.lane.b32.xlu1 %v2970_v24, %s2726_s27  ;;  %s2743_s27 = smov 96  }
 0x20c   : > { %1487 = vrot.lane.b32.xlu0 %v2973_v25, %s2733_s18  ;;  %1205 = vrot.lane.b32.xlu1 %v2970_v24, %s2727_s22  ;;  %s2744_s22 = smov 95  }
 0x210   : > { %1528 = vrot.lane.b32.xlu0 %v2973_v25, %s2734_s24  ;;  %1246 = vrot.lane.b32.xlu1 %v2970_v24, %s2728_s28  ;;  %s2745_s28 = smov 94  }
 0x214   : > { %1569 = vrot.lane.b32.xlu0 %v2973_v25, %s2735_s25  ;;  %1321 = vrot.lane.b32.xlu1 %v2970_v24, %s2729_s3  ;;  %s2746_s3 = smov 93  }
 0x218   : > { %1610 = vrot.lane.b32.xlu0 %v2973_v25, %s2736_s26  ;;  %1362 = vrot.lane.b32.xlu1 %v2970_v24, %s2730_s6  ;;  %s2747_s6 = smov 83  }
 0x21a   : > { %v3041_v28 = vpop.permute.xlu0 %428  ;;  %v303_v29 = vpop.permute.xlu1 %302 }
 0x21c   : > { %1651 = vrot.lane.b32.xlu0 %v2973_v25, %s2737_s30  ;;  %1403 = vrot.lane.b32.xlu1 %v2970_v24, %s2731_s7  ;;  %s2748_s7 = smov 82  }
 0x21e   : > { %v3047_v30 = vpop.permute.xlu0 %469  ;;  %v305_v31 = vpop.permute.xlu1 %304 }
 0x21f   : > { %v309_v32 = vsel %vm308_vm3, %v303_v29, %v305_v31  ;;  %v310_v33 = vsel %vm308_vm3, %v305_v31, %v303_v29  ;;  %v3105_v31 = vmul.f32 0.045316942, %v2970_v24  ;;  %vm963_vm3 = vcmp.lt.s32.totalorder %v3039_v27, 17 }
 0x220   : > { %1692 = vrot.lane.b32.xlu0 %v2973_v25, %s2738_s23  ;;  %1444 = vrot.lane.b32.xlu1 %v2970_v24, %s2732_s20  ;;  %v313_v34 = vmul.f32 0.015727779, %v310_v33  ;;  %v314_v35 = vmul.f32 0.015727779, %v309_v32  ;;  %v311_v46 = vmul.f32 0.1295636, %v310_v33 }
 0x221   : > { %v312_v47 = vmul.f32 0.1295636, %v309_v32  ;;  %s2749_s20 = smov 81  }
 0x222   : > { %v3052_v36 = vpop.permute.xlu0 %510  ;;  %v345_v37 = vpop.permute.xlu1 %344  ;;  %v317_v38 = vrot.slane %v313_v34, 1  ;;  %v318_v39 = vrot.slane %v314_v35, 1 }
 0x224   : > { %1733 = vrot.lane.b32.xlu0 %v2973_v25, %s2739_s17  ;;  %1485 = vrot.lane.b32.xlu1 %v2970_v24, %s2733_s18  ;;  %v321_v50 = vadd.f32 %v317_v38, %v311_v46  ;;  %v322_v51 = vadd.f32 %v318_v39, %v312_v47  ;;  %s2750_s18 = smov 80  }
 0x226   : > { %v3059_v40 = vpop.permute.xlu0 %551  ;;  %v347_v41 = vpop.permute.xlu1 %346  ;;  %v326_v2 = vcombine.low %v321_v50, %v322_v51 }
 0x227   : > { %v349_v44 = vsel %vm348_vm4, %v345_v37, %v347_v41  ;;  %v350_v45 = vsel %vm348_vm4, %v347_v41, %v345_v37  ;;  %v364_v37 = vld [vmem:[#allocation5 + $0x1] ss:$8 sm:$0x3]  ;;  %vm1004_vm4 = vcmp.lt.s32.totalorder %v3039_v27, 16 }
 0x228   : > { %v353_v48 = vmul.f32 -0.03999245, %v350_v45  ;;  %1774 = vrot.lane.b32.xlu0 %v2973_v25, %s2741_s4  ;;  %1526 = vrot.lane.b32.xlu1 %v2970_v24, %s2734_s24  ;;  %v354_v49 = vmul.f32 -0.03999245, %v349_v44  ;;  %v351_v52 = vmul.f32 0.13550106, %v350_v45  ;;  %v333_v14 = vrot.slane %v326_v2, %v3077_v5 }
 0x229   : > { %v352_v62 = vmul.f32 0.13550106, %v349_v44  ;;  %s2751_s24 = smov 79  }
 0x22a   : > { %v357_v55 = vrot.slane %v353_v48, 1  ;;  %v3065_v58 = vpop.permute.xlu0 %592  ;;  %v386_v59 = vpop.permute.xlu1 %385  ;;  %v358_v63 = vrot.slane %v354_v49, 1  ;;  %v340_v35 = vrot.slane %v333_v14, %v3077_v5 }
 0x22c   : > { %v361_v0 = vadd.f32 %v357_v55, %v351_v52  ;;  %1815 = vrot.lane.b32.xlu0 %v2973_v25, %s2742_s5  ;;  %1567 = vrot.lane.b32.xlu1 %v2970_v24, %s2735_s25  ;;  %v362_v1 = vadd.f32 %v358_v63, %v352_v62  ;;  %v405_v52 = vld [vmem:[#allocation5 + $0x2] ss:$8 sm:$0x3]  ;;  %v342_v62 = vmul.f32 %v340_v35, %v323_v43  ;;  %v487_v43 = vld [vmem:[#allocation5 + $0x4] ss:$8 sm:$0x3] }
 0x22d   : > { %s2752_s25 = smov 78  }
 0x22e   : > { %v3074_v3 = vpop.permute.xlu0 %633  ;;  %v388_v4 = vpop.permute.xlu1 %387  ;;  %v367_v6 = vcombine.low %v361_v0, %v362_v1 }
 0x22f   : > { %v390_v7 = vsel %vm389_vm5, %v386_v59, %v388_v4  ;;  %v391_v8 = vsel %vm389_vm5, %v388_v4, %v386_v59  ;;  %vm1045_vm5 = vcmp.lt.s32.totalorder %v3039_v27, 15 }
 0x230   : > { %v394_v9 = vmul.f32 0.021033203, %v391_v8  ;;  %1856 = vrot.lane.b32.xlu0 %v2973_v25, %s2743_s27  ;;  %1608 = vrot.lane.b32.xlu1 %v2970_v24, %s2736_s26  ;;  %v374_v11 = vrot.slane %v367_v6, %v3077_v5  ;;  %v395_v12 = vmul.f32 0.021033203, %v390_v7  ;;  %v392_v15 = vmul.f32 -0.040960558, %v391_v8 }
 0x231   : > { %v393_v20 = vmul.f32 -0.040960558, %v390_v7  ;;  %s2753_s26 = smov 77  }
 0x232   : > { %v398_v16 = vrot.slane %v394_v9, 1  ;;  %v3092_v17 = vpop.permute.xlu0 %674  ;;  %v427_v18 = vpop.permute.xlu1 %426  ;;  %v399_v21 = vrot.slane %v395_v12, 1  ;;  %v381_v32 = vrot.slane %v374_v11, %v3077_v5 }
 0x233   : > { %v431_v22 = vsel %vm430_vm6, %v427_v18, %v3041_v28  ;;  %v432_v23 = vsel %vm430_vm6, %v3041_v28, %v427_v18  ;;  %v1294_v28 = vrot.slane %v3089_v13, 1  ;;  %vm1086_vm6 = vcmp.lt.s32.totalorder %v3039_v27, 14 }
 0x234   : > { %v402_v26 = vadd.f32 %v398_v16, %v392_v15  ;;  %v435_v29 = vmul.f32 -0.06360551, %v432_v23  ;;  %1897 = vrot.lane.b32.xlu0 %v2973_v25, %s2744_s22  ;;  %1649 = vrot.lane.b32.xlu1 %v2970_v24, %s2737_s30  ;;  %v403_v33 = vadd.f32 %v399_v21, %v393_v20  ;;  %v436_v34 = vmul.f32 -0.06360551, %v431_v22  ;;  %s2445_s30 = sshll.u32 %s2792_s13, 9  ;;  %s2330_s13 = scalar_lea.sflag [#allocation4], %s2916_s19 }
 0x235   : > { %v433_v38 = vmul.f32 -0.077188544, %v432_v23  ;;  %v434_v45 = vmul.f32 -0.077188544, %v431_v22  ;;  %v383_v51 = vmul.f32 %v381_v32, %v364_v37 }
 0x236   : > { %v439_v39 = vrot.slane %v435_v29, 1  ;;  %v3110_v41 = vpop.permute.xlu0 %715  ;;  %v468_v42 = vpop.permute.xlu1 %467  ;;  %v408_v44 = vcombine.low %v402_v26, %v403_v33  ;;  %v440_v46 = vrot.slane %v436_v34, 1  ;;  %v446_v16 = vld [vmem:[#allocation5 + $0x3] ss:$8 sm:$0x3] }
 0x237   : > { %v472_v47 = vsel %vm471_vm7, %v468_v42, %v3047_v30  ;;  %v473_v49 = vsel %vm471_vm7, %v3047_v30, %v468_v42  ;;  %v384_v14 = vadd.f32 %v383_v51, %v342_v62  ;;  %vm1127_vm7 = vcmp.lt.s32.totalorder %v3039_v27, 13 }
 0x238   : > { %v443_v48 = vadd.f32 %v439_v39, %v433_v38  ;;  %v477_v50 = vmul.f32 0.09161434, %v472_v47  ;;  %1938 = vrot.lane.b32.xlu0 %v2973_v25, %s2745_s28  ;;  %1690 = vrot.lane.b32.xlu1 %v2970_v24, %s2738_s23  ;;  %v415_v55 = vrot.slane %v408_v44, %v3077_v5  ;;  %v444_v59 = vadd.f32 %v440_v46, %v434_v45  ;;  %s176_s23 = scalar_lea.vmem [#allocation7], %s2434_s29 }
 0x239   : > { %v476_v60 = vmul.f32 0.09161434, %v473_v49  ;;  %v474_v63 = vmul.f32 0.038094174, %v473_v49  ;;  %v475_v0 = vmul.f32 0.038094174, %v472_v47 }
 0x23a   : > { %v481_v30 = vrot.slane %v477_v50, 1  ;;  %v3124_v1 = vpop.permute.xlu0 %756  ;;  %v509_v2 = vpop.permute.xlu1 %508  ;;  %v422_v4 = vrot.slane %v415_v55, %v3077_v5  ;;  %v449_v6 = vcombine.low %v443_v48, %v444_v59 }
 0x23b   : > { %v480_v7 = vrot.slane %v476_v60, 1  ;;  %v513_v8 = vsel %vm512_vm8, %v509_v2, %v3052_v36  ;;  %v514_v11 = vsel %vm512_vm8, %v3052_v36, %v509_v2  ;;  %vm1168_vm8 = vcmp.lt.s32.totalorder %v3039_v27, 3 }
 0x23c   : > { %v485_v9 = vadd.f32 %v481_v30, %v475_v0  ;;  %v518_v12 = vmul.f32 -0.06120323, %v513_v8  ;;  %1979 = vrot.lane.b32.xlu0 %v2973_v25, %s2746_s3  ;;  %1731 = vrot.lane.b32.xlu1 %v2970_v24, %s2739_s17  ;;  %v424_v15 = vmul.f32 %v422_v4, %v405_v52  ;;  %v456_v18 = vrot.slane %v449_v6, %v3077_v5  ;;  %s2343_s17 = sshll.u32 %s176_s23, 4  ;;  %s3627_s17 = int_to_ptr.vmem [resolvable:$true] %s2343_s17 }
 0x23d   : > { %v484_v20 = vadd.f32 %v480_v7, %v474_v63  ;;  %v516_v21 = vmul.f32 0.001888919, %v513_v8  ;;  %v517_v22 = vmul.f32 -0.06120323, %v514_v11  ;;  %v515_v35 = vmul.f32 0.001888919, %v514_v11 }
 0x23e   : > { %v522_v23 = vrot.slane %v518_v12, 1  ;;  %v3139_v36 = vpop.permute.xlu0 %797  ;;  %v550_v26 = vpop.permute.xlu1 %549  ;;  %v425_v29 = vadd.f32 %v424_v15, %v384_v14  ;;  %v463_v32 = vrot.slane %v456_v18, %v3077_v5  ;;  %v528_v12 = vld [vmem:[#allocation5 + $0x5] ss:$8 sm:$0x3]  ;;  %s2628_s29 = scalar_lea.vmem %s3627_s17, 512 }
 0x23f   : > { %v490_v33 = vcombine.low %v484_v20, %v485_v9  ;;  %v554_v34 = vsel %vm553_vm9, %v550_v26, %v3059_v40  ;;  %v521_v37 = vrot.slane %v517_v22, 1  ;;  %v555_v39 = vsel %vm553_vm9, %v3059_v40, %v550_v26  ;;  %p2629_p4 = scmp.ne.s32.totalorder %s3627_s17, %s2628_s29 }
 0x240   : > { %v526_v38 = vadd.f32 %v522_v23, %v516_v21  ;;  %2020 = vrot.lane.b32.xlu0 %v2973_v25, %s2747_s6  ;;  %1772 = vrot.lane.b32.xlu1 %v2970_v24, %s2741_s4  ;;  %v465_v42 = vmul.f32 %v463_v32, %v446_v16  ;;  %v558_v45 = vmul.f32 0.06848212, %v555_v39  ;;  %v556_v47 = vmul.f32 0.057455655, %v555_v39 }
 0x241   : > { %v497_v44 = vrot.slane %v490_v33, %v3077_v5  ;;  %v525_v46 = vadd.f32 %v521_v37, %v515_v35  ;;  %v559_v48 = vmul.f32 0.06848212, %v554_v34  ;;  %v557_v60 = vmul.f32 0.057455655, %v554_v34  ;;  %p2630_p6 = pnand %p2629_p4, %p2865_p12 }
 0x242   : > { %v3154_v49 = vpop.permute.xlu0 %838  ;;  %v591_v50 = vpop.permute.xlu1 %590  ;;  %v466_v40 = vadd.f32 %v465_v42, %v425_v29  ;;  %v562_v52 = vrot.slane %v558_v45, 1  ;;  %v569_v39 = vld [vmem:[#allocation5 + $0x6] ss:$8 sm:$0x3]  ;;  %vm1209_vm9 = vcmp.lt.s32.totalorder %v3039_v27, 2 }
 0x243   : > { %v504_v51 = vrot.slane %v497_v44, %v3077_v5  ;;  %v595_v55 = vsel %vm594_vm10, %v591_v50, %v3065_v58  ;;  %v531_v59 = vcombine.low %v525_v46, %v526_v38  ;;  %v563_v62 = vrot.slane %v559_v48, 1  ;;  %p2631_p8 = pneg %p2630_p6 }
 0x244   : > { %v596_v63 = vsel %vm594_vm10, %v3065_v58, %v591_v50  ;;  %2061 = vrot.lane.b32.xlu0 %v2973_v25, %s2748_s7  ;;  %1813 = vrot.lane.b32.xlu1 %v2970_v24, %s2742_s5  ;;  %v566_v30 = vadd.f32 %v562_v52, %v556_v47  ;;  %v600_v8 = vmul.f32 -0.07553858, %v595_v55  ;;  %v598_v21 = vmul.f32 -0.075327896, %v595_v55 }
 0x245   : > { %v506_v0 = vmul.f32 %v504_v51, %v487_v43  ;;  %v599_v2 = vmul.f32 -0.07553858, %v596_v63  ;;  %v538_v4 = vrot.slane %v531_v59, %v3077_v5  ;;  %v567_v6 = vadd.f32 %v563_v62, %v557_v60 }
 0x246   : > { %v597_v7 = vmul.f32 -0.075327896, %v596_v63  ;;  %v3170_v9 = vpop.permute.xlu0 %879  ;;  %v632_v58 = vpop.permute.xlu1 %631  ;;  %v604_v22 = vrot.slane %v600_v8, 1  ;;  %v610_v63 = vld [vmem:[#allocation5 + $0x7] ss:$8 sm:$0x3] }
 0x247   : > { %v507_v11 = vadd.f32 %v506_v0, %v466_v40  ;;  %v603_v14 = vrot.slane %v599_v2, 1  ;;  %v636_v15 = vsel %vm635_vm11, %v632_v58, %v3074_v3  ;;  %v637_v16 = vsel %vm635_vm11, %v3074_v3, %v632_v58  ;;  %v651_v8 = vld [vmem:[#allocation5 + $0x10] ss:$8 sm:$0x3] }
 0x248   : > { %v545_v18 = vrot.slane %v538_v4, %v3077_v5  ;;  %v572_v20 = vcombine.low %v566_v30, %v567_v6  ;;  %2102 = vrot.lane.b32.xlu0 %v2973_v25, %s2749_s20  ;;  %1854 = vrot.lane.b32.xlu1 %v2970_v24, %s2743_s27  ;;  %v638_v26 = vmul.f32 0.023016622, %v637_v16  ;;  %v640_v29 = vmul.f32 -0.026525438, %v637_v16  ;;  %s3621_s27 = scalar_lea.hbm %s3674_s2, %s2445_s30 }
 0x249   : > { %v607_v23 = vadd.f32 %v603_v14, %v597_v7  ;;  %v641_v32 = vmul.f32 -0.026525438, %v636_v15  ;;  %v608_v3 = vadd.f32 %v604_v22, %v598_v21  ;;  %v639_v35 = vmul.f32 0.023016622, %v636_v15 }
 0x24a   : > { %v547_v33 = vmul.f32 %v545_v18, %v528_v12  ;;  %v579_v34 = vrot.slane %v572_v20, %v3077_v5  ;;  %v3184_v37 = vpop.permute.xlu0 %920  ;;  %v673_v38 = vpop.permute.xlu1 %672  ;;  %v644_v42 = vrot.slane %v640_v29, 1  ;;  %vm1250_vm10 = vcmp.lt.s32.totalorder %v3039_v27, 1 }
 0x24b   : > { %v645_v43 = vrot.slane %v641_v32, 1  ;;  %v677_v44 = vsel %vm676_vm12, %v673_v38, %v3092_v17  ;;  %v678_v45 = vsel %vm676_vm12, %v3092_v17, %v673_v38  ;;  %v613_v48 = vcombine.low %v607_v23, %v608_v3 }
 0x24c   : > { %v548_v46 = vadd.f32 %v547_v33, %v507_v11  ;;  %v586_v47 = vrot.slane %v579_v34, %v3077_v5  ;;  %2143 = vrot.lane.b32.xlu0 %v2973_v25, %s2750_s18  ;;  %1895 = vrot.lane.b32.xlu1 %v2970_v24, %s2744_s22  ;;  %v648_v50 = vadd.f32 %v644_v42, %v638_v26  ;;  %v681_v51 = vmul.f32 0.16851622, %v678_v45  ;;  %s2754_s22 = smov [#allocation7]  }
 0x24d   : > { %v649_v40 = vadd.f32 %v645_v43, %v639_v35  ;;  %v620_v17 = vrot.slane %v613_v48, %v3077_v5  ;;  %v679_v55 = vmul.f32 -0.14893436, %v678_v45  ;;  %v682_v59 = vmul.f32 0.16851622, %v677_v44 }
 0x24e   : > { %v588_v52 = vmul.f32 %v586_v47, %v569_v39  ;;  %v3200_v60 = vpop.permute.xlu0 %961  ;;  %v714_v62 = vpop.permute.xlu1 %713  ;;  %v685_v30 = vrot.slane %v681_v51, 1  ;;  %v680_v58 = vmul.f32 -0.14893436, %v677_v44  ;;  %vm1325_vm11 = vcmp.lt.s32.totalorder %v3039_v27, 127 }
 0x24f   : > { %v654_v0 = vcombine.low %v648_v50, %v649_v40  ;;  %v718_v2 = vsel %vm717_vm13, %v714_v62, %v3110_v41  ;;  %v719_v4 = vsel %vm717_vm13, %v3110_v41, %v714_v62  ;;  %v627_v7 = vrot.slane %v620_v17, %v3077_v5  ;;  %v692_v50 = vld [vmem:[#allocation5 + $0x11] ss:$8 sm:$0x3] }
 0x250   : > { %v589_v6 = vadd.f32 %v588_v52, %v548_v46  ;;  %v686_v11 = vrot.slane %v682_v59, 1  ;;  %2184 = vrot.lane.b32.xlu0 %v2973_v25, %s2751_s24  ;;  %1936 = vrot.lane.b32.xlu1 %v2970_v24, %s2745_s28  ;;  %v689_v14 = vadd.f32 %v685_v30, %v679_v55  ;;  %v722_v15 = vmul.f32 0.011994568, %v719_v4  ;;  %s2632_s28 = sshll.u32 %s2754_s22, 4  ;;  %s2633_s28 = int_to_ptr.vmem [resolvable:$false] %s2632_s28 }
 0x251   : > { %v661_v12 = vrot.slane %v654_v0, %v3077_v5  ;;  %v629_v41 = vmul.f32 %v627_v7, %v610_v63  ;;  %v720_v18 = vmul.f32 -0.09143197, %v719_v4  ;;  %v723_v20 = vmul.f32 0.011994568, %v718_v2  ;;  %p2635_p10 = scmp.lt.s32.totalorder %s3627_s17, %s2633_s28 }
 0x252   : > { %v690_v16 = vadd.f32 %v686_v11, %v680_v58  ;;  %v3211_v21 = vpop.permute.xlu0 %1002  ;;  %v755_v22 = vpop.permute.xlu1 %754  ;;  %v726_v26 = vrot.slane %v722_v15, 1  ;;  %v721_v3 = vmul.f32 -0.09143197, %v718_v2  ;;  %v733_v11 = vld [vmem:[#allocation5 + $0x12] ss:$8 sm:$0x3] }
 0x253   : > { %v668_v23 = vrot.slane %v661_v12, %v3077_v5  ;;  %v759_v29 = vsel %vm758_vm14, %v755_v22, %v3124_v1  ;;  %v760_v32 = vsel %vm758_vm14, %v3124_v1, %v755_v22  ;;  %v630_v33 = vadd.f32 %v629_v41, %v589_v6 }
 0x254   : > { %v695_v34 = vcombine.low %v689_v14, %v690_v16  ;;  %v727_v35 = vrot.slane %v723_v20, 1  ;;  %2225 = vrot.lane.b32.xlu0 %v2973_v25, %s2752_s25  ;;  %1977 = vrot.lane.b32.xlu1 %v2970_v24, %s2746_s3  ;;  %v730_v39 = vadd.f32 %v726_v26, %v720_v18  ;;  %v763_v42 = vmul.f32 -0.12539719, %v760_v32  ;;  %s2634_s3 = scalar_lea.vmem %s2633_s28, 1024 }
 0x255   : > { %v670_v38 = vmul.f32 %v668_v23, %v651_v8  ;;  %v761_v1 = vmul.f32 0.17661206, %v760_v32  ;;  %v764_v45 = vmul.f32 -0.12539719, %v759_v29  ;;  %v762_v59 = vmul.f32 0.17661206, %v759_v29  ;;  %p2636_p13 = scmp.lt.s32.totalorder %s2634_s3, %s2628_s29 }
 0x256   : > { %v702_v43 = vrot.slane %v695_v34, %v3077_v5  ;;  %v731_v44 = vadd.f32 %v727_v35, %v721_v3  ;;  %v3226_v46 = vpop.permute.xlu0 %1043  ;;  %v796_v47 = vpop.permute.xlu1 %795  ;;  %v767_v40 = vrot.slane %v763_v42, 1  ;;  %v774_v3 = vld [vmem:[#allocation5 + $0x13] ss:$8 sm:$0x3]  ;;  %vm1366_vm12 = vcmp.lt.s32.totalorder %v3039_v27, 126 }
 0x257   : > { %v671_v48 = vadd.f32 %v670_v38, %v630_v33  ;;  %v800_v51 = vsel %vm799_vm15, %v796_v47, %v3139_v36  ;;  %v801_v52 = vsel %vm799_vm15, %v3139_v36, %v796_v47  ;;  %v768_v62 = vrot.slane %v764_v45, 1  ;;  %v815_v47 = vld [vmem:[#allocation5 + $0x14] ss:$8 sm:$0x3]  ;;  %p2637_p3 = por %p2636_p13, %p2635_p10 }
 0x258   : > { %v709_v17 = vrot.slane %v702_v43, %v3077_v5  ;;  %v736_v55 = vcombine.low %v730_v39, %v731_v44  ;;  %2266 = vrot.lane.b32.xlu0 %v2973_v25, %s2753_s26  ;;  %2018 = vrot.lane.b32.xlu1 %v2970_v24, %s2747_s6  ;;  %v771_v63 = vadd.f32 %v767_v40, %v761_v1  ;;  %v802_v0 = vmul.f32 -0.095966354, %v801_v52 }
 0x259   : > { %v804_v30 = vmul.f32 0.0018075382, %v801_v52  ;;  %v805_v2 = vmul.f32 0.0018075382, %v800_v51  ;;  %v772_v36 = vadd.f32 %v768_v62, %v762_v59  ;;  %v803_v7 = vmul.f32 -0.095966354, %v800_v51  ;;  %p2638_p7 = pnand %p2637_p3, %p2631_p8 }
 0x25a   : > { %v711_v4 = vmul.f32 %v709_v17, %v692_v50  ;;  %v743_v6 = vrot.slane %v736_v55, %v3077_v5  ;;  %v3240_v8 = vpop.permute.xlu0 %1084  ;;  %v837_v58 = vpop.permute.xlu1 %836  ;;  %vm1407_vm13 = vcmp.lt.s32.totalorder %v3039_v27, 125  ;;  %vm1448_vm14 = vcmp.lt.s32.totalorder %v3039_v27, 115 }
 0x25b   : > { %v808_v12 = vrot.slane %v804_v30, 1  ;;  %v809_v14 = vrot.slane %v805_v2, 1  ;;  %v841_v25 = vsel %vm840_vm0, %v837_v58, %v3154_v49  ;;  %v842_v15 = vsel %vm840_vm0, %v3154_v49, %v837_v58 }
 0x25c   : > { %v712_v41 = vadd.f32 %v711_v4, %v671_v48  ;;  %v750_v16 = vrot.slane %v743_v6, %v3077_v5  ;;  %v777_v18 = vcombine.low %v771_v63, %v772_v36  ;;  %2059 = vrot.lane.b32.xlu1 %v2970_v24, %s2748_s7  ;;  %v845_v23 = vmul.f32 0.03253164, %v842_v15 }
 0x25d   : > { %v812_v20 = vadd.f32 %v808_v12, %v802_v0  ;;  %v813_v22 = vadd.f32 %v809_v14, %v803_v7  ;;  %v843_v32 = vmul.f32 -0.043131996, %v842_v15  ;;  %v846_v33 = vmul.f32 0.03253164, %v841_v25 }
 0x25e   : > { %v752_v26 = vmul.f32 %v750_v16, %v733_v11  ;;  %v784_v29 = vrot.slane %v777_v18, %v3077_v5  ;;  %v3254_v49 = vpop.permute.xlu0 %1125  ;;  %v878_v34 = vpop.permute.xlu1 %877  ;;  %v849_v38 = vrot.slane %v845_v23, 1  ;;  %v844_v1 = vmul.f32 -0.043131996, %v841_v25  ;;  %v856_v18 = vld [vmem:[#allocation5 + $0x15] ss:$8 sm:$0x3] }
 0x25f   : > { %v818_v35 = vcombine.low %v812_v20, %v813_v22  ;;  %v882_v39 = vsel %vm881_vm1, %v878_v34, %v3170_v9  ;;  %v883_v42 = vsel %vm881_vm1, %v3170_v9, %v878_v34  ;;  %v850_v45 = vrot.slane %v846_v33, 1 }
 0x260   : > { %v753_v43 = vadd.f32 %v752_v26, %v712_v41  ;;  %v791_v44 = vrot.slane %v784_v29, %v3077_v5  ;;  %2100 = vrot.lane.b32.xlu1 %v2970_v24, %s2749_s20  ;;  %v853_v50 = vadd.f32 %v849_v38, %v843_v32  ;;  %v886_v40 = vmul.f32 0.002105094, %v883_v42 }
 0x261   : > { %v825_v48 = vrot.slane %v818_v35, %v3077_v5  ;;  %v854_v52 = vadd.f32 %v850_v45, %v844_v1  ;;  %v884_v17 = vmul.f32 0.081523895, %v883_v42  ;;  %v887_v55 = vmul.f32 0.002105094, %v882_v39 }
 0x262   : > { %v793_v51 = vmul.f32 %v791_v44, %v774_v3  ;;  %v3263_v9 = vpop.permute.xlu0 %1166  ;;  %v919_v59 = vpop.permute.xlu1 %918  ;;  %v890_v63 = vrot.slane %v886_v40, 1  ;;  %v885_v6 = vmul.f32 0.081523895, %v882_v39  ;;  %v1293_v38 = vrot.slane %v3105_v31, 1 }
 0x263   : > { %v832_v62 = vrot.slane %v825_v48, %v3077_v5  ;;  %v923_v0 = vsel %vm922_vm2, %v919_v59, %v3184_v37  ;;  %v924_v30 = vsel %vm922_vm2, %v3184_v37, %v919_v59  ;;  %v859_v4 = vcombine.low %v853_v50, %v854_v52  ;;  %v897_v1 = vld [vmem:[#allocation5 + $0x16] ss:$8 sm:$0x3] }
 0x264   : > { %v794_v2 = vadd.f32 %v793_v51, %v753_v43  ;;  %v891_v36 = vrot.slane %v887_v55, 1  ;;  %2141 = vrot.lane.b32.xlu1 %v2970_v24, %s2750_s18  ;;  %v894_v58 = vadd.f32 %v890_v63, %v884_v17  ;;  %v927_v11 = vmul.f32 -0.04926106, %v924_v30 }
 0x265   : > { %v834_v7 = vmul.f32 %v832_v62, %v815_v47  ;;  %v866_v12 = vrot.slane %v859_v4, %v3077_v5  ;;  %v925_v25 = vmul.f32 0.11996739, %v924_v30  ;;  %v928_v15 = vmul.f32 -0.04926106, %v923_v0 }
 0x266   : > { %v895_v14 = vadd.f32 %v891_v36, %v885_v6  ;;  %v3276_v41 = vpop.permute.xlu0 %1207  ;;  %v960_v37 = vpop.permute.xlu1 %959  ;;  %v931_v20 = vrot.slane %v927_v11, 1  ;;  %v926_v32 = vmul.f32 0.11996739, %v923_v0  ;;  %v1298_v59 = vadd.f32 %v1294_v28, %v3085_v10 }
 0x267   : > { %v835_v16 = vadd.f32 %v834_v7, %v794_v2  ;;  %v964_v22 = vsel %vm963_vm3, %v960_v37, %v3200_v60  ;;  %v965_v23 = vsel %vm963_vm3, %v3200_v60, %v960_v37  ;;  %v873_v26 = vrot.slane %v866_v12, %v3077_v5 }
 0x268   : > { %v900_v29 = vcombine.low %v894_v58, %v895_v14  ;;  %v932_v33 = vrot.slane %v928_v15, 1  ;;  %2182 = vrot.lane.b32.xlu1 %v2970_v24, %s2751_s24  ;;  %v935_v34 = vadd.f32 %v931_v20, %v925_v25  ;;  %v968_v3 = vmul.f32 -0.13651447, %v965_v23 }
 0x269   : > { %v969_v35 = vmul.f32 -0.13651447, %v964_v22  ;;  %v875_v39 = vmul.f32 %v873_v26, %v856_v18  ;;  %v966_v51 = vmul.f32 -0.010776422, %v965_v23  ;;  %v967_v52 = vmul.f32 -0.010776422, %v964_v22 }
 0x26a   : > { %v907_v42 = vrot.slane %v900_v29, %v3077_v5  ;;  %v936_v43 = vadd.f32 %v932_v33, %v926_v32  ;;  %v3289_v44 = vpop.permute.xlu0 %1248  ;;  %v1001_v60 = vpop.permute.xlu1 %1000  ;;  %v972_v45 = vrot.slane %v968_v3, 1  ;;  %v1297_v62 = vadd.f32 %v1293_v38, %v3095_v19 }
 0x26b   : > { %v973_v47 = vrot.slane %v969_v35, 1  ;;  %v1005_v48 = vsel %vm1004_vm4, %v1001_v60, %v3211_v21  ;;  %v1006_v31 = vsel %vm1004_vm4, %v3211_v21, %v1001_v60  ;;  %v876_v50 = vadd.f32 %v875_v39, %v835_v16 }
 0x26c   : > { %v914_v40 = vrot.slane %v907_v42, %v3077_v5  ;;  %2223 = vrot.lane.b32.xlu1 %v2970_v24, %s2752_s25  ;;  %v941_v17 = vcombine.low %v935_v34, %v936_v43  ;;  %v1009_v55 = vmul.f32 0.079015926, %v1006_v31  ;;  %v976_v0 = vadd.f32 %v972_v45, %v966_v51  ;;  %v938_v42 = vld [vmem:[#allocation5 + $0x17] ss:$8 sm:$0x3] }
 0x26d   : > { %v977_v30 = vadd.f32 %v973_v47, %v967_v52  ;;  %v1010_v21 = vmul.f32 0.079015926, %v1005_v48  ;;  %v1007_v19 = vmul.f32 -0.09026764, %v1006_v31  ;;  %v1303_v58 = vcombine.low %v1297_v62, %v1298_v59 }
 0x26e   : > { %v916_v63 = vmul.f32 %v914_v40, %v897_v1  ;;  %v3305_v2 = vpop.permute.xlu0 %1323  ;;  %v1042_v4 = vpop.permute.xlu1 %1041  ;;  %v1013_v10 = vrot.slane %v1009_v55, 1  ;;  %v948_v11 = vrot.slane %v941_v17, %v3077_v5  ;;  %v1008_v14 = vmul.f32 -0.09026764, %v1005_v48 }
 0x26f   : > { %v1046_v6 = vsel %vm1045_vm5, %v1042_v4, %v3226_v46  ;;  %v1047_v36 = vsel %vm1045_vm5, %v3226_v46, %v1042_v4  ;;  %v1014_v13 = vrot.slane %v1010_v21, 1  ;;  %v982_v12 = vcombine.low %v976_v0, %v977_v30  ;;  %v979_v4 = vld [vmem:[#allocation5 + $0x20] ss:$8 sm:$0x3] }
 0x270   : > { %v3313_v7 = vadd.f32 %v916_v63, %v876_v50  ;;  %2264 = vrot.lane.b32.xlu1 %v2970_v24, %s2753_s26  ;;  %v1050_v28 = vmul.f32 0.024591114, %v1047_v36  ;;  %v1051_v25 = vmul.f32 0.024591114, %v1046_v6  ;;  %v1048_v37 = vmul.f32 0.13759643, %v1047_v36 }
 0x271   : > { %v1017_v20 = vadd.f32 %v1013_v10, %v1007_v19  ;;  %v1018_v22 = vadd.f32 %v1014_v13, %v1008_v14  ;;  %v1049_v23 = vmul.f32 0.13759643, %v1046_v6  ;;  %v955_v43 = vrot.slane %v948_v11, %v3077_v5 }
 0x272   : > { %v3320_v46 = vpop.permute.xlu0 %1364  ;;  %v1083_v15 = vpop.permute.xlu1 %1082  ;;  %v1054_v16 = vrot.slane %v1050_v28, 1  ;;  %v1055_v26 = vrot.slane %v1051_v25, 1  ;;  %v989_v60 = vrot.slane %v982_v12, %v3077_v5  ;;  %vm1489_vm15 = vcmp.lt.s32.totalorder %v3039_v27, 114 }
 0x273   : > { %v1087_v18 = vsel %vm1086_vm6, %v1083_v15, %v3240_v8  ;;  %v1088_v24 = vsel %vm1086_vm6, %v3240_v8, %v1083_v15  ;;  %v3334_v8 = vrot.slane %v1303_v58, %v3077_v5  ;;  %v1023_v1 = vcombine.low %v1017_v20, %v1018_v22 }
 0x274   : > { %v1091_v29 = vmul.f32 0.020268299, %v1088_v24  ;;  %v1058_v32 = vadd.f32 %v1054_v16, %v1048_v37  ;;  %v1059_v33 = vadd.f32 %v1055_v26, %v1049_v23  ;;  %v1092_v34 = vmul.f32 0.020268299, %v1087_v18 }
 0x275   : > { %v1089_v40 = vmul.f32 0.01301107, %v1088_v24  ;;  %v957_v63 = vmul.f32 %v955_v43, %v938_v42  ;;  %v996_v0 = vrot.slane %v989_v60, %v3077_v5  ;;  %v1030_v6 = vrot.slane %v1023_v1, %v3077_v5 }
 0x276   : > { %v3324_v3 = vpop.permute.xlu0 %1405  ;;  %v1124_v35 = vpop.permute.xlu1 %1123  ;;  %v1095_v45 = vrot.slane %v1091_v29, 1  ;;  %v1096_v47 = vrot.slane %v1092_v34, 1  ;;  %v1064_v50 = vcombine.low %v1058_v32, %v1059_v33  ;;  %v1020_v32 = vld [vmem:[#allocation5 + $0x21] ss:$8 sm:$0x3]  ;;  %vm1530_vm0 = vcmp.lt.s32.totalorder %v3039_v27, 113 }
 0x277   : > { %v1128_v38 = vsel %vm1127_vm7, %v1124_v35, %v3254_v49  ;;  %v1129_v39 = vsel %vm1127_vm7, %v3254_v49, %v1124_v35  ;;  %v1090_v49 = vmul.f32 0.01301107, %v1087_v18  ;;  %v958_v16 = vadd.f32 %v957_v63, %v3313_v7 }
 0x278   : > { %v1132_v48 = vmul.f32 0.26141247, %v1129_v39  ;;  %v1133_v31 = vmul.f32 0.26141247, %v1128_v38  ;;  %v1130_v30 = vmul.f32 -0.0590046, %v1129_v39  ;;  %v1099_v36 = vadd.f32 %v1095_v45, %v1089_v40 }
 0x279   : > { %v1131_v21 = vmul.f32 -0.0590046, %v1128_v38  ;;  %v1100_v10 = vadd.f32 %v1096_v47, %v1090_v49  ;;  %v1071_v19 = vrot.slane %v1064_v50, %v3077_v5  ;;  %v998_v18 = vmul.f32 %v996_v0, %v979_v4 }
 0x27a   : > { %v3339_v51 = vpop.permute.xlu0 %1446  ;;  %v1165_v52 = vpop.permute.xlu1 %1164  ;;  %v1136_v17 = vrot.slane %v1132_v48, 1  ;;  %v1137_v55 = vrot.slane %v1133_v31, 1  ;;  %v1037_v22 = vrot.slane %v1030_v6, %v3077_v5  ;;  %vm1571_vm1 = vcmp.lt.s32.totalorder %v3039_v27, 112 }
 0x27b   : > { %v1169_v59 = vsel %vm1168_vm8, %v1165_v52, %v3263_v9  ;;  %v1170_v62 = vsel %vm1168_vm8, %v3263_v9, %v1165_v52  ;;  %v1105_v23 = vcombine.low %v1099_v36, %v1100_v10  ;;  %v1078_v33 = vrot.slane %v1071_v19, %v3077_v5 }
 0x27c   : > { %v1173_v13 = vmul.f32 0.018417697, %v1170_v62  ;;  %v1140_v28 = vadd.f32 %v1136_v17, %v1130_v30  ;;  %v1141_v58 = vadd.f32 %v1137_v55, %v1131_v21  ;;  %v1174_v11 = vmul.f32 0.018417697, %v1169_v59 }
 0x27d   : > { %v1171_v14 = vmul.f32 -0.04612955, %v1170_v62  ;;  %v1172_v24 = vmul.f32 -0.04612955, %v1169_v59  ;;  %v999_v45 = vadd.f32 %v998_v18, %v958_v16  ;;  %v1112_v31 = vrot.slane %v1105_v23, %v3077_v5 }
 0x27e   : > { %v3352_v12 = vpop.permute.xlu0 %1487  ;;  %v1206_v9 = vpop.permute.xlu1 %1205  ;;  %v1177_v25 = vrot.slane %v1173_v13, 1  ;;  %v1178_v20 = vrot.slane %v1174_v11, 1  ;;  %v1146_v34 = vcombine.low %v1140_v28, %v1141_v58  ;;  %v1039_v52 = vmul.f32 %v1037_v22, %v1020_v32  ;;  %v1143_v16 = vld [vmem:[#allocation5 + $0x24] ss:$8 sm:$0x3] }
 0x27f   : > { %v1210_v15 = vsel %vm1209_vm9, %v1206_v9, %v3276_v41  ;;  %v1211_v37 = vsel %vm1209_vm9, %v3276_v41, %v1206_v9  ;;  %v1061_v41 = vld [vmem:[#allocation5 + $0x22] ss:$8 sm:$0x3]  ;;  %v1119_v13 = vrot.slane %v1112_v31, %v3077_v5  ;;  %v1102_v9 = vld [vmem:[#allocation5 + $0x23] ss:$8 sm:$0x3] }
 0x280   : > { %v1181_v26 = vadd.f32 %v1177_v25, %v1171_v14  ;;  %v1214_v29 = vmul.f32 0.045230966, %v1211_v37  ;;  %v1182_v35 = vadd.f32 %v1178_v20, %v1172_v24  ;;  %v1215_v38 = vmul.f32 0.045230966, %v1210_v15 }
 0x281   : > { %v1212_v43 = vmul.f32 -0.056709994, %v1211_v37  ;;  %v1213_v47 = vmul.f32 -0.056709994, %v1210_v15  ;;  %v1080_v17 = vmul.f32 %v1078_v33, %v1061_v41  ;;  %v1153_v0 = vrot.slane %v1146_v34, %v3077_v5 }
 0x282   : > { %v3363_v39 = vpop.permute.xlu0 %1528  ;;  %v1247_v42 = vpop.permute.xlu1 %1246  ;;  %v1218_v7 = vrot.slane %v1214_v29, 1  ;;  %v1219_v48 = vrot.slane %v1215_v38, 1  ;;  %v1187_v50 = vcombine.low %v1181_v26, %v1182_v35  ;;  %v1040_v11 = vadd.f32 %v1039_v52, %v999_v45  ;;  %v1300_v23 = vld [vmem:[#allocation5 + $0x30] ss:$8 sm:$0x3] }
 0x283   : > { %v1251_v60 = vsel %vm1250_vm10, %v1247_v42, %v3289_v44  ;;  %v1252_v1 = vsel %vm1250_vm10, %v3289_v44, %v1247_v42  ;;  %v1317_v15 = vrot.slane %v3334_v8, %v3077_v5  ;;  %v1160_v18 = vrot.slane %v1153_v0, %v3077_v5  ;;  %v1184_v33 = vld [vmem:[#allocation5 + $0x25] ss:$8 sm:$0x3] }
 0x284   : > { %v1222_v40 = vadd.f32 %v1218_v7, %v1212_v43  ;;  %v1255_v49 = vmul.f32 -0.054425288, %v1252_v1  ;;  %v1223_v55 = vadd.f32 %v1219_v48, %v1213_v47  ;;  %v1256_v59 = vmul.f32 -0.054425288, %v1251_v60 }
 0x285   : > { %v1253_v6 = vmul.f32 0.027617192, %v1252_v1  ;;  %v1254_v36 = vmul.f32 0.027617192, %v1251_v60  ;;  %v1194_v19 = vrot.slane %v1187_v50, %v3077_v5  ;;  %v1081_v8 = vadd.f32 %v1080_v17, %v1040_v11 }
 0x286   : > { %v3373_v62 = vpop.permute.xlu0 %1569  ;;  %v1322_v63 = vpop.permute.xlu1 %1321  ;;  %v1259_v44 = vrot.slane %v1255_v49, 1  ;;  %v1228_v4 = vcombine.low %v1222_v40, %v1223_v55  ;;  %v1260_v10 = vrot.slane %v1256_v59, 1  ;;  %v1121_v32 = vmul.f32 %v1119_v13, %v1102_v9  ;;  %v1225_v17 = vld [vmem:[#allocation5 + $0x26] ss:$8 sm:$0x3] }
 0x287   : > { %v1326_v30 = vsel %vm1325_vm11, %v1322_v63, %v3305_v2  ;;  %v1327_v21 = vsel %vm1325_vm11, %v3305_v2, %v1322_v63  ;;  %v1201_v34 = vrot.slane %v1194_v19, %v3077_v5  ;;  %v1162_v60 = vmul.f32 %v1160_v18, %v1143_v16 }
 0x288   : > { %v1330_v28 = vmul.f32 0.15244447, %v1326_v30  ;;  %v1331_v58 = vmul.f32 0.15244447, %v1327_v21  ;;  %v1263_v14 = vadd.f32 %v1259_v44, %v1253_v6  ;;  %v1264_v25 = vadd.f32 %v1260_v10, %v1254_v36 }
 0x289   : > { %v1235_v24 = vrot.slane %v1228_v4, %v3077_v5  ;;  %v1328_v42 = vmul.f32 0.16655985, %v1326_v30  ;;  %v1329_v41 = vmul.f32 0.16655985, %v1327_v21  ;;  %v1122_v49 = vadd.f32 %v1121_v32, %v1081_v8 }
 0x28a   : > { %v3386_v37 = vpop.permute.xlu0 %1610  ;;  %v1363_v2 = vpop.permute.xlu1 %1362  ;;  %v1334_v26 = vrot.slane %v1330_v28, 1  ;;  %v1335_v29 = vrot.slane %v1331_v58, 1  ;;  %v1269_v38 = vcombine.low %v1263_v14, %v1264_v25  ;;  %v1203_v52 = vmul.f32 %v1201_v34, %v1184_v33  ;;  %v1266_v25 = vld [vmem:[#allocation5 + $0x27] ss:$8 sm:$0x3] }
 0x28b   : > { %v1367_v20 = vsel %vm1366_vm12, %v1363_v2, %v3320_v46  ;;  %v1368_v22 = vsel %vm1366_vm12, %v3320_v46, %v1363_v2  ;;  %v1242_v1 = vrot.slane %v1235_v24, %v3077_v5  ;;  %v3408_v55 = vmul.f32 %v1317_v15, %v1300_v23 }
 0x28c   : > { %v1371_v35 = vmul.f32 -0.15922652, %v1367_v20  ;;  %v1372_v43 = vmul.f32 -0.15922652, %v1368_v22  ;;  %v1338_v48 = vadd.f32 %v1334_v26, %v1328_v42  ;;  %v1339_v31 = vadd.f32 %v1335_v29, %v1329_v41 }
 0x28d   : > { %v1276_v63 = vrot.slane %v1269_v38, %v3077_v5  ;;  %v1369_v0 = vmul.f32 -0.07133131, %v1367_v20  ;;  %v1370_v44 = vmul.f32 -0.07133131, %v1368_v22  ;;  %v1163_v6 = vadd.f32 %v1162_v60, %v1122_v49 }
 0x28e   : > { %v3399_v7 = vpop.permute.xlu0 %1651  ;;  %v1404_v46 = vpop.permute.xlu1 %1403  ;;  %v1375_v50 = vrot.slane %v1371_v35, 1  ;;  %v1376_v40 = vrot.slane %v1372_v43, 1  ;;  %v1244_v10 = vmul.f32 %v1242_v1, %v1225_v17  ;;  %v1344_v13 = vcombine.low %v1338_v48, %v1339_v31 }
 0x28f   : > { %v1408_v45 = vsel %vm1407_vm13, %v1404_v46, %v3324_v3  ;;  %v1409_v47 = vsel %vm1407_vm13, %v3324_v3, %v1404_v46  ;;  %v1204_v14 = vadd.f32 %v1203_v52, %v1163_v6  ;;  %v1283_v15 = vrot.slane %v1276_v63, %v3077_v5 }
 0x290   : > { %v1412_v59 = vmul.f32 0.11972988, %v1408_v45  ;;  %v1413_v30 = vmul.f32 0.11972988, %v1409_v47  ;;  %v1379_v19 = vadd.f32 %v1375_v50, %v1369_v0  ;;  %v1380_v28 = vadd.f32 %v1376_v40, %v1370_v44 }
 0x291   : > { %v1411_v24 = vmul.f32 0.20350038, %v1409_v47  ;;  %v1245_v23 = vadd.f32 %v1244_v10, %v1204_v14  ;;  %v1351_v26 = vrot.slane %v1344_v13, %v3077_v5  ;;  %vm1612_vm2 = vcmp.lt.s32.totalorder %v3039_v27, 111  ;;  %v1341_v40 = vld [vmem:[#allocation5 + $0x31] ss:$8 sm:$0x3] }
 0x292   : > { %v3411_v21 = vpop.permute.xlu0 %1692  ;;  %v1445_v4 = vpop.permute.xlu1 %1444  ;;  %v1416_v58 = vrot.slane %v1412_v59, 1  ;;  %v1417_v11 = vrot.slane %v1413_v30, 1  ;;  %v1385_v29 = vcombine.low %v1379_v19, %v1380_v28  ;;  %v1285_v35 = vmul.f32 %v1283_v15, %v1266_v25  ;;  %v1382_v13 = vld [vmem:[#allocation5 + $0x32] ss:$8 sm:$0x3] }
 0x293   : > { %v1449_v3 = vsel %vm1448_vm14, %v1445_v4, %v3339_v51  ;;  %v1450_v36 = vsel %vm1448_vm14, %v3339_v51, %v1445_v4  ;;  %v1410_v51 = vmul.f32 0.20350038, %v1408_v45  ;;  %v1358_v47 = vrot.slane %v1351_v26, %v3077_v5 }
 0x294   : > { %v1453_v9 = vmul.f32 -0.10966688, %v1449_v3  ;;  %v1454_v2 = vmul.f32 -0.10966688, %v1450_v36  ;;  %v1421_v32 = vadd.f32 %v1417_v11, %v1411_v24  ;;  %v1451_v38 = vmul.f32 0.09661529, %v1449_v3 }
 0x295   : > { %v1420_v8 = vadd.f32 %v1416_v58, %v1410_v51  ;;  %v1452_v60 = vmul.f32 0.09661529, %v1450_v36  ;;  %v1392_v49 = vrot.slane %v1385_v29, %v3077_v5  ;;  %vm1653_vm3 = vcmp.lt.s32.totalorder %v3039_v27, 110 }
 0x296   : > { %v3422_v16 = vpop.permute.xlu0 %1733  ;;  %v1486_v18 = vpop.permute.xlu1 %1485  ;;  %v1457_v33 = vrot.slane %v1453_v9, 1  ;;  %v1458_v42 = vrot.slane %v1454_v2, 1  ;;  %v1286_v36 = vadd.f32 %v1285_v35, %v1245_v23  ;;  %v1360_v10 = vmul.f32 %v1358_v47, %v1341_v40 }
 0x297   : > { %v1490_v20 = vsel %vm1489_vm15, %v1486_v18, %v3352_v12  ;;  %v1491_v22 = vsel %vm1489_vm15, %v3352_v12, %v1486_v18  ;;  %v1426_v52 = vcombine.low %v1420_v8, %v1421_v32  ;;  %vm1694_vm4 = vcmp.lt.s32.totalorder %v3039_v27, 109 }
 0x298   : > { %v1494_v34 = vmul.f32 -0.15099466, %v1490_v20  ;;  %v1495_v41 = vmul.f32 -0.15099466, %v1491_v22  ;;  %v1492_v48 = vmul.f32 -0.1721203, %v1490_v20  ;;  %v1461_v17 = vadd.f32 %v1457_v33, %v1451_v38 }
 0x299   : > { %v1493_v31 = vmul.f32 -0.1721203, %v1491_v22  ;;  %v1462_v63 = vadd.f32 %v1458_v42, %v1452_v60  ;;  %v1399_v58 = vrot.slane %v1392_v49, %v3077_v5  ;;  %v1433_v11 = vrot.slane %v1426_v52, %v3077_v5  ;;  %v1423_v38 = vld [vmem:[#allocation5 + $0x33] ss:$8 sm:$0x3] }
 0x29a   : > { %v3433_v43 = vpop.permute.xlu0 %1774  ;;  %v1527_v46 = vpop.permute.xlu1 %1526  ;;  %v1498_v1 = vrot.slane %v1494_v34, 1  ;;  %v1499_v50 = vrot.slane %v1495_v41, 1  ;;  %v1320_v32 = vadd.f32 %v3408_v55, %v1286_v36  ;;  %vm1735_vm5 = vcmp.lt.s32.totalorder %v3039_v27, 99  ;;  %v1505_v36 = vld [vmem:[#allocation5 + $0x35] ss:$8 sm:$0x3] }
 0x29b   : > { %v1531_v12 = vsel %vm1530_vm0, %v1527_v46, %v3363_v39  ;;  %v1532_v45 = vsel %vm1530_vm0, %v3363_v39, %v1527_v46  ;;  %v1467_v25 = vcombine.low %v1461_v17, %v1462_v63  ;;  %v1401_v33 = vmul.f32 %v1399_v58, %v1382_v13 }
 0x29c   : > { %v1535_v59 = vmul.f32 0.13537379, %v1531_v12  ;;  %v1502_v0 = vadd.f32 %v1498_v1, %v1492_v48  ;;  %v1503_v44 = vadd.f32 %v1499_v50, %v1493_v31  ;;  %v1536_v30 = vmul.f32 0.13537379, %v1532_v45 }
 0x29d   : > { %v1533_v9 = vmul.f32 -0.10149354, %v1531_v12  ;;  %v1534_v2 = vmul.f32 -0.10149354, %v1532_v45  ;;  %v1440_v34 = vrot.slane %v1433_v11, %v3077_v5  ;;  %v1474_v42 = vrot.slane %v1467_v25, %v3077_v5 }
 0x29e   : > { %v1568_v4 = vpop.permute.xlu1 %1567  ;;  %v1539_v6 = vrot.slane %v1535_v59, 1  ;;  %v1540_v19 = vrot.slane %v1536_v30, 1  ;;  %v3450_v28 = vpop.permute.xlu0 %1815  ;;  %v1508_v15 = vcombine.low %v1502_v0, %v1503_v44  ;;  %v1361_v49 = vadd.f32 %v1360_v10, %v1320_v32 }
 0x29f   : > { %v1572_v39 = vsel %vm1571_vm1, %v1568_v4, %v3373_v62  ;;  %v1573_v3 = vsel %vm1571_vm1, %v3373_v62, %v1568_v4  ;;  %v1442_v52 = vmul.f32 %v1440_v34, %v1423_v38  ;;  %vm1776_vm6 = vcmp.lt.s32.totalorder %v3039_v27, 98 }
 0x2a0   : > { %v1576_v14 = vmul.f32 -0.026039813, %v1572_v39  ;;  %v1577_v62 = vmul.f32 -0.026039813, %v1573_v3  ;;  %v1543_v51 = vadd.f32 %v1539_v6, %v1533_v9  ;;  %v1544_v23 = vadd.f32 %v1540_v19, %v1534_v2 }
 0x2a1   : > { %v1574_v26 = vmul.f32 -0.03213079, %v1572_v39  ;;  %v1575_v29 = vmul.f32 -0.03213079, %v1573_v3  ;;  %v1402_v4 = vadd.f32 %v1401_v33, %v1361_v49  ;;  %v1481_v3 = vrot.slane %v1474_v42, %v3077_v5 }
 0x2a2   : > { %v1609_v18 = vpop.permute.xlu1 %1608  ;;  %v1580_v24 = vrot.slane %v1576_v14, 1  ;;  %v1581_v8 = vrot.slane %v1577_v62, 1  ;;  %v3464_v60 = vpop.permute.xlu0 %1856  ;;  %v1549_v48 = vcombine.low %v1543_v51, %v1544_v23  ;;  %v1464_v6 = vld [vmem:[#allocation5 + $0x34] ss:$8 sm:$0x3]  ;;  %vm1817_vm7 = vcmp.lt.s32.totalorder %v3039_v27, 97 }
 0x2a3   : > { %v1613_v20 = vsel %vm1612_vm2, %v1609_v18, %v3386_v37  ;;  %v1614_v22 = vsel %vm1612_vm2, %v3386_v37, %v1609_v18  ;;  %v1515_v37 = vrot.slane %v1508_v15, %v3077_v5  ;;  %v1443_v58 = vadd.f32 %v1442_v52, %v1402_v4 }
 0x2a4   : > { %v1617_v35 = vmul.f32 0.033292964, %v1613_v20  ;;  %v1584_v41 = vadd.f32 %v1580_v24, %v1574_v26  ;;  %v1585_v46 = vadd.f32 %v1581_v8, %v1575_v29  ;;  %v1618_v1 = vmul.f32 0.033292964, %v1614_v22 }
 0x2a5   : > { %v1615_v31 = vmul.f32 -0.09286278, %v1613_v20  ;;  %v1616_v50 = vmul.f32 -0.09286278, %v1614_v22  ;;  %v1522_v10 = vrot.slane %v1515_v37, %v3077_v5  ;;  %v1556_v13 = vrot.slane %v1549_v48, %v3077_v5 }
 0x2a6   : > { %v1650_v12 = vpop.permute.xlu1 %1649  ;;  %v1621_v45 = vrot.slane %v1617_v35, 1  ;;  %v1622_v40 = vrot.slane %v1618_v1, 1  ;;  %v1590_v59 = vcombine.low %v1584_v41, %v1585_v46  ;;  %v3484_v19 = vpop.permute.xlu0 %1897  ;;  %v1483_v22 = vmul.f32 %v1481_v3, %v1464_v6  ;;  %v1546_v26 = vld [vmem:[#allocation5 + $0x36] ss:$8 sm:$0x3] }
 0x2a7   : > { %v1654_v55 = vsel %vm1653_vm3, %v1650_v12, %v3399_v7  ;;  %v1655_v47 = vsel %vm1653_vm3, %v3399_v7, %v1650_v12  ;;  %v1524_v23 = vmul.f32 %v1522_v10, %v1505_v36  ;;  %v1563_v29 = vrot.slane %v1556_v13, %v3077_v5 }
 0x2a8   : > { %v1658_v17 = vmul.f32 0.102957144, %v1654_v55  ;;  %v1625_v63 = vadd.f32 %v1621_v45, %v1615_v31  ;;  %v1626_v0 = vadd.f32 %v1622_v40, %v1616_v50  ;;  %v1659_v44 = vmul.f32 0.102957144, %v1655_v47 }
 0x2a9   : > { %v1597_v25 = vrot.slane %v1590_v59, %v3077_v5  ;;  %v1656_v15 = vmul.f32 -0.06005917, %v1654_v55  ;;  %v1657_v18 = vmul.f32 -0.06005917, %v1655_v47  ;;  %v1484_v49 = vadd.f32 %v1483_v22, %v1443_v58 }
 0x2aa   : > { %v1691_v30 = vpop.permute.xlu1 %1690  ;;  %v1662_v11 = vrot.slane %v1658_v17, 1  ;;  %v1663_v9 = vrot.slane %v1659_v44, 1  ;;  %v3497_v41 = vpop.permute.xlu0 %1938  ;;  %v1565_v52 = vmul.f32 %v1563_v29, %v1546_v26  ;;  %vm1858_vm8 = vcmp.lt.s32.totalorder %v3039_v27, 96 }
 0x2ab   : > { %v1695_v7 = vsel %vm1694_vm4, %v1691_v30, %v3411_v21  ;;  %v1696_v39 = vsel %vm1694_vm4, %v3411_v21, %v1691_v30  ;;  %v1631_v21 = vcombine.low %v1625_v63, %v1626_v0  ;;  %v1604_v38 = vrot.slane %v1597_v25, %v3077_v5 }
 0x2ac   : > { %v1699_v14 = vmul.f32 0.14727728, %v1695_v7  ;;  %v1700_v2 = vmul.f32 0.14727728, %v1696_v39  ;;  %v1666_v32 = vadd.f32 %v1662_v11, %v1656_v15  ;;  %v1667_v33 = vadd.f32 %v1663_v9, %v1657_v18 }
 0x2ad   : > { %v1697_v34 = vmul.f32 0.17222549, %v1695_v7  ;;  %v1638_v42 = vrot.slane %v1631_v21, %v3077_v5  ;;  %v1698_v46 = vmul.f32 0.17222549, %v1696_v39  ;;  %v1525_v4 = vadd.f32 %v1524_v23, %v1484_v49 }
 0x2ae   : > { %v1732_v62 = vpop.permute.xlu1 %1731  ;;  %v1703_v51 = vrot.slane %v1699_v14, 1  ;;  %v1704_v8 = vrot.slane %v1700_v2, 1  ;;  %v1672_v17 = vcombine.low %v1666_v32, %v1667_v33  ;;  %v3513_v36 = vpop.permute.xlu0 %1979  ;;  %v1628_v11 = vld [vmem:[#allocation5 + $0x40] ss:$8 sm:$0x3]  ;;  %vm1899_vm9 = vcmp.lt.s32.totalorder %v3039_v27, 95 }
 0x2af   : > { %v1736_v24 = vsel %vm1735_vm5, %v1732_v62, %v3422_v16  ;;  %v1737_v20 = vsel %vm1735_vm5, %v3422_v16, %v1732_v62  ;;  %v1587_v16 = vld [vmem:[#allocation5 + $0x37] ss:$8 sm:$0x3]  ;;  %v1645_v39 = vrot.slane %v1638_v42, %v3077_v5  ;;  %v1566_v58 = vadd.f32 %v1565_v52, %v1525_v4 }
 0x2b0   : > { %v1740_v35 = vmul.f32 -0.1857196, %v1736_v24  ;;  %v1741_v1 = vmul.f32 -0.1857196, %v1737_v20  ;;  %v1707_v37 = vadd.f32 %v1703_v51, %v1697_v34  ;;  %v1708_v48 = vadd.f32 %v1704_v8, %v1698_v46 }
 0x2b1   : > { %v1738_v31 = vmul.f32 0.09951521, %v1736_v24  ;;  %v1739_v50 = vmul.f32 0.09951521, %v1737_v20  ;;  %v1606_v6 = vmul.f32 %v1604_v38, %v1587_v16  ;;  %v1679_v9 = vrot.slane %v1672_v17, %v3077_v5 }
 0x2b2   : > { %v1773_v12 = vpop.permute.xlu1 %1772  ;;  %v1744_v45 = vrot.slane %v1740_v35, 1  ;;  %v1745_v40 = vrot.slane %v1741_v1, 1  ;;  %v1713_v3 = vcombine.low %v1707_v37, %v1708_v48  ;;  %vm1940_vm10 = vcmp.lt.s32.totalorder %v3039_v27, 94  ;;  %v3528_v34 = vpop.permute.xlu0 %2020  ;;  %v1669_v46 = vld [vmem:[#allocation5 + $0x41] ss:$8 sm:$0x3] }
 0x2b3   : > { %v1777_v55 = vsel %vm1776_vm6, %v1773_v12, %v3433_v43  ;;  %v1778_v47 = vsel %vm1776_vm6, %v3433_v43, %v1773_v12  ;;  %v1647_v24 = vmul.f32 %v1645_v39, %v1628_v11  ;;  %vm1981_vm11 = vcmp.lt.s32.totalorder %v3039_v27, 93 }
 0x2b4   : > { %v1781_v59 = vmul.f32 -0.02076745, %v1777_v55  ;;  %v1748_v63 = vadd.f32 %v1744_v45, %v1738_v31  ;;  %v1749_v0 = vadd.f32 %v1745_v40, %v1739_v50  ;;  %v1782_v44 = vmul.f32 -0.02076745, %v1778_v47 }
 0x2b5   : > { %v1779_v21 = vmul.f32 0.014052699, %v1777_v55  ;;  %v1780_v15 = vmul.f32 0.014052699, %v1778_v47  ;;  %v1720_v20 = vrot.slane %v1713_v3, %v3077_v5  ;;  %v1686_v26 = vrot.slane %v1679_v9, %v3077_v5 }
 0x2b6   : > { %v1814_v30 = vpop.permute.xlu1 %1813  ;;  %v1785_v10 = vrot.slane %v1781_v59, 1  ;;  %v1786_v13 = vrot.slane %v1782_v44, 1  ;;  %v1754_v25 = vcombine.low %v1748_v63, %v1749_v0  ;;  %vm2022_vm12 = vcmp.lt.s32.totalorder %v3039_v27, 83  ;;  %v1710_v59 = vld [vmem:[#allocation5 + $0x42] ss:$8 sm:$0x3]  ;;  %v2062_v39 = vpop.permute.xlu0 %2061 }
 0x2b7   : > { %v1818_v43 = vsel %vm1817_vm7, %v1814_v30, %v3450_v28  ;;  %v1819_v7 = vsel %vm1817_vm7, %v3450_v28, %v1814_v30  ;;  %v1607_v28 = vadd.f32 %v1606_v6, %v1566_v58  ;;  %v1727_v45 = vrot.slane %v1720_v20, %v3077_v5  ;;  %v1751_v30 = vld [vmem:[#allocation5 + $0x43] ss:$8 sm:$0x3] }
 0x2b8   : > { %v1822_v14 = vmul.f32 0.04864908, %v1818_v43  ;;  %v1823_v2 = vmul.f32 0.04864908, %v1819_v7  ;;  %v1789_v22 = vadd.f32 %v1785_v10, %v1779_v21  ;;  %v1790_v23 = vadd.f32 %v1786_v13, %v1780_v15 }
 0x2b9   : > { %v1761_v33 = vrot.slane %v1754_v25, %v3077_v5  ;;  %v1820_v35 = vmul.f32 0.044238266, %v1818_v43  ;;  %v1648_v52 = vadd.f32 %v1647_v24, %v1607_v28  ;;  %v1688_v17 = vmul.f32 %v1686_v26, %v1669_v46 }
 0x2ba   : > { %v1855_v62 = vpop.permute.xlu1 %1854  ;;  %v1826_v29 = vrot.slane %v1822_v14, 1  ;;  %v1827_v8 = vrot.slane %v1823_v2, 1  ;;  %v1795_v55 = vcombine.low %v1789_v22, %v1790_v23  ;;  %v1729_v58 = vmul.f32 %v1727_v45, %v1710_v59  ;;  %v1833_v45 = vld [vmem:[#allocation5 + $0x45] ss:$8 sm:$0x3] }
 0x2bb   : > { %v1859_v18 = vsel %vm1858_vm8, %v1855_v62, %v3464_v60  ;;  %v1860_v51 = vsel %vm1858_vm8, %v3464_v60, %v1855_v62  ;;  %v1821_v60 = vmul.f32 0.044238266, %v1819_v7  ;;  %v1689_v25 = vadd.f32 %v1688_v17, %v1648_v52 }
 0x2bc   : > { %v1863_v32 = vmul.f32 0.234689, %v1859_v18  ;;  %v1864_v38 = vmul.f32 0.234689, %v1860_v51  ;;  %v1861_v1 = vmul.f32 0.07188049, %v1859_v18  ;;  %v1830_v31 = vadd.f32 %v1826_v29, %v1820_v35  ;;  %v2103_v35 = vpop.permute.xlu0 %2102 }
 0x2bd   : > { %v1862_v47 = vmul.f32 0.07188049, %v1860_v51  ;;  %v1831_v50 = vadd.f32 %v1827_v8, %v1821_v60  ;;  %v1802_v7 = vrot.slane %v1795_v55, %v3077_v5  ;;  %v1730_v26 = vadd.f32 %v1729_v58, %v1689_v25  ;;  %v1792_v29 = vld [vmem:[#allocation5 + $0x44] ss:$8 sm:$0x3] }
 0x2be   : > { %v1896_v42 = vpop.permute.xlu1 %1895  ;;  %v1867_v12 = vrot.slane %v1863_v32, 1  ;;  %v1868_v48 = vrot.slane %v1864_v38, 1  ;;  %vm2063_vm13 = vcmp.lt.s32.totalorder %v3039_v27, 82  ;;  %vm2104_vm14 = vcmp.lt.s32.totalorder %v3039_v27, 81 }
 0x2bf   : > { %v1900_v16 = vsel %vm1899_vm9, %v1896_v42, %v3484_v19  ;;  %v1901_v37 = vsel %vm1899_vm9, %v3484_v19, %v1896_v42  ;;  %v1768_v19 = vrot.slane %v1761_v33, %v3077_v5  ;;  %v1836_v11 = vcombine.low %v1830_v31, %v1831_v50 }
 0x2c0   : > { %v1871_v40 = vadd.f32 %v1867_v12, %v1861_v1  ;;  %v1904_v49 = vmul.f32 0.09366369, %v1900_v16  ;;  %v1872_v63 = vadd.f32 %v1868_v48, %v1862_v47  ;;  %v1905_v0 = vmul.f32 0.09366369, %v1901_v37 }
 0x2c1   : > { %v1902_v3 = vmul.f32 -0.03503607, %v1900_v16  ;;  %v1903_v10 = vmul.f32 -0.03503607, %v1901_v37  ;;  %v1770_v28 = vmul.f32 %v1768_v19, %v1751_v30  ;;  %v1809_v24 = vrot.slane %v1802_v7, %v3077_v5  ;;  %v2144_v19 = vpop.permute.xlu0 %2143 }
 0x2c2   : > { %v1937_v44 = vpop.permute.xlu1 %1936  ;;  %v1908_v4 = vrot.slane %v1904_v49, 1  ;;  %v1909_v13 = vrot.slane %v1905_v0, 1  ;;  %v1877_v9 = vcombine.low %v1871_v40, %v1872_v63  ;;  %v1843_v8 = vrot.slane %v1836_v11, %v3077_v5 }
 0x2c3   : > { %v1941_v6 = vsel %vm1940_vm10, %v1937_v44, %v3497_v41  ;;  %v1942_v43 = vsel %vm1940_vm10, %v3497_v41, %v1937_v44  ;;  %v1771_v16 = vadd.f32 %v1770_v28, %v1730_v26  ;;  %v1811_v37 = vmul.f32 %v1809_v24, %v1792_v29 }
 0x2c4   : > { %v1945_v14 = vmul.f32 0.09359871, %v1941_v6  ;;  %v1912_v21 = vadd.f32 %v1908_v4, %v1902_v3  ;;  %v1913_v15 = vadd.f32 %v1909_v13, %v1903_v10  ;;  %v1946_v2 = vmul.f32 0.09359871, %v1942_v43 }
 0x2c5   : > { %v1943_v20 = vmul.f32 -0.022444984, %v1941_v6  ;;  %v1944_v22 = vmul.f32 -0.022444984, %v1942_v43  ;;  %v1884_v32 = vrot.slane %v1877_v9, %v3077_v5  ;;  %vm2145_vm15 = vcmp.lt.s32.totalorder %v3039_v27, 80 }
 0x2c6   : > { %v1978_v62 = vpop.permute.xlu1 %1977  ;;  %v1949_v18 = vrot.slane %v1945_v14, 1  ;;  %v1950_v23 = vrot.slane %v1946_v2, 1  ;;  %v1918_v60 = vcombine.low %v1912_v21, %v1913_v15  ;;  %v1850_v48 = vrot.slane %v1843_v8, %v3077_v5  ;;  %v1874_v13 = vld [vmem:[#allocation5 + $0x46] ss:$8 sm:$0x3] }
 0x2c7   : > { %v1982_v41 = vsel %vm1981_vm11, %v1978_v62, %v3513_v36  ;;  %v1983_v51 = vsel %vm1981_vm11, %v3513_v36, %v1978_v62  ;;  %v1891_v31 = vrot.slane %v1884_v32, %v3077_v5  ;;  %vm2186_vm0 = vcmp.lt.s32.totalorder %v3039_v27, 79  ;;  %v2185_v32 = vpop.permute.xlu0 %2184 }
 0x2c8   : > { %v1986_v33 = vmul.f32 0.13437954, %v1982_v41  ;;  %v1953_v38 = vadd.f32 %v1949_v18, %v1943_v20  ;;  %v1954_v42 = vadd.f32 %v1950_v23, %v1944_v22  ;;  %v1987_v46 = vmul.f32 0.13437954, %v1983_v51 }
 0x2c9   : > { %v1984_v50 = vmul.f32 -0.11064328, %v1982_v41  ;;  %v1925_v49 = vrot.slane %v1918_v60, %v3077_v5  ;;  %v1985_v52 = vmul.f32 -0.11064328, %v1983_v51  ;;  %v1812_v3 = vadd.f32 %v1811_v37, %v1771_v16 }
 0x2ca   : > { %v2019_v1 = vpop.permute.xlu1 %2018  ;;  %v1990_v55 = vrot.slane %v1986_v33, 1  ;;  %v1991_v47 = vrot.slane %v1987_v46, 1  ;;  %v1852_v10 = vmul.f32 %v1850_v48, %v1833_v45  ;;  %v1893_v41 = vmul.f32 %v1891_v31, %v1874_v13  ;;  %v1956_v46 = vld [vmem:[#allocation5 + $0x50] ss:$8 sm:$0x3] }
 0x2cb   : > { %v2023_v36 = vsel %vm2022_vm12, %v2019_v1, %v3528_v34  ;;  %v2024_v12 = vsel %vm2022_vm12, %v3528_v34, %v2019_v1  ;;  %v1959_v34 = vcombine.low %v1953_v38, %v1954_v42  ;;  %v1932_v9 = vrot.slane %v1925_v49, %v3077_v5 }
 0x2cc   : > { %v2027_v40 = vmul.f32 -0.07091272, %v2023_v36  ;;  %v2028_v17 = vmul.f32 -0.07091272, %v2024_v12  ;;  %v2025_v63 = vmul.f32 0.19340637, %v2023_v36  ;;  %v1994_v4 = vadd.f32 %v1990_v55, %v1984_v50 }
 0x2cd   : > { %v1995_v6 = vadd.f32 %v1991_v47, %v1985_v52  ;;  %v2026_v43 = vmul.f32 0.19340637, %v2024_v12  ;;  %v1966_v14 = vrot.slane %v1959_v34, %v3077_v5  ;;  %vm2227_vm1 = vcmp.lt.s32.totalorder %v3039_v27, 78 }
 0x2ce   : > { %v2060_v59 = vpop.permute.xlu1 %2059  ;;  %v2031_v0 = vrot.slane %v2027_v40, 1  ;;  %v2032_v7 = vrot.slane %v2028_v17, 1  ;;  %v1853_v22 = vadd.f32 %v1852_v10, %v1812_v3  ;;  %vm2268_vm2 = vcmp.lt.s32.totalorder %v3039_v27, 77 }
 0x2cf   : > { %v2064_v44 = vsel %vm2063_vm13, %v2060_v59, %v2062_v39  ;;  %v2065_v30 = vsel %vm2063_vm13, %v2062_v39, %v2060_v59  ;;  %v1915_v39 = vld [vmem:[#allocation5 + $0x47] ss:$8 sm:$0x3]  ;;  %v2000_v51 = vcombine.low %v1994_v4, %v1995_v6  ;;  %v1973_v33 = vrot.slane %v1966_v14, %v3077_v5 }
 0x2d0   : > { %v2035_v58 = vadd.f32 %v2031_v0, %v2025_v63  ;;  %v2068_v11 = vmul.f32 -0.048311274, %v2064_v44  ;;  %v2036_v25 = vadd.f32 %v2032_v7, %v2026_v43  ;;  %v2069_v21 = vmul.f32 -0.048311274, %v2065_v30 }
 0x2d1   : > { %v2066_v2 = vmul.f32 0.07913366, %v2064_v44  ;;  %v2067_v24 = vmul.f32 0.07913366, %v2065_v30  ;;  %v1934_v8 = vmul.f32 %v1932_v9, %v1915_v39  ;;  %v1894_v16 = vadd.f32 %v1893_v41, %v1853_v22  ;;  %v2226_v30 = vpop.permute.xlu0 %2225 }
 0x2d2   : > { %v2101_v15 = vpop.permute.xlu1 %2100  ;;  %v2072_v62 = vrot.slane %v2068_v11, 1  ;;  %v2073_v20 = vrot.slane %v2069_v21, 1  ;;  %v2041_v23 = vcombine.low %v2035_v58, %v2036_v25  ;;  %v2007_v37 = vrot.slane %v2000_v51, %v3077_v5  ;;  %v1997_v7 = vld [vmem:[#allocation5 + $0x51] ss:$8 sm:$0x3] }
 0x2d3   : > { %v2105_v28 = vsel %vm2104_vm14, %v2101_v15, %v2103_v35  ;;  %v2106_v18 = vsel %vm2104_vm14, %v2103_v35, %v2101_v15  ;;  %v1935_v40 = vadd.f32 %v1934_v8, %v1894_v16  ;;  %v1975_v49 = vmul.f32 %v1973_v33, %v1956_v46  ;;  %v2038_v9 = vld [vmem:[#allocation5 + $0x52] ss:$8 sm:$0x3]  ;;  %v2079_v8 = vld [vmem:[#allocation5 + $0x53] ss:$8 sm:$0x3] }
 0x2d4   : > { %v2076_v26 = vadd.f32 %v2072_v62, %v2066_v2  ;;  %v2109_v29 = vmul.f32 -0.15042959, %v2105_v28  ;;  %v2077_v60 = vadd.f32 %v2073_v20, %v2067_v24  ;;  %v2110_v38 = vmul.f32 -0.15042959, %v2106_v18 }
 0x2d5   : > { %v2107_v1 = vmul.f32 0.07984628, %v2105_v28  ;;  %v2108_v45 = vmul.f32 0.07984628, %v2106_v18  ;;  %v2048_v47 = vrot.slane %v2041_v23, %v3077_v5  ;;  %v1976_v11 = vadd.f32 %v1975_v49, %v1935_v40 }
 0x2d6   : > { %v2142_v42 = vpop.permute.xlu1 %2141  ;;  %v2113_v35 = vrot.slane %v2109_v29, 1  ;;  %v2114_v55 = vrot.slane %v2110_v38, 1  ;;  %v2082_v48 = vcombine.low %v2076_v26, %v2077_v60  ;;  %v2267_v29 = vpop.permute.xlu0 %2266 }
 0x2d7   : > { %v2146_v36 = vsel %vm2145_vm15, %v2142_v42, %v2144_v19  ;;  %v2147_v12 = vsel %vm2145_vm15, %v2144_v19, %v2142_v42  ;;  %v2014_v19 = vrot.slane %v2007_v37, %v3077_v5  ;;  %v2055_v3 = vrot.slane %v2048_v47, %v3077_v5 }
 0x2d8   : > { %v2117_v31 = vadd.f32 %v2113_v35, %v2107_v1  ;;  %v2150_v50 = vmul.f32 -0.06558517, %v2146_v36  ;;  %v2118_v34 = vadd.f32 %v2114_v55, %v2108_v45  ;;  %v2151_v52 = vmul.f32 -0.06558517, %v2147_v12 }
 0x2d9   : > { %v2148_v59 = vmul.f32 0.0941853, %v2146_v36  ;;  %v2149_v6 = vmul.f32 0.0941853, %v2147_v12  ;;  %v2089_v10 = vrot.slane %v2082_v48, %v3077_v5  ;;  %v2016_v18 = vmul.f32 %v2014_v19, %v1997_v7 }
 0x2da   : > { %v2183_v17 = vpop.permute.xlu1 %2182  ;;  %v2154_v63 = vrot.slane %v2150_v50, 1  ;;  %v2123_v4 = vcombine.low %v2117_v31, %v2118_v34  ;;  %v2155_v43 = vrot.slane %v2151_v52, 1  ;;  %v2057_v20 = vmul.f32 %v2055_v3, %v2038_v9  ;;  %v2120_v12 = vld [vmem:[#allocation5 + $0x54] ss:$8 sm:$0x3] }
 0x2db   : > { %v2187_v0 = vsel %vm2186_vm0, %v2183_v17, %v2185_v32  ;;  %v2188_v44 = vsel %vm2186_vm0, %v2185_v32, %v2183_v17  ;;  %v2096_v22 = vrot.slane %v2089_v10, %v3077_v5  ;;  %v2017_v55 = vadd.f32 %v2016_v18, %v1976_v11 }
 0x2dc   : > { %v2158_v13 = vadd.f32 %v2154_v63, %v2148_v59  ;;  %v2191_v58 = vmul.f32 0.027642278, %v2187_v0  ;;  %v2130_v14 = vrot.slane %v2123_v4, %v3077_v5  ;;  %v2159_v25 = vadd.f32 %v2155_v43, %v2149_v6  ;;  %v2161_v59 = vld [vmem:[#allocation5 + $0x55] ss:$8 sm:$0x3] }
 0x2dd   : > { %v2192_v21 = vmul.f32 0.027642278, %v2188_v44  ;;  %v2189_v39 = vmul.f32 0.12583223, %v2187_v0  ;;  %v2190_v51 = vmul.f32 0.12583223, %v2188_v44  ;;  %v2098_v47 = vmul.f32 %v2096_v22, %v2079_v8 }
 0x2de   : > { %v2224_v15 = vpop.permute.xlu1 %2223  ;;  %v2195_v2 = vrot.slane %v2191_v58, 1  ;;  %v2164_v41 = vcombine.low %v2158_v13, %v2159_v25  ;;  %v2137_v32 = vrot.slane %v2130_v14, %v3077_v5  ;;  %v2058_v52 = vadd.f32 %v2057_v20, %v2017_v55  ;;  %v2202_v4 = vld [vmem:[#allocation5 + $0x56] ss:$8 sm:$0x3] }
 0x2df   : > { %v2228_v62 = vsel %vm2227_vm1, %v2224_v15, %v2226_v30  ;;  %v2229_v28 = vsel %vm2227_vm1, %v2226_v30, %v2224_v15  ;;  %v2196_v24 = vrot.slane %v2192_v21, 1  ;;  %v2243_v13 = vld [vmem:[#allocation5 + $0x57] ss:$8 sm:$0x3] }
 0x2e0   : > { %v2199_v23 = vadd.f32 %v2195_v2, %v2189_v39  ;;  %v2232_v26 = vmul.f32 -0.007887483, %v2228_v62  ;;  %v2171_v33 = vrot.slane %v2164_v41, %v3077_v5  ;;  %v2233_v38 = vmul.f32 -0.007887483, %v2229_v28 }
 0x2e1   : > { %v2200_v60 = vadd.f32 %v2196_v24, %v2190_v51  ;;  %v2230_v46 = vmul.f32 -0.032311857, %v2228_v62  ;;  %v2231_v37 = vmul.f32 -0.032311857, %v2229_v28  ;;  %v2139_v17 = vmul.f32 %v2137_v32, %v2120_v12 }
 0x2e2   : > { %v2265_v42 = vpop.permute.xlu1 %2264  ;;  %v2236_v1 = vrot.slane %v2232_v26, 1  ;;  %v2237_v45 = vrot.slane %v2233_v38, 1  ;;  %v2178_v50 = vrot.slane %v2171_v33, %v3077_v5  ;;  %v2099_v43 = vadd.f32 %v2098_v47, %v2058_v52  ;;  %v2284_v39 = vld [vmem:[#allocation5 + $0x60] ss:$8 sm:$0x3] }
 0x2e3   : > { %v2269_v35 = vsel %vm2268_vm2, %v2265_v42, %v2267_v29  ;;  %v2270_v36 = vsel %vm2268_vm2, %v2267_v29, %v2265_v42  ;;  %v2205_v16 = vcombine.low %v2199_v23, %v2200_v60  ;;  %v2313_v23 = vsub.s32 0, %v3067_v61 }
 0x2e4   : > { %v2240_v48 = vadd.f32 %v2236_v1, %v2230_v46  ;;  %v2273_v31 = vmul.f32 -0.14695846, %v2269_v35  ;;  %v2241_v49 = vadd.f32 %v2237_v45, %v2231_v37  ;;  %v2274_v34 = vmul.f32 -0.14695846, %v2270_v36 }
 0x2e5   : > { %v2212_v40 = vrot.slane %v2205_v16, %v3077_v5  ;;  %v2271_v63 = vmul.f32 -0.057197776, %v2269_v35  ;;  %v2272_v30 = vmul.f32 -0.057197776, %v2270_v36  ;;  %v2180_v7 = vmul.f32 %v2178_v50, %v2161_v59 }
 0x2e6   : > { %v2277_v27 = vrot.slane %v2273_v31, 1  ;;  %v2246_v44 = vcombine.low %v2240_v48, %v2241_v49  ;;  %v2278_v19 = vrot.slane %v2274_v34, 1  ;;  %v2140_v58 = vadd.f32 %v2139_v17, %v2099_v43 }
 0x2e7   : > { %v2219_v0 = vrot.slane %v2212_v40, %v3077_v5  ;;  %v2317_v26 = vsub.s32 1, %v3067_v61 }
 0x2e8   : > { %v2281_v6 = vadd.f32 %v2277_v27, %v2271_v63  ;;  %v2253_v3 = vrot.slane %v2246_v44, %v3077_v5  ;;  %v2282_v10 = vadd.f32 %v2278_v19, %v2272_v30  ;;  %v2181_v25 = vadd.f32 %v2180_v7, %v2140_v58 }
 0x2e9   : > { %v2221_v11 = vmul.f32 %v2219_v0, %v2202_v4 }
 0x2ea   : > { %v2260_v9 = vrot.slane %v2253_v3, %v3077_v5  ;;  %v2287_v14 = vcombine.low %v2281_v6, %v2282_v10 }
 0x2eb   : > { %v2222_v2 = vadd.f32 %v2221_v11, %v2181_v25 }
 0x2ec   : > { %v2262_v21 = vmul.f32 %v2260_v9, %v2243_v13  ;;  %v2294_v15 = vrot.slane %v2287_v14, %v3077_v5 }
 0x2ee   : > { %v2301_v62 = vrot.slane %v2294_v15, %v3077_v5  ;;  %v2263_v28 = vadd.f32 %v2262_v21, %v2222_v2 }
 0x2f0   : > { %v2303_v18 = vmul.f32 %v2301_v62, %v2284_v39 }
 0x2f2   : > { %v2304_v41 = vadd.f32 %v2303_v18, %v2263_v28 }
 0x2f4   : > { %v2305_v51 = vsub.f32 0.0, %v2304_v41 }
 0x2f6   : > { %v2306_v24 = vmul.f32 1.442695, %v2305_v51 }
 0x2f8   : > { %2566 = vpow2.f32 %v2306_v24 }
 0x302   : > { %v2567_v20 = vpop.eup %2566 }
 0x303   : > { %v2308_v22 = vadd.f32 1.0, %v2567_v20 }
 0x305   : > { %2568 = vrcp.f32 %v2308_v22 }
 0x30f   : > { %v2569_v29 = vpop.eup %2568 }
 0x310   : > { %v2314_v5 = vrot.slane %v2569_v29, %v2313_v23  ;;  %v2318_v8 = vrot.slane %v2569_v29, %v2317_v26 }
 0x312   : > { %v2321_v32 = vmul.f32 %v2314_v5, %v2950_v53  ;;  %v2322_v33 = vmul.f32 %v2318_v8, %v2953_v54  ;;  %v2323_v61 = vmul.f32 %v2314_v5, %v2956_v56  ;;  %v2324_v60 = vmul.f32 %v2318_v8, %v2959_v57 }
 0x314   : > { %2325 = vst [vmem:[%s176_s23] sm:$0xff] %v2321_v32  ;;  %2326 = vst [vmem:[%s176_s23 + $0x8] sm:$0xff] %v2322_v33 }
 0x315   : > { %2327 = vst [vmem:[%s176_s23 + $0x10] sm:$0xff] %v2323_v61  ;;  %2328 = vst [vmem:[%s176_s23 + $0x18] sm:$0xff] %v2324_v60 }
 0x316   : > { %2641 = shalt.err (!%p2638_p7)
}
 0x317   : > { %s2642_s6 = scalar_lea.hbm %s3621_s27, 512  ;;  %s2646_s18 = scalar_lea.hbm %s3674_s2, 1024 }
 0x318   : > { %p2643_p9 = scmp.ne.s32.totalorder %s3621_s27, %s2642_s6  ;;  %p2647_p5 = scmp.lt.u32.totalorder %s3621_s27, %s3674_s2 }
 0x319   : > { %p2648_p11 = scmp.lt.u32.totalorder %s2646_s18, %s2642_s6  ;;  %p2650_p4 = scmp.lt.u32.totalorder %s2642_s6, %s3621_s27 }
 0x31a   : > { %p2644_p1 = pnand %p2643_p9, %p2865_p12 }
 0x31b   : > { %p2649_p2 = por %p2648_p11, %p2647_p5 }
 0x31c   : > { %p2645_p0 = pneg %p2644_p1 }
 0x31d   : > { %p2651_p6 = por %p2650_p4, %p2649_p2 }
 0x31f   : > { %p2652_p8 = pnand %p2651_p6, %p2645_p0 }
 0x321   : > { %2655 = shalt.err (!%p2652_p8)
}
 0x322   : > { %s2755_s26 = smov 256  }
 0x323   : > { %2452 = dma.vmem_to_hbm [thread:$0]  (%p2865_p12), %s3627_s17, 512, %s3621_s27, %s2330_s13, %s2755_s26, %s2755_s26, %s2722_s15  }
 0x324 PF: > { %s2358_s30 = sand.u32 1, %s2686_s9   ;;  %p3689_p10 = scmp.ne.s32.totalorder %s3679_s16, 0 }
 0x325   : > { %p3690_p13 = scmp.ge.s32.totalorder %s2698_s12, 2  ;;  %s2359_s23 = scalar_lea.sflag [#allocation4], %s2358_s30 }
 0x327   : > { %p2463_p3 = pnand %p3690_p13, %p3689_p10 }
 0x329   : > { %2681 = dma.done.wait (!%p2463_p3), %s2359_s23, 512  }
 0x32a   : > { %2683 = vsyncadd (!%p2463_p3), %s2359_s23, 4294966784  ;;  %p16_p7 = scmp.ge.s32.totalorder %s2827_s21, 4   ;;  %s3691_s9 = smov %s2690_s10 }
 0x32b   : > { %s3692_s10 = smov %s2694_s11  ;;  %s3693_s11 = smov %s2861_s8 }
 0x32c   : > { %s3694_s12 = smov %s2827_s21  ;;  %18 = sbr.rel (!%p16_p7) target bundleno = 6 (0x6), region = 125 }
 0x333   :  { %2364 = vsyncpa [#allocation3], 1 }
 0x334   :  { %2366 = vsyncpa [#allocation3 + $0x1], 1 }
 0x335   :  { %2367 = vsyncpa [#allocation6], 1 }
 0x336   :  { %2368 = vsyncpa [#allocation4], 1 }
 0x337   :  { %2370 = vsyncpa [#allocation4 + $0x1], 1 }

</bundles_post_ra>
